<compile_context>
chip_gen: v7x
topology: tpu7x:2x2x1
jax: 0.10.0
libtpu: 0.0.40
codegen_flags: <defaults>
</compile_context>

<pallas_src>
import math

import jax
import jax.numpy as jnp
from jax.experimental import pallas as pl
from jax.experimental.pallas import tpu as pltpu


def _layer_norm(x, g, b, eps=1e-5):
    mu = jnp.mean(x, axis=-1, keepdims=True)
    var = jnp.mean((x - mu) ** 2, axis=-1, keepdims=True)
    return (x - mu) * jax.lax.rsqrt(var + eps) * g + b


def _make_kernel(num_heads, dh_qk, dh_v, block_b, Tq, block_tk):
    H = num_heads
    inv_sqrt2 = 1.0 / math.sqrt(2.0)

    def split_heads(x16, dh, time):
        # (block_b*time, H*dh) bf16 -> (H*block_b, time, dh) bf16.
        # Static lane slices + stack + leading-dim reshapes (all proven to lower
        # on Mosaic); done in bf16 so the copy traffic is half the f32 variant.
        # TODO(synk): replace with one pltpu.einshape relayout once the grouped
        #             equation form covers this pattern.
        parts = [x16[:, h * dh:(h + 1) * dh] for h in range(H)]
        return jnp.stack(parts, axis=0).reshape(H * block_b, time, dh)

    def kernel(q_in_ref, kv_in_ref,
               lnq_g_ref, lnq_b_ref, lnkv_g_ref, lnkv_b_ref,
               wq_ref, bq_ref, wk_ref, bk_ref, wv_ref, bv_ref,
               wo_ref, bo_ref, ln2_g_ref, ln2_b_ref,
               w1_ref, b1_ref, w2_ref, b2_ref,
               out_ref,
               qh_sc, m_sc, l_sc, acc_sc):
        kv_step = pl.program_id(1)
        last_kv = pl.num_programs(1) - 1
        Cq = q_in_ref.shape[-1]
        Ckv = kv_in_ref.shape[-1]
        Rq = block_b * Tq
        Rk = block_b * block_tk

        # ---- kv step 0: query-side prologue + accumulator init ----
        @pl.when(kv_step == 0)
        def _():
            x_q = q_in_ref[...].reshape(Rq, Cq).astype(jnp.float32)
            qn = _layer_norm(x_q, lnq_g_ref[0], lnq_b_ref[0])
            # 1/sqrt(dh_qk) is already folded into wq/bq by the wrapper.
            q = jnp.dot(qn.astype(jnp.bfloat16), wq_ref[...],
                        preferred_element_type=jnp.float32) + bq_ref[0]
            qh_sc[...] = split_heads(q.astype(jnp.bfloat16), dh_qk, Tq)
            m_sc[...] = jnp.full(m_sc.shape, -jnp.inf, m_sc.dtype)
            l_sc[...] = jnp.zeros(l_sc.shape, l_sc.dtype)
            acc_sc[...] = jnp.zeros(acc_sc.shape, acc_sc.dtype)

        # ---- every kv step: LayerNorm + k/v projection of this kv tile ----
        x_kv = kv_in_ref[...].reshape(Rk, Ckv).astype(jnp.float32)
        kvn16 = _layer_norm(x_kv, lnkv_g_ref[0], lnkv_b_ref[0]).astype(jnp.bfloat16)
        k = jnp.dot(kvn16, wk_ref[...], preferred_element_type=jnp.float32) + bk_ref[0]
        v = jnp.dot(kvn16, wv_ref[...], preferred_element_type=jnp.float32) + bv_ref[0]
        k_h = split_heads(k.astype(jnp.bfloat16), dh_qk, block_tk)  # (BH, tk, dh_qk)
        v_h = split_heads(v.astype(jnp.bfloat16), dh_v, block_tk)   # (BH, tk, dh_v)

        # Scores: bf16 operands, f32 accumulation (native MXU path, no f32x f32
        # multi-pass decomposition).  Leading batch dim = (head, batch-block).
        s = jnp.einsum('bqd,bkd->bqk', qh_sc[...], k_h,
                       preferred_element_type=jnp.float32)          # (BH, Tq, tk)

        # Online-softmax (flash) accumulator update.
        m_prev = m_sc[...]
        m_new = jnp.maximum(m_prev, jnp.max(s, axis=-1, keepdims=True))
        alpha = jnp.exp(m_prev - m_new)
        p = jnp.exp(s - m_new)
        l_sc[...] = alpha * l_sc[...] + jnp.sum(p, axis=-1, keepdims=True)
        acc_sc[...] = alpha * acc_sc[...] + jnp.einsum(
            'bqk,bkd->bqd', p.astype(jnp.bfloat16), v_h,
            preferred_element_type=jnp.float32)
        m_sc[...] = m_new

        # ---- last kv step: normalize, merge heads, out-proj, residual, MLP ----
        @pl.when(kv_step == last_kv)
        def _():
            # approx reciprocal: EUP slot, ~1e-3 relative error (documented).
            ctx = acc_sc[...] * pl.reciprocal(l_sc[...], approx=True)
            ctx16 = ctx.astype(jnp.bfloat16).reshape(H, Rq, dh_v)
            summed = jnp.concatenate([ctx16[h] for h in range(H)], axis=-1)
            attn = jnp.dot(summed, wo_ref[...],
                           preferred_element_type=jnp.float32) + bo_ref[0]
            x_q = q_in_ref[...].reshape(Rq, Cq).astype(jnp.float32)
            x = x_q + attn                                   # query residual
            xn = _layer_norm(x, ln2_g_ref[0], ln2_b_ref[0])
            h1 = jnp.dot(xn.astype(jnp.bfloat16), w1_ref[...],
                         preferred_element_type=jnp.float32) + b1_ref[0]
            h1 = 0.5 * h1 * (1.0 + jax.lax.erf(h1 * inv_sqrt2))  # exact-erf GELU
            mlp = jnp.dot(h1.astype(jnp.bfloat16), w2_ref[...],
                          preferred_element_type=jnp.float32) + b2_ref[0]
            y = x + mlp                                      # (Rq, Cq) f32
            out_ref[...] = y.reshape(block_b, Tq, Cq).astype(out_ref.dtype)

    return kernel


_PARAM_ORDER = ("lnq_g", "lnq_b", "lnkv_g", "lnkv_b",
                "wq", "bq", "wk", "bk", "wv", "bv", "wo", "bo",
                "ln2_g", "ln2_b", "w1", "b1", "w2", "b2")
_BF16_PARAMS = frozenset({"wq", "wk", "wv", "wo", "w1", "w2"})


def _pick_block_b(B, Tq, Tk, target_rows=512):
    """Batch elements folded per grid step: fill the 256-wide MXU (target ~512
    LHS rows).  No forced >=2 grid steps (hurts single-core v5e/v6e)."""
    if Tq % 8 != 0 or Tk % 8 != 0:
        return 1                      # keep head split/merge reshapes tile-aligned
    bb = max(1, min(B, target_rows // max(Tq, 1)))
    while B % bb:
        bb -= 1
    return bb


def _pick_block_tk(Tk, target=512):
    """KV rows per online-softmax step (multiple of 8 dividing Tk, or full Tk)."""
    if Tk <= target:
        return Tk
    for d in range(target, 7, -1):
        if d % 8 == 0 and Tk % d == 0:
            return d
    return Tk


def _param_specs(param_arrays):
    # Full-shape blocks with a constant index map: each parameter is DMA'd into
    # VMEM once (block index never changes, so copies across grid steps are
    # elided) and stays resident for the whole kernel.
    return [pl.BlockSpec(p.shape, lambda b, kv, _nd=p.ndim: (0,) * _nd)
            for p in param_arrays]


def _vmem_cap_bytes():
    """Physical VMEM per core (v5e/v6e: 128 MiB, v7x: 64 MiB)."""
    try:
        cap = int(pltpu.get_tpu_info().vmem_capacity_bytes)
    except Exception:
        cap = 64 << 20                # conservative (v7x) default
    return max(cap, 64 << 20)


def _estimate_vmem(block_b, block_tk, Tq, Cq, Ckv, qk_ch, v_ch, hidden, H,
                   param_bytes):
    """Approximate worst-case VMEM footprint of one grid step (review: derive
    the budget from the real footprint instead of a fixed 16-48 MiB clamp)."""
    f32, bf16 = 4, 2
    Rq, Rk, BH = block_b * Tq, block_b * block_tk, H * block_b
    dh_qk, dh_v = qk_ch // H, v_ch // H
    tiles = 2 * (Rq * Cq + Rk * Ckv + Rq * Cq) * f32            # double-buffered I/O
    scratch = BH * Tq * (dh_qk * bf16 + 2 * f32 + dh_v * f32)   # q_h / m / l / acc
    kv_live = Rk * (2 * Ckv + qk_ch + v_ch) * f32 + Rk * (qk_ch + v_ch) * bf16
    scores = 2 * BH * Tq * block_tk * f32                       # s and p
    q_live = Rq * (2 * Cq + qk_ch) * f32
    fin_live = Rq * (4 * Cq + v_ch + hidden) * f32
    live = kv_live + scores + max(q_live, fin_live)
    return int(2 * param_bytes + tiles + scratch + 2 * live)    # 2x fudge on temps


def cross_attention_forward(inputs_q, inputs_kv, params, num_heads,
                            block_b=None, block_tk=None):
    B, Tq, Cq = inputs_q.shape
    Bkv, Tk, Ckv = inputs_kv.shape
    assert Bkv == B, "query/kv batch mismatch"
    qk_channels = params["wq"].shape[1]
    v_channels = params["wv"].shape[1]
    hidden = params["w1"].shape[1]
    assert qk_channels % num_heads == 0 and v_channels % num_heads == 0
    dh_qk = qk_channels // num_heads
    dh_v = v_channels // num_heads

    if block_b is None:
        block_b = _pick_block_b(B, Tq, Tk)
    assert B % block_b == 0
    if block_tk is None:
        block_tk = _pick_block_tk(Tk)
    assert Tk % block_tk == 0
    if block_b > 1:
        assert Tq % 8 == 0 and block_tk % 8 == 0, \
            "Tq and block_tk must be multiples of 8 when block_b > 1"

    # Fold 1/sqrt(dh_qk) into the q projection (scale Rq*dh elements once
    # instead of the score tensor every kv step).
    scale = 1.0 / math.sqrt(dh_qk)
    prepped = dict(params)
    prepped["wq"] = params["wq"] * scale
    prepped["bq"] = params["bq"] * scale

    # bf16 weight storage: halves weight HBM->VMEM bytes and feeds the MXU's
    # native bf16 path; accumulation stays f32 inside the kernel.
    param_arrays = [prepped[k].astype(jnp.bfloat16) if k in _BF16_PARAMS
                    else prepped[k].astype(jnp.float32)
                    for k in _PARAM_ORDER]
    param_bytes = sum(int(p.size) * p.dtype.itemsize for p in param_arrays)

    # Deterministic VMEM pre-check (no try/except rebuild): shrink the batch
    # block, then the kv tile, until the estimated footprint fits the budget.
    cap = _vmem_cap_bytes()
    budget = cap - (16 << 20)

    def est(bb, btk):
        return _estimate_vmem(bb, btk, Tq, Cq, Ckv, qk_channels, v_channels,
                              hidden, num_heads, param_bytes)

    while block_b > 1 and est(block_b, block_tk) > budget:
        bb = block_b // 2
        while bb > 1 and B % bb:
            bb -= 1
        block_b = max(bb, 1)
    while est(block_b, block_tk) > budget:
        half = block_tk // 2
        if half >= 8 and half % 8 == 0 and Tk % half == 0:
            block_tk = half
        else:
            break
    footprint = est(block_b, block_tk)
    if footprint > budget:
        # TODO(synk): tile Tq / keep weights in HBM (pl.ANY + manual DMA) for
        #             configs whose parameters alone exceed the VMEM budget.
        raise ValueError(f"CrossAttention kernel footprint {footprint} B exceeds "
                         f"VMEM budget {budget} B")
    vmem_limit = int(min(budget, max(footprint + (8 << 20), 32 << 20)))

    n_kv = Tk // block_tk
    grid = (B // block_b, n_kv)

    q_spec = pl.BlockSpec((block_b, Tq, Cq), lambda b, kv: (b, 0, 0))
    kv_spec = pl.BlockSpec((block_b, block_tk, Ckv), lambda b, kv: (b, kv, 0))
    out_spec = pl.BlockSpec((block_b, Tq, Cq), lambda b, kv: (b, 0, 0))

    kernel = _make_kernel(num_heads, dh_qk, dh_v, block_b, Tq, block_tk)

    return pl.pallas_call(
        kernel,
        out_shape=jax.ShapeDtypeStruct((B, Tq, Cq), inputs_q.dtype),
        grid=grid,
        in_specs=[q_spec, kv_spec] + _param_specs(param_arrays),
        out_specs=out_spec,
        scratch_shapes=[
            pltpu.VMEM((num_heads * block_b, Tq, dh_qk), jnp.bfloat16),  # q heads
            pltpu.VMEM((num_heads * block_b, Tq, 1), jnp.float32),       # running max
            pltpu.VMEM((num_heads * block_b, Tq, 1), jnp.float32),       # running denom
            pltpu.VMEM((num_heads * block_b, Tq, dh_v), jnp.float32),    # running ctx
        ],
        compiler_params=pltpu.CompilerParams(
            dimension_semantics=("parallel", "arbitrary"),
            vmem_limit_bytes=vmem_limit),
    )(inputs_q, inputs_kv, *param_arrays)


def init_params(key, q_in_channels, kv_in_channels, num_heads,
                widening_factor=1, shape_for_attn="kv"):
    """Deterministic synthetic init mimicking the module's parameter shapes."""
    qk_channels = q_in_channels if shape_for_attn == "q" else kv_in_channels
    v_channels = qk_channels
    output_channels = q_in_channels
    hidden = widening_factor * output_channels

    keys = jax.random.split(key, 6)

    def lin_w(k, fan_in, fan_out):
        return (jax.random.normal(k, (fan_in, fan_out), jnp.float32)
                * math.sqrt(1.0 / fan_in))

    return {
        "lnq_g": jnp.ones((1, q_in_channels), jnp.float32),
        "lnq_b": jnp.zeros((1, q_in_channels), jnp.float32),
        "lnkv_g": jnp.ones((1, kv_in_channels), jnp.float32),
        "lnkv_b": jnp.zeros((1, kv_in_channels), jnp.float32),
        "wq": lin_w(keys[0], q_in_channels, qk_channels),
        "bq": jnp.zeros((1, qk_channels), jnp.float32),
        "wk": lin_w(keys[1], kv_in_channels, qk_channels),
        "bk": jnp.zeros((1, qk_channels), jnp.float32),
        "wv": lin_w(keys[2], kv_in_channels, v_channels),
        "bv": jnp.zeros((1, v_channels), jnp.float32),
        "wo": lin_w(keys[3], v_channels, output_channels),
        "bo": jnp.zeros((1, output_channels), jnp.float32),
        "ln2_g": jnp.ones((1, output_channels), jnp.float32),
        "ln2_b": jnp.zeros((1, output_channels), jnp.float32),
        "w1": lin_w(keys[4], output_channels, hidden),
        "b1": jnp.zeros((1, hidden), jnp.float32),
        "w2": lin_w(keys[5], hidden, output_channels),
        "b2": jnp.zeros((1, output_channels), jnp.float32),
    }


def reference_forward(inputs_q, inputs_kv, params, num_heads, emulate_bf16=False):
    """Plain-JAX reference; with emulate_bf16=True it mirrors the kernel's
    precision policy (bf16 matmul operands, f32 accumulation everywhere)."""
    def ln(x, g, b):
        mu = x.mean(-1, keepdims=True)
        var = ((x - mu) ** 2).mean(-1, keepdims=True)
        return (x - mu) / jnp.sqrt(var + 1e-5) * g[0] + b[0]

    def mm(a, w):
        if emulate_bf16:
            return jnp.dot(a.astype(jnp.bfloat16), w.astype(jnp.bfloat16),
                           preferred_element_type=jnp.float32)
        return jnp.dot(a, w)

    def bmm(eq, a, b):
        if emulate_bf16:
            return jnp.einsum(eq, a.astype(jnp.bfloat16), b.astype(jnp.bfloat16),
                              preferred_element_type=jnp.float32)
        return jnp.einsum(eq, a, b)

    B, Tq, _ = inputs_q.shape
    _, Tk, _ = inputs_kv.shape
    qn = ln(inputs_q, params["lnq_g"], params["lnq_b"])
    kvn = ln(inputs_kv, params["lnkv_g"], params["lnkv_b"])
    q = mm(qn, params["wq"]) + params["bq"][0]
    k = mm(kvn, params["wk"]) + params["bk"][0]
    v = mm(kvn, params["wv"]) + params["bv"][0]
    dh_qk = q.shape[-1] // num_heads
    dh_v = v.shape[-1] // num_heads
    q = q * (1.0 / math.sqrt(dh_qk))        # == scaling the scores (exact in math)
    q = q.reshape(B, Tq, num_heads, dh_qk).transpose(0, 2, 1, 3)
    k = k.reshape(B, Tk, num_heads, dh_qk).transpose(0, 2, 1, 3)
    v = v.reshape(B, Tk, num_heads, dh_v).transpose(0, 2, 1, 3)
    att = bmm("bhqd,bhkd->bhqk", q, k)
    att = jax.nn.softmax(att, axis=-1)
    summed = bmm("bhqk,bhkd->bhqd", att, v)
    summed = summed.transpose(0, 2, 1, 3).reshape(B, Tq, num_heads * dh_v)
    attn_out = mm(summed, params["wo"]) + params["bo"][0]
    x = inputs_q + attn_out
    xn = ln(x, params["ln2_g"], params["ln2_b"])
    h1 = mm(xn, params["w1"]) + params["b1"][0]
    h1 = 0.5 * h1 * (1.0 + jax.lax.erf(h1 / math.sqrt(2.0)))
    mlp = mm(h1, params["w2"]) + params["b2"][0]
    return x + mlp


if __name__ == "__main__":
    # CrossAttention(q_in_channels=128, kv_in_channels=128, num_heads=8,
    #                widening_factor=1, shape_for_attn='kv'), small sequences.
    B, Tq, Tk = 4, 8, 32
    Q_IN, KV_IN, NUM_HEADS = 128, 128, 8

    key = jax.random.PRNGKey(0)
    k_q, k_kv, k_p = jax.random.split(key, 3)
    inputs_q = jax.random.normal(k_q, (B, Tq, Q_IN), jnp.float32)
    inputs_kv = jax.random.normal(k_kv, (B, Tk, KV_IN), jnp.float32)
    params = init_params(k_p, Q_IN, KV_IN, NUM_HEADS, widening_factor=1)

    # block_tk=16 forces two kv steps, exercising the online-softmax path.
    out = cross_attention_forward(inputs_q, inputs_kv, params, NUM_HEADS,
                                  block_tk=16)
    out = jax.block_until_ready(out)

    ref = reference_forward(inputs_q, inputs_kv, params, NUM_HEADS,
                            emulate_bf16=True)
    assert out.shape == (B, Tq, Q_IN)
    assert jnp.allclose(out, ref, rtol=2e-2, atol=2e-2), "mismatch vs JAX reference"

    print("KERNEL_OK")
</pallas_src>

<mosaic_0001>
module attributes {stable_mosaic.version = 11 : i64} {
  func.func @kernel(%arg0: i32, %arg1: i32, %arg2: memref<4x8x128xf32, #tpu.memory_space<vmem>>, %arg3: memref<4x16x128xf32, #tpu.memory_space<vmem>>, %arg4: memref<1x128xf32, #tpu.memory_space<vmem>>, %arg5: memref<1x128xf32, #tpu.memory_space<vmem>>, %arg6: memref<1x128xf32, #tpu.memory_space<vmem>>, %arg7: memref<1x128xf32, #tpu.memory_space<vmem>>, %arg8: memref<128x128xbf16, #tpu.memory_space<vmem>>, %arg9: memref<1x128xf32, #tpu.memory_space<vmem>>, %arg10: memref<128x128xbf16, #tpu.memory_space<vmem>>, %arg11: memref<1x128xf32, #tpu.memory_space<vmem>>, %arg12: memref<128x128xbf16, #tpu.memory_space<vmem>>, %arg13: memref<1x128xf32, #tpu.memory_space<vmem>>, %arg14: memref<128x128xbf16, #tpu.memory_space<vmem>>, %arg15: memref<1x128xf32, #tpu.memory_space<vmem>>, %arg16: memref<1x128xf32, #tpu.memory_space<vmem>>, %arg17: memref<1x128xf32, #tpu.memory_space<vmem>>, %arg18: memref<128x128xbf16, #tpu.memory_space<vmem>>, %arg19: memref<1x128xf32, #tpu.memory_space<vmem>>, %arg20: memref<128x128xbf16, #tpu.memory_space<vmem>>, %arg21: memref<1x128xf32, #tpu.memory_space<vmem>>, %arg22: memref<4x8x128xf32, #tpu.memory_space<vmem>>, %arg23: memref<32x8x16xbf16, #tpu.memory_space<vmem>>, %arg24: memref<32x8x1xf32, #tpu.memory_space<vmem>>, %arg25: memref<32x8x1xf32, #tpu.memory_space<vmem>>, %arg26: memref<32x8x16xf32, #tpu.memory_space<vmem>>) attributes {dimension_semantics = [#tpu.dimension_semantics<parallel>, #tpu.dimension_semantics<arbitrary>], iteration_bounds = array<i64: 1, 2>, scalar_prefetch = 0 : i64, scratch_operands = 4 : i64, tpu.core_type = #tpu.core_type<tc>, window_params = [{transform_indices = @transform_0, window_bounds = array<i64: 4, 8, 128>}, {transform_indices = @transform_1, window_bounds = array<i64: 4, 16, 128>}, {pipeline_mode = #tpu.pipeline_mode<synchronous>, transform_indices = @transform_2, window_bounds = array<i64: 1, 128>}, {pipeline_mode = #tpu.pipeline_mode<synchronous>, transform_indices = @transform_3, window_bounds = array<i64: 1, 128>}, {pipeline_mode = #tpu.pipeline_mode<synchronous>, transform_indices = @transform_4, window_bounds = array<i64: 1, 128>}, {pipeline_mode = #tpu.pipeline_mode<synchronous>, transform_indices = @transform_5, window_bounds = array<i64: 1, 128>}, {pipeline_mode = #tpu.pipeline_mode<synchronous>, transform_indices = @transform_6, window_bounds = array<i64: 128, 128>}, {pipeline_mode = #tpu.pipeline_mode<synchronous>, transform_indices = @transform_7, window_bounds = array<i64: 1, 128>}, {pipeline_mode = #tpu.pipeline_mode<synchronous>, transform_indices = @transform_8, window_bounds = array<i64: 128, 128>}, {pipeline_mode = #tpu.pipeline_mode<synchronous>, transform_indices = @transform_9, window_bounds = array<i64: 1, 128>}, {pipeline_mode = #tpu.pipeline_mode<synchronous>, transform_indices = @transform_10, window_bounds = array<i64: 128, 128>}, {pipeline_mode = #tpu.pipeline_mode<synchronous>, transform_indices = @transform_11, window_bounds = array<i64: 1, 128>}, {pipeline_mode = #tpu.pipeline_mode<synchronous>, transform_indices = @transform_12, window_bounds = array<i64: 128, 128>}, {pipeline_mode = #tpu.pipeline_mode<synchronous>, transform_indices = @transform_13, window_bounds = array<i64: 1, 128>}, {pipeline_mode = #tpu.pipeline_mode<synchronous>, transform_indices = @transform_14, window_bounds = array<i64: 1, 128>}, {pipeline_mode = #tpu.pipeline_mode<synchronous>, transform_indices = @transform_15, window_bounds = array<i64: 1, 128>}, {pipeline_mode = #tpu.pipeline_mode<synchronous>, transform_indices = @transform_16, window_bounds = array<i64: 128, 128>}, {pipeline_mode = #tpu.pipeline_mode<synchronous>, transform_indices = @transform_17, window_bounds = array<i64: 1, 128>}, {pipeline_mode = #tpu.pipeline_mode<synchronous>, transform_indices = @transform_18, window_bounds = array<i64: 128, 128>}, {pipeline_mode = #tpu.pipeline_mode<synchronous>, transform_indices = @transform_19, window_bounds = array<i64: 1, 128>}, {transform_indices = @transform_20, window_bounds = array<i64: 4, 8, 128>}]} {
    %c0_i32 = arith.constant 0 : i32
    %0 = arith.cmpi eq, %arg1, %c0_i32 : i32
    %1 = arith.extui %0 : i1 to i32
    %c0_i32_0 = arith.constant 0 : i32
    %2 = arith.cmpi ne, %1, %c0_i32_0 : i32
    scf.if %2 {
      %c0_47 = arith.constant 0 : index
      %c0_48 = arith.constant 0 : index
      %c0_49 = arith.constant 0 : index
      %114 = vector.load %arg2[%c0_47, %c0_48, %c0_49] : memref<4x8x128xf32, #tpu.memory_space<vmem>>, vector<4x8x128xf32>
      %115 = vector.shape_cast %114 : vector<4x8x128xf32> to vector<32x128xf32>
      %c0_50 = arith.constant 0 : index
      %c0_51 = arith.constant 0 : index
      %116 = vector.load %arg4[%c0_50, %c0_51] : memref<1x128xf32, #tpu.memory_space<vmem>>, vector<1x128xf32>
      %117 = vector.shape_cast %116 : vector<1x128xf32> to vector<128xf32>
      %c0_52 = arith.constant 0 : index
      %c0_53 = arith.constant 0 : index
      %118 = vector.load %arg5[%c0_52, %c0_53] : memref<1x128xf32, #tpu.memory_space<vmem>>, vector<1x128xf32>
      %119 = vector.shape_cast %118 : vector<1x128xf32> to vector<128xf32>
      %cst_54 = arith.constant dense<0.000000e+00> : vector<32xf32>
      %120 = vector.multi_reduction <add>, %115, %cst_54 [1] : vector<32x128xf32> to vector<32xf32>
      %121 = vector.shape_cast %120 : vector<32xf32> to vector<32x1xf32>
      %cst_55 = arith.constant 1.280000e+02 : f32
      %122 = vector.broadcast %cst_55 : f32 to vector<32x1xf32>
      %123 = arith.divf %121, %122 : vector<32x1xf32>
      %124 = vector.broadcast %123 : vector<32x1xf32> to vector<32x128xf32>
      %125 = arith.subf %115, %124 : vector<32x128xf32>
      %126 = arith.mulf %125, %125 : vector<32x128xf32>
      %cst_56 = arith.constant dense<0.000000e+00> : vector<32xf32>
      %127 = vector.multi_reduction <add>, %126, %cst_56 [1] : vector<32x128xf32> to vector<32xf32>
      %128 = vector.shape_cast %127 : vector<32xf32> to vector<32x1xf32>
      %cst_57 = arith.constant 1.280000e+02 : f32
      %129 = vector.broadcast %cst_57 : f32 to vector<32x1xf32>
      %130 = arith.divf %128, %129 : vector<32x1xf32>
      %131 = vector.broadcast %123 : vector<32x1xf32> to vector<32x128xf32>
      %132 = arith.subf %115, %131 : vector<32x128xf32>
      %cst_58 = arith.constant 9.99999974E-6 : f32
      %133 = vector.broadcast %cst_58 : f32 to vector<32x1xf32>
      %134 = arith.addf %130, %133 : vector<32x1xf32>
      %135 = math.rsqrt %134 : vector<32x1xf32>
      %136 = vector.broadcast %135 : vector<32x1xf32> to vector<32x128xf32>
      %137 = arith.mulf %132, %136 : vector<32x128xf32>
      %138 = vector.shape_cast %117 : vector<128xf32> to vector<1x128xf32>
      %139 = vector.broadcast %138 : vector<1x128xf32> to vector<32x128xf32>
      %140 = arith.mulf %137, %139 : vector<32x128xf32>
      %141 = vector.shape_cast %119 : vector<128xf32> to vector<1x128xf32>
      %142 = vector.broadcast %141 : vector<1x128xf32> to vector<32x128xf32>
      %143 = arith.addf %140, %142 : vector<32x128xf32>
      %144 = arith.truncf %143 : vector<32x128xf32> to vector<32x128xbf16>
      %c0_59 = arith.constant 0 : index
      %c0_60 = arith.constant 0 : index
      %145 = vector.load %arg8[%c0_59, %c0_60] : memref<128x128xbf16, #tpu.memory_space<vmem>>, vector<128x128xbf16>
      %cst_61 = arith.constant dense<0.000000e+00> : vector<32x128xf32>
      %146 = tpu.matmul %144, %145, %cst_61 {dimension_numbers = #tpu.dot_dimension_numbers<[1], [0], [0], [1], [0, 0, 1, 1], [], []>} : vector<32x128xbf16>, vector<128x128xbf16>, vector<32x128xf32> -> vector<32x128xf32>
      %c0_62 = arith.constant 0 : index
      %c0_63 = arith.constant 0 : index
      %147 = vector.load %arg9[%c0_62, %c0_63] : memref<1x128xf32, #tpu.memory_space<vmem>>, vector<1x128xf32>
      %148 = vector.shape_cast %147 : vector<1x128xf32> to vector<128xf32>
      %149 = vector.shape_cast %148 : vector<128xf32> to vector<1x128xf32>
      %150 = vector.broadcast %149 : vector<1x128xf32> to vector<32x128xf32>
      %151 = arith.addf %146, %150 : vector<32x128xf32>
      %152 = arith.truncf %151 : vector<32x128xf32> to vector<32x128xbf16>
      %153 = vector.extract_strided_slice %152 {offsets = [0, 0], sizes = [32, 16], strides = [1, 1]} : vector<32x128xbf16> to vector<32x16xbf16>
      %154 = vector.extract_strided_slice %152 {offsets = [0, 16], sizes = [32, 16], strides = [1, 1]} : vector<32x128xbf16> to vector<32x16xbf16>
      %155 = vector.extract_strided_slice %152 {offsets = [0, 32], sizes = [32, 16], strides = [1, 1]} : vector<32x128xbf16> to vector<32x16xbf16>
      %156 = vector.extract_strided_slice %152 {offsets = [0, 48], sizes = [32, 16], strides = [1, 1]} : vector<32x128xbf16> to vector<32x16xbf16>
      %157 = vector.extract_strided_slice %152 {offsets = [0, 64], sizes = [32, 16], strides = [1, 1]} : vector<32x128xbf16> to vector<32x16xbf16>
      %158 = vector.extract_strided_slice %152 {offsets = [0, 80], sizes = [32, 16], strides = [1, 1]} : vector<32x128xbf16> to vector<32x16xbf16>
      %159 = vector.extract_strided_slice %152 {offsets = [0, 96], sizes = [32, 16], strides = [1, 1]} : vector<32x128xbf16> to vector<32x16xbf16>
      %160 = vector.extract_strided_slice %152 {offsets = [0, 112], sizes = [32, 16], strides = [1, 1]} : vector<32x128xbf16> to vector<32x16xbf16>
      %161 = vector.shape_cast %153 : vector<32x16xbf16> to vector<1x32x16xbf16>
      %162 = vector.shape_cast %154 : vector<32x16xbf16> to vector<1x32x16xbf16>
      %163 = vector.shape_cast %155 : vector<32x16xbf16> to vector<1x32x16xbf16>
      %164 = vector.shape_cast %156 : vector<32x16xbf16> to vector<1x32x16xbf16>
      %165 = vector.shape_cast %157 : vector<32x16xbf16> to vector<1x32x16xbf16>
      %166 = vector.shape_cast %158 : vector<32x16xbf16> to vector<1x32x16xbf16>
      %167 = vector.shape_cast %159 : vector<32x16xbf16> to vector<1x32x16xbf16>
      %168 = vector.shape_cast %160 : vector<32x16xbf16> to vector<1x32x16xbf16>
      %169 = tpu.concatenate %161, %162, %163, %164, %165, %166, %167, %168 in 0 : vector<1x32x16xbf16>, vector<1x32x16xbf16>, vector<1x32x16xbf16>, vector<1x32x16xbf16>, vector<1x32x16xbf16>, vector<1x32x16xbf16>, vector<1x32x16xbf16>, vector<1x32x16xbf16> -> vector<8x32x16xbf16>
      %170 = vector.shape_cast %169 : vector<8x32x16xbf16> to vector<32x8x16xbf16>
      %c0_64 = arith.constant 0 : index
      %c0_65 = arith.constant 0 : index
      %c0_66 = arith.constant 0 : index
      %171 = vector.load %arg23[%c0_64, %c0_65, %c0_66] : memref<32x8x16xbf16, #tpu.memory_space<vmem>>, vector<32x8x16xbf16>
      tpu.vector_store %arg23[%c0_64, %c0_65, %c0_66], %170 {strides = array<i32>} : memref<32x8x16xbf16, #tpu.memory_space<vmem>>, vector<32x8x16xbf16>,
      %cst_67 = arith.constant 0xFF800000 : f32
      %172 = vector.broadcast %cst_67 : f32 to vector<32x8x1xf32>
      %c0_68 = arith.constant 0 : index
      %c0_69 = arith.constant 0 : index
      %c0_70 = arith.constant 0 : index
      %173 = vector.load %arg24[%c0_68, %c0_69, %c0_70] : memref<32x8x1xf32, #tpu.memory_space<vmem>>, vector<32x8x1xf32>
      tpu.vector_store %arg24[%c0_68, %c0_69, %c0_70], %172 {strides = array<i32>} : memref<32x8x1xf32, #tpu.memory_space<vmem>>, vector<32x8x1xf32>,
      %cst_71 = arith.constant 0.000000e+00 : f32
      %174 = vector.broadcast %cst_71 : f32 to vector<32x8x1xf32>
      %c0_72 = arith.constant 0 : index
      %c0_73 = arith.constant 0 : index
      %c0_74 = arith.constant 0 : index
      %175 = vector.load %arg25[%c0_72, %c0_73, %c0_74] : memref<32x8x1xf32, #tpu.memory_space<vmem>>, vector<32x8x1xf32>
      tpu.vector_store %arg25[%c0_72, %c0_73, %c0_74], %174 {strides = array<i32>} : memref<32x8x1xf32, #tpu.memory_space<vmem>>, vector<32x8x1xf32>,
      %cst_75 = arith.constant 0.000000e+00 : f32
      %176 = vector.broadcast %cst_75 : f32 to vector<32x8x16xf32>
      %c0_76 = arith.constant 0 : index
      %c0_77 = arith.constant 0 : index
      %c0_78 = arith.constant 0 : index
      %177 = vector.load %arg26[%c0_76, %c0_77, %c0_78] : memref<32x8x16xf32, #tpu.memory_space<vmem>>, vector<32x8x16xf32>
      tpu.vector_store %arg26[%c0_76, %c0_77, %c0_78], %176 {strides = array<i32>} : memref<32x8x16xf32, #tpu.memory_space<vmem>>, vector<32x8x16xf32>,
    } else {
    }
    %c0 = arith.constant 0 : index
    %c0_1 = arith.constant 0 : index
    %c0_2 = arith.constant 0 : index
    %3 = vector.load %arg3[%c0, %c0_1, %c0_2] : memref<4x16x128xf32, #tpu.memory_space<vmem>>, vector<4x16x128xf32>
    %4 = vector.shape_cast %3 : vector<4x16x128xf32> to vector<64x128xf32>
    %c0_3 = arith.constant 0 : index
    %c0_4 = arith.constant 0 : index
    %5 = vector.load %arg6[%c0_3, %c0_4] : memref<1x128xf32, #tpu.memory_space<vmem>>, vector<1x128xf32>
    %6 = vector.shape_cast %5 : vector<1x128xf32> to vector<128xf32>
    %c0_5 = arith.constant 0 : index
    %c0_6 = arith.constant 0 : index
    %7 = vector.load %arg7[%c0_5, %c0_6] : memref<1x128xf32, #tpu.memory_space<vmem>>, vector<1x128xf32>
    %8 = vector.shape_cast %7 : vector<1x128xf32> to vector<128xf32>
    %cst = arith.constant dense<0.000000e+00> : vector<64xf32>
    %9 = vector.multi_reduction <add>, %4, %cst [1] : vector<64x128xf32> to vector<64xf32>
    %10 = vector.shape_cast %9 : vector<64xf32> to vector<64x1xf32>
    %cst_7 = arith.constant 1.280000e+02 : f32
    %11 = vector.broadcast %cst_7 : f32 to vector<64x1xf32>
    %12 = arith.divf %10, %11 : vector<64x1xf32>
    %13 = vector.broadcast %12 : vector<64x1xf32> to vector<64x128xf32>
    %14 = arith.subf %4, %13 : vector<64x128xf32>
    %15 = arith.mulf %14, %14 : vector<64x128xf32>
    %cst_8 = arith.constant dense<0.000000e+00> : vector<64xf32>
    %16 = vector.multi_reduction <add>, %15, %cst_8 [1] : vector<64x128xf32> to vector<64xf32>
    %17 = vector.shape_cast %16 : vector<64xf32> to vector<64x1xf32>
    %cst_9 = arith.constant 1.280000e+02 : f32
    %18 = vector.broadcast %cst_9 : f32 to vector<64x1xf32>
    %19 = arith.divf %17, %18 : vector<64x1xf32>
    %20 = vector.broadcast %12 : vector<64x1xf32> to vector<64x128xf32>
    %21 = arith.subf %4, %20 : vector<64x128xf32>
    %cst_10 = arith.constant 9.99999974E-6 : f32
    %22 = vector.broadcast %cst_10 : f32 to vector<64x1xf32>
    %23 = arith.addf %19, %22 : vector<64x1xf32>
    %24 = math.rsqrt %23 : vector<64x1xf32>
    %25 = vector.broadcast %24 : vector<64x1xf32> to vector<64x128xf32>
    %26 = arith.mulf %21, %25 : vector<64x128xf32>
    %27 = vector.shape_cast %6 : vector<128xf32> to vector<1x128xf32>
    %28 = vector.broadcast %27 : vector<1x128xf32> to vector<64x128xf32>
    %29 = arith.mulf %26, %28 : vector<64x128xf32>
    %30 = vector.shape_cast %8 : vector<128xf32> to vector<1x128xf32>
    %31 = vector.broadcast %30 : vector<1x128xf32> to vector<64x128xf32>
    %32 = arith.addf %29, %31 : vector<64x128xf32>
    %33 = arith.truncf %32 : vector<64x128xf32> to vector<64x128xbf16>
    %c0_11 = arith.constant 0 : index
    %c0_12 = arith.constant 0 : index
    %34 = vector.load %arg10[%c0_11, %c0_12] : memref<128x128xbf16, #tpu.memory_space<vmem>>, vector<128x128xbf16>
    %cst_13 = arith.constant dense<0.000000e+00> : vector<64x128xf32>
    %35 = tpu.matmul %33, %34, %cst_13 {dimension_numbers = #tpu.dot_dimension_numbers<[1], [0], [0], [1], [0, 0, 1, 1], [], []>} : vector<64x128xbf16>, vector<128x128xbf16>, vector<64x128xf32> -> vector<64x128xf32>
    %c0_14 = arith.constant 0 : index
    %c0_15 = arith.constant 0 : index
    %36 = vector.load %arg11[%c0_14, %c0_15] : memref<1x128xf32, #tpu.memory_space<vmem>>, vector<1x128xf32>
    %37 = vector.shape_cast %36 : vector<1x128xf32> to vector<128xf32>
    %38 = vector.shape_cast %37 : vector<128xf32> to vector<1x128xf32>
    %39 = vector.broadcast %38 : vector<1x128xf32> to vector<64x128xf32>
    %40 = arith.addf %35, %39 : vector<64x128xf32>
    %c0_16 = arith.constant 0 : index
    %c0_17 = arith.constant 0 : index
    %41 = vector.load %arg12[%c0_16, %c0_17] : memref<128x128xbf16, #tpu.memory_space<vmem>>, vector<128x128xbf16>
    %cst_18 = arith.constant dense<0.000000e+00> : vector<64x128xf32>
    %42 = tpu.matmul %33, %41, %cst_18 {dimension_numbers = #tpu.dot_dimension_numbers<[1], [0], [0], [1], [0, 0, 1, 1], [], []>} : vector<64x128xbf16>, vector<128x128xbf16>, vector<64x128xf32> -> vector<64x128xf32>
    %c0_19 = arith.constant 0 : index
    %c0_20 = arith.constant 0 : index
    %43 = vector.load %arg13[%c0_19, %c0_20] : memref<1x128xf32, #tpu.memory_space<vmem>>, vector<1x128xf32>
    %44 = vector.shape_cast %43 : vector<1x128xf32> to vector<128xf32>
    %45 = vector.shape_cast %44 : vector<128xf32> to vector<1x128xf32>
    %46 = vector.broadcast %45 : vector<1x128xf32> to vector<64x128xf32>
    %47 = arith.addf %42, %46 : vector<64x128xf32>
    %48 = arith.truncf %40 : vector<64x128xf32> to vector<64x128xbf16>
    %49 = vector.extract_strided_slice %48 {offsets = [0, 0], sizes = [64, 16], strides = [1, 1]} : vector<64x128xbf16> to vector<64x16xbf16>
    %50 = vector.extract_strided_slice %48 {offsets = [0, 16], sizes = [64, 16], strides = [1, 1]} : vector<64x128xbf16> to vector<64x16xbf16>
    %51 = vector.extract_strided_slice %48 {offsets = [0, 32], sizes = [64, 16], strides = [1, 1]} : vector<64x128xbf16> to vector<64x16xbf16>
    %52 = vector.extract_strided_slice %48 {offsets = [0, 48], sizes = [64, 16], strides = [1, 1]} : vector<64x128xbf16> to vector<64x16xbf16>
    %53 = vector.extract_strided_slice %48 {offsets = [0, 64], sizes = [64, 16], strides = [1, 1]} : vector<64x128xbf16> to vector<64x16xbf16>
    %54 = vector.extract_strided_slice %48 {offsets = [0, 80], sizes = [64, 16], strides = [1, 1]} : vector<64x128xbf16> to vector<64x16xbf16>
    %55 = vector.extract_strided_slice %48 {offsets = [0, 96], sizes = [64, 16], strides = [1, 1]} : vector<64x128xbf16> to vector<64x16xbf16>
    %56 = vector.extract_strided_slice %48 {offsets = [0, 112], sizes = [64, 16], strides = [1, 1]} : vector<64x128xbf16> to vector<64x16xbf16>
    %57 = vector.shape_cast %49 : vector<64x16xbf16> to vector<1x64x16xbf16>
    %58 = vector.shape_cast %50 : vector<64x16xbf16> to vector<1x64x16xbf16>
    %59 = vector.shape_cast %51 : vector<64x16xbf16> to vector<1x64x16xbf16>
    %60 = vector.shape_cast %52 : vector<64x16xbf16> to vector<1x64x16xbf16>
    %61 = vector.shape_cast %53 : vector<64x16xbf16> to vector<1x64x16xbf16>
    %62 = vector.shape_cast %54 : vector<64x16xbf16> to vector<1x64x16xbf16>
    %63 = vector.shape_cast %55 : vector<64x16xbf16> to vector<1x64x16xbf16>
    %64 = vector.shape_cast %56 : vector<64x16xbf16> to vector<1x64x16xbf16>
    %65 = tpu.concatenate %57, %58, %59, %60, %61, %62, %63, %64 in 0 : vector<1x64x16xbf16>, vector<1x64x16xbf16>, vector<1x64x16xbf16>, vector<1x64x16xbf16>, vector<1x64x16xbf16>, vector<1x64x16xbf16>, vector<1x64x16xbf16>, vector<1x64x16xbf16> -> vector<8x64x16xbf16>
    %66 = vector.shape_cast %65 : vector<8x64x16xbf16> to vector<32x16x16xbf16>
    %67 = arith.truncf %47 : vector<64x128xf32> to vector<64x128xbf16>
    %68 = vector.extract_strided_slice %67 {offsets = [0, 0], sizes = [64, 16], strides = [1, 1]} : vector<64x128xbf16> to vector<64x16xbf16>
    %69 = vector.extract_strided_slice %67 {offsets = [0, 16], sizes = [64, 16], strides = [1, 1]} : vector<64x128xbf16> to vector<64x16xbf16>
    %70 = vector.extract_strided_slice %67 {offsets = [0, 32], sizes = [64, 16], strides = [1, 1]} : vector<64x128xbf16> to vector<64x16xbf16>
    %71 = vector.extract_strided_slice %67 {offsets = [0, 48], sizes = [64, 16], strides = [1, 1]} : vector<64x128xbf16> to vector<64x16xbf16>
    %72 = vector.extract_strided_slice %67 {offsets = [0, 64], sizes = [64, 16], strides = [1, 1]} : vector<64x128xbf16> to vector<64x16xbf16>
    %73 = vector.extract_strided_slice %67 {offsets = [0, 80], sizes = [64, 16], strides = [1, 1]} : vector<64x128xbf16> to vector<64x16xbf16>
    %74 = vector.extract_strided_slice %67 {offsets = [0, 96], sizes = [64, 16], strides = [1, 1]} : vector<64x128xbf16> to vector<64x16xbf16>
    %75 = vector.extract_strided_slice %67 {offsets = [0, 112], sizes = [64, 16], strides = [1, 1]} : vector<64x128xbf16> to vector<64x16xbf16>
    %76 = vector.shape_cast %68 : vector<64x16xbf16> to vector<1x64x16xbf16>
    %77 = vector.shape_cast %69 : vector<64x16xbf16> to vector<1x64x16xbf16>
    %78 = vector.shape_cast %70 : vector<64x16xbf16> to vector<1x64x16xbf16>
    %79 = vector.shape_cast %71 : vector<64x16xbf16> to vector<1x64x16xbf16>
    %80 = vector.shape_cast %72 : vector<64x16xbf16> to vector<1x64x16xbf16>
    %81 = vector.shape_cast %73 : vector<64x16xbf16> to vector<1x64x16xbf16>
    %82 = vector.shape_cast %74 : vector<64x16xbf16> to vector<1x64x16xbf16>
    %83 = vector.shape_cast %75 : vector<64x16xbf16> to vector<1x64x16xbf16>
    %84 = tpu.concatenate %76, %77, %78, %79, %80, %81, %82, %83 in 0 : vector<1x64x16xbf16>, vector<1x64x16xbf16>, vector<1x64x16xbf16>, vector<1x64x16xbf16>, vector<1x64x16xbf16>, vector<1x64x16xbf16>, vector<1x64x16xbf16>, vector<1x64x16xbf16> -> vector<8x64x16xbf16>
    %85 = vector.shape_cast %84 : vector<8x64x16xbf16> to vector<32x16x16xbf16>
    %c0_21 = arith.constant 0 : index
    %c0_22 = arith.constant 0 : index
    %c0_23 = arith.constant 0 : index
    %86 = vector.load %arg23[%c0_21, %c0_22, %c0_23] : memref<32x8x16xbf16, #tpu.memory_space<vmem>>, vector<32x8x16xbf16>
    "tpu.trace_start"() <{level = 10 : i32, message = "bqd,bkd->bqk"}> : () -> ()
    %cst_24 = arith.constant dense<0.000000e+00> : vector<32x8x16xf32>
    %87 = tpu.matmul %86, %66, %cst_24 {dimension_numbers = #tpu.dot_dimension_numbers<[2], [2], [1], [1], [0, 0, 0, 1, 1, 1], [0], [0]>} : vector<32x8x16xbf16>, vector<32x16x16xbf16>, vector<32x8x16xf32> -> vector<32x8x16xf32>
    "tpu.trace_stop"() : () -> ()
    %c0_25 = arith.constant 0 : index
    %c0_26 = arith.constant 0 : index
    %c0_27 = arith.constant 0 : index
    %88 = vector.load %arg24[%c0_25, %c0_26, %c0_27] : memref<32x8x1xf32, #tpu.memory_space<vmem>>, vector<32x8x1xf32>
    %cst_28 = arith.constant dense<0xFF800000> : vector<32x8xf32>
    %89 = vector.multi_reduction <maximumf>, %87, %cst_28 [2] : vector<32x8x16xf32> to vector<32x8xf32>
    %90 = vector.shape_cast %89 : vector<32x8xf32> to vector<32x8x1xf32>
    %91 = arith.maximumf %88, %90 : vector<32x8x1xf32>
    %92 = arith.subf %88, %91 : vector<32x8x1xf32>
    %93 = math.exp %92 : vector<32x8x1xf32>
    %94 = vector.broadcast %91 : vector<32x8x1xf32> to vector<32x8x16xf32>
    %95 = arith.subf %87, %94 : vector<32x8x16xf32>
    %96 = math.exp %95 : vector<32x8x16xf32>
    %c0_29 = arith.constant 0 : index
    %c0_30 = arith.constant 0 : index
    %c0_31 = arith.constant 0 : index
    %97 = vector.load %arg25[%c0_29, %c0_30, %c0_31] : memref<32x8x1xf32, #tpu.memory_space<vmem>>, vector<32x8x1xf32>
    %98 = arith.mulf %93, %97 : vector<32x8x1xf32>
    %cst_32 = arith.constant dense<0.000000e+00> : vector<32x8xf32>
    %99 = vector.multi_reduction <add>, %96, %cst_32 [2] : vector<32x8x16xf32> to vector<32x8xf32>
    %100 = vector.shape_cast %99 : vector<32x8xf32> to vector<32x8x1xf32>
    %101 = arith.addf %98, %100 : vector<32x8x1xf32>
    %c0_33 = arith.constant 0 : index
    %c0_34 = arith.constant 0 : index
    %c0_35 = arith.constant 0 : index
    %102 = vector.load %arg25[%c0_33, %c0_34, %c0_35] : memref<32x8x1xf32, #tpu.memory_space<vmem>>, vector<32x8x1xf32>
    tpu.vector_store %arg25[%c0_33, %c0_34, %c0_35], %101 {strides = array<i32>} : memref<32x8x1xf32, #tpu.memory_space<vmem>>, vector<32x8x1xf32>,
    %c0_36 = arith.constant 0 : index
    %c0_37 = arith.constant 0 : index
    %c0_38 = arith.constant 0 : index
    %103 = vector.load %arg26[%c0_36, %c0_37, %c0_38] : memref<32x8x16xf32, #tpu.memory_space<vmem>>, vector<32x8x16xf32>
    %104 = vector.broadcast %93 : vector<32x8x1xf32> to vector<32x8x16xf32>
    %105 = arith.mulf %104, %103 : vector<32x8x16xf32>
    %106 = arith.truncf %96 : vector<32x8x16xf32> to vector<32x8x16xbf16>
    "tpu.trace_start"() <{level = 10 : i32, message = "bqk,bkd->bqd"}> : () -> ()
    %cst_39 = arith.constant dense<0.000000e+00> : vector<32x8x16xf32>
    %107 = tpu.matmul %106, %85, %cst_39 {dimension_numbers = #tpu.dot_dimension_numbers<[2], [1], [1], [2], [0, 0, 0, 1, 1, 2], [0], [0]>} : vector<32x8x16xbf16>, vector<32x16x16xbf16>, vector<32x8x16xf32> -> vector<32x8x16xf32>
    "tpu.trace_stop"() : () -> ()
    %108 = arith.addf %105, %107 : vector<32x8x16xf32>
    %c0_40 = arith.constant 0 : index
    %c0_41 = arith.constant 0 : index
    %c0_42 = arith.constant 0 : index
    %109 = vector.load %arg26[%c0_40, %c0_41, %c0_42] : memref<32x8x16xf32, #tpu.memory_space<vmem>>, vector<32x8x16xf32>
    tpu.vector_store %arg26[%c0_40, %c0_41, %c0_42], %108 {strides = array<i32>} : memref<32x8x16xf32, #tpu.memory_space<vmem>>, vector<32x8x16xf32>,
    %c0_43 = arith.constant 0 : index
    %c0_44 = arith.constant 0 : index
    %c0_45 = arith.constant 0 : index
    %110 = vector.load %arg24[%c0_43, %c0_44, %c0_45] : memref<32x8x1xf32, #tpu.memory_space<vmem>>, vector<32x8x1xf32>
    tpu.vector_store %arg24[%c0_43, %c0_44, %c0_45], %91 {strides = array<i32>} : memref<32x8x1xf32, #tpu.memory_space<vmem>>, vector<32x8x1xf32>,
    %c1_i32 = arith.constant 1 : i32
    %111 = arith.cmpi eq, %arg1, %c1_i32 : i32
    %112 = arith.extui %111 : i1 to i32
    %c0_i32_46 = arith.constant 0 : i32
    %113 = arith.cmpi ne, %112, %c0_i32_46 : i32
    scf.if %113 {
      %c0_47 = arith.constant 0 : index
      %c0_48 = arith.constant 0 : index
      %c0_49 = arith.constant 0 : index
      %114 = vector.load %arg26[%c0_47, %c0_48, %c0_49] : memref<32x8x16xf32, #tpu.memory_space<vmem>>, vector<32x8x16xf32>
      %c0_50 = arith.constant 0 : index
      %c0_51 = arith.constant 0 : index
      %c0_52 = arith.constant 0 : index
      %115 = vector.load %arg25[%c0_50, %c0_51, %c0_52] : memref<32x8x1xf32, #tpu.memory_space<vmem>>, vector<32x8x1xf32>
      %116 = tpu.reciprocal %115 {approx = true} : vector<32x8x1xf32> -> vector<32x8x1xf32>
      %117 = vector.broadcast %116 : vector<32x8x1xf32> to vector<32x8x16xf32>
      %118 = arith.mulf %114, %117 : vector<32x8x16xf32>
      %119 = arith.truncf %118 : vector<32x8x16xf32> to vector<32x8x16xbf16>
      %120 = vector.shape_cast %119 : vector<32x8x16xbf16> to vector<8x32x16xbf16>
      %121 = vector.extract_strided_slice %120 {offsets = [0, 0, 0], sizes = [1, 32, 16], strides = [1, 1, 1]} : vector<8x32x16xbf16> to vector<1x32x16xbf16>
      %122 = vector.shape_cast %121 : vector<1x32x16xbf16> to vector<32x16xbf16>
      %123 = vector.extract_strided_slice %120 {offsets = [1, 0, 0], sizes = [1, 32, 16], strides = [1, 1, 1]} : vector<8x32x16xbf16> to vector<1x32x16xbf16>
      %124 = vector.shape_cast %123 : vector<1x32x16xbf16> to vector<32x16xbf16>
      %125 = vector.extract_strided_slice %120 {offsets = [2, 0, 0], sizes = [1, 32, 16], strides = [1, 1, 1]} : vector<8x32x16xbf16> to vector<1x32x16xbf16>
      %126 = vector.shape_cast %125 : vector<1x32x16xbf16> to vector<32x16xbf16>
      %127 = vector.extract_strided_slice %120 {offsets = [3, 0, 0], sizes = [1, 32, 16], strides = [1, 1, 1]} : vector<8x32x16xbf16> to vector<1x32x16xbf16>
      %128 = vector.shape_cast %127 : vector<1x32x16xbf16> to vector<32x16xbf16>
      %129 = vector.extract_strided_slice %120 {offsets = [4, 0, 0], sizes = [1, 32, 16], strides = [1, 1, 1]} : vector<8x32x16xbf16> to vector<1x32x16xbf16>
      %130 = vector.shape_cast %129 : vector<1x32x16xbf16> to vector<32x16xbf16>
      %131 = vector.extract_strided_slice %120 {offsets = [5, 0, 0], sizes = [1, 32, 16], strides = [1, 1, 1]} : vector<8x32x16xbf16> to vector<1x32x16xbf16>
      %132 = vector.shape_cast %131 : vector<1x32x16xbf16> to vector<32x16xbf16>
      %133 = vector.extract_strided_slice %120 {offsets = [6, 0, 0], sizes = [1, 32, 16], strides = [1, 1, 1]} : vector<8x32x16xbf16> to vector<1x32x16xbf16>
      %134 = vector.shape_cast %133 : vector<1x32x16xbf16> to vector<32x16xbf16>
      %135 = vector.extract_strided_slice %120 {offsets = [7, 0, 0], sizes = [1, 32, 16], strides = [1, 1, 1]} : vector<8x32x16xbf16> to vector<1x32x16xbf16>
      %136 = vector.shape_cast %135 : vector<1x32x16xbf16> to vector<32x16xbf16>
      %137 = tpu.concatenate %122, %124, %126, %128, %130, %132, %134, %136 in 1 : vector<32x16xbf16>, vector<32x16xbf16>, vector<32x16xbf16>, vector<32x16xbf16>, vector<32x16xbf16>, vector<32x16xbf16>, vector<32x16xbf16>, vector<32x16xbf16> -> vector<32x128xbf16>
      %c0_53 = arith.constant 0 : index
      %c0_54 = arith.constant 0 : index
      %138 = vector.load %arg14[%c0_53, %c0_54] : memref<128x128xbf16, #tpu.memory_space<vmem>>, vector<128x128xbf16>
      %cst_55 = arith.constant dense<0.000000e+00> : vector<32x128xf32>
      %139 = tpu.matmul %137, %138, %cst_55 {dimension_numbers = #tpu.dot_dimension_numbers<[1], [0], [0], [1], [0, 0, 1, 1], [], []>} : vector<32x128xbf16>, vector<128x128xbf16>, vector<32x128xf32> -> vector<32x128xf32>
      %c0_56 = arith.constant 0 : index
      %c0_57 = arith.constant 0 : index
      %140 = vector.load %arg15[%c0_56, %c0_57] : memref<1x128xf32, #tpu.memory_space<vmem>>, vector<1x128xf32>
      %141 = vector.shape_cast %140 : vector<1x128xf32> to vector<128xf32>
      %142 = vector.shape_cast %141 : vector<128xf32> to vector<1x128xf32>
      %143 = vector.broadcast %142 : vector<1x128xf32> to vector<32x128xf32>
      %144 = arith.addf %139, %143 : vector<32x128xf32>
      %c0_58 = arith.constant 0 : index
      %c0_59 = arith.constant 0 : index
      %c0_60 = arith.constant 0 : index
      %145 = vector.load %arg2[%c0_58, %c0_59, %c0_60] : memref<4x8x128xf32, #tpu.memory_space<vmem>>, vector<4x8x128xf32>
      %146 = vector.shape_cast %145 : vector<4x8x128xf32> to vector<32x128xf32>
      %147 = arith.addf %146, %144 : vector<32x128xf32>
      %c0_61 = arith.constant 0 : index
      %c0_62 = arith.constant 0 : index
      %148 = vector.load %arg16[%c0_61, %c0_62] : memref<1x128xf32, #tpu.memory_space<vmem>>, vector<1x128xf32>
      %149 = vector.shape_cast %148 : vector<1x128xf32> to vector<128xf32>
      %c0_63 = arith.constant 0 : index
      %c0_64 = arith.constant 0 : index
      %150 = vector.load %arg17[%c0_63, %c0_64] : memref<1x128xf32, #tpu.memory_space<vmem>>, vector<1x128xf32>
      %151 = vector.shape_cast %150 : vector<1x128xf32> to vector<128xf32>
      %cst_65 = arith.constant dense<0.000000e+00> : vector<32xf32>
      %152 = vector.multi_reduction <add>, %147, %cst_65 [1] : vector<32x128xf32> to vector<32xf32>
      %153 = vector.shape_cast %152 : vector<32xf32> to vector<32x1xf32>
      %cst_66 = arith.constant 1.280000e+02 : f32
      %154 = vector.broadcast %cst_66 : f32 to vector<32x1xf32>
      %155 = arith.divf %153, %154 : vector<32x1xf32>
      %156 = vector.broadcast %155 : vector<32x1xf32> to vector<32x128xf32>
      %157 = arith.subf %147, %156 : vector<32x128xf32>
      %158 = arith.mulf %157, %157 : vector<32x128xf32>
      %cst_67 = arith.constant dense<0.000000e+00> : vector<32xf32>
      %159 = vector.multi_reduction <add>, %158, %cst_67 [1] : vector<32x128xf32> to vector<32xf32>
      %160 = vector.shape_cast %159 : vector<32xf32> to vector<32x1xf32>
      %cst_68 = arith.constant 1.280000e+02 : f32
      %161 = vector.broadcast %cst_68 : f32 to vector<32x1xf32>
      %162 = arith.divf %160, %161 : vector<32x1xf32>
      %163 = vector.broadcast %155 : vector<32x1xf32> to vector<32x128xf32>
      %164 = arith.subf %147, %163 : vector<32x128xf32>
      %cst_69 = arith.constant 9.99999974E-6 : f32
      %165 = vector.broadcast %cst_69 : f32 to vector<32x1xf32>
      %166 = arith.addf %162, %165 : vector<32x1xf32>
      %167 = math.rsqrt %166 : vector<32x1xf32>
      %168 = vector.broadcast %167 : vector<32x1xf32> to vector<32x128xf32>
      %169 = arith.mulf %164, %168 : vector<32x128xf32>
      %170 = vector.shape_cast %149 : vector<128xf32> to vector<1x128xf32>
      %171 = vector.broadcast %170 : vector<1x128xf32> to vector<32x128xf32>
      %172 = arith.mulf %169, %171 : vector<32x128xf32>
      %173 = vector.shape_cast %151 : vector<128xf32> to vector<1x128xf32>
      %174 = vector.broadcast %173 : vector<1x128xf32> to vector<32x128xf32>
      %175 = arith.addf %172, %174 : vector<32x128xf32>
      %176 = arith.truncf %175 : vector<32x128xf32> to vector<32x128xbf16>
      %c0_70 = arith.constant 0 : index
      %c0_71 = arith.constant 0 : index
      %177 = vector.load %arg18[%c0_70, %c0_71] : memref<128x128xbf16, #tpu.memory_space<vmem>>, vector<128x128xbf16>
      %cst_72 = arith.constant dense<0.000000e+00> : vector<32x128xf32>
      %178 = tpu.matmul %176, %177, %cst_72 {dimension_numbers = #tpu.dot_dimension_numbers<[1], [0], [0], [1], [0, 0, 1, 1], [], []>} : vector<32x128xbf16>, vector<128x128xbf16>, vector<32x128xf32> -> vector<32x128xf32>
      %c0_73 = arith.constant 0 : index
      %c0_74 = arith.constant 0 : index
      %179 = vector.load %arg19[%c0_73, %c0_74] : memref<1x128xf32, #tpu.memory_space<vmem>>, vector<1x128xf32>
      %180 = vector.shape_cast %179 : vector<1x128xf32> to vector<128xf32>
      %181 = vector.shape_cast %180 : vector<128xf32> to vector<1x128xf32>
      %182 = vector.broadcast %181 : vector<1x128xf32> to vector<32x128xf32>
      %183 = arith.addf %178, %182 : vector<32x128xf32>
      %cst_75 = arith.constant 5.000000e-01 : f32
      %184 = vector.broadcast %cst_75 : f32 to vector<32x128xf32>
      %185 = arith.mulf %184, %183 : vector<32x128xf32>
      %cst_76 = arith.constant 0.707106769 : f32
      %186 = vector.broadcast %cst_76 : f32 to vector<32x128xf32>
      %187 = arith.mulf %183, %186 : vector<32x128xf32>
      %188 = math.erf %187 : vector<32x128xf32>
      %cst_77 = arith.constant 1.000000e+00 : f32
      %189 = vector.broadcast %cst_77 : f32 to vector<32x128xf32>
      %190 = arith.addf %189, %188 : vector<32x128xf32>
      %191 = arith.mulf %185, %190 : vector<32x128xf32>
      %192 = arith.truncf %191 : vector<32x128xf32> to vector<32x128xbf16>
      %c0_78 = arith.constant 0 : index
      %c0_79 = arith.constant 0 : index
      %193 = vector.load %arg20[%c0_78, %c0_79] : memref<128x128xbf16, #tpu.memory_space<vmem>>, vector<128x128xbf16>
      %cst_80 = arith.constant dense<0.000000e+00> : vector<32x128xf32>
      %194 = tpu.matmul %192, %193, %cst_80 {dimension_numbers = #tpu.dot_dimension_numbers<[1], [0], [0], [1], [0, 0, 1, 1], [], []>} : vector<32x128xbf16>, vector<128x128xbf16>, vector<32x128xf32> -> vector<32x128xf32>
      %c0_81 = arith.constant 0 : index
      %c0_82 = arith.constant 0 : index
      %195 = vector.load %arg21[%c0_81, %c0_82] : memref<1x128xf32, #tpu.memory_space<vmem>>, vector<1x128xf32>
      %196 = vector.shape_cast %195 : vector<1x128xf32> to vector<128xf32>
      %197 = vector.shape_cast %196 : vector<128xf32> to vector<1x128xf32>
      %198 = vector.broadcast %197 : vector<1x128xf32> to vector<32x128xf32>
      %199 = arith.addf %194, %198 : vector<32x128xf32>
      %200 = arith.addf %147, %199 : vector<32x128xf32>
      %201 = vector.shape_cast %200 : vector<32x128xf32> to vector<4x8x128xf32>
      %c0_83 = arith.constant 0 : index
      %c0_84 = arith.constant 0 : index
      %c0_85 = arith.constant 0 : index
      %202 = vector.load %arg22[%c0_83, %c0_84, %c0_85] : memref<4x8x128xf32, #tpu.memory_space<vmem>>, vector<4x8x128xf32>
      tpu.vector_store %arg22[%c0_83, %c0_84, %c0_85], %201 {strides = array<i32>} : memref<4x8x128xf32, #tpu.memory_space<vmem>>, vector<4x8x128xf32>,
    } else {
    }
    return
  }
  func.func @transform_0(%arg0: i32, %arg1: i32) -> (i32, i32, i32) {
    %c0_i32 = arith.constant 0 : i32
    %c0_i32_0 = arith.constant 0 : i32
    %c0_i32_1 = arith.constant 0 : i32
    return %arg0, %c0_i32, %c0_i32_0 : i32, i32, i32
  }
  func.func @transform_1(%arg0: i32, %arg1: i32) -> (i32, i32, i32) {
    %c0_i32 = arith.constant 0 : i32
    %c0_i32_0 = arith.constant 0 : i32
    return %arg0, %arg1, %c0_i32 : i32, i32, i32
  }
  func.func @transform_2(%arg0: i32, %arg1: i32) -> (i32, i32) {
    %c0_i32 = arith.constant 0 : i32
    %c0_i32_0 = arith.constant 0 : i32
    %c0_i32_1 = arith.constant 0 : i32
    return %c0_i32, %c0_i32_0 : i32, i32
  }
  func.func @transform_3(%arg0: i32, %arg1: i32) -> (i32, i32) {
    %c0_i32 = arith.constant 0 : i32
    %c0_i32_0 = arith.constant 0 : i32
    %c0_i32_1 = arith.constant 0 : i32
    return %c0_i32, %c0_i32_0 : i32, i32
  }
  func.func @transform_4(%arg0: i32, %arg1: i32) -> (i32, i32) {
    %c0_i32 = arith.constant 0 : i32
    %c0_i32_0 = arith.constant 0 : i32
    %c0_i32_1 = arith.constant 0 : i32
    return %c0_i32, %c0_i32_0 : i32, i32
  }
  func.func @transform_5(%arg0: i32, %arg1: i32) -> (i32, i32) {
    %c0_i32 = arith.constant 0 : i32
    %c0_i32_0 = arith.constant 0 : i32
    %c0_i32_1 = arith.constant 0 : i32
    return %c0_i32, %c0_i32_0 : i32, i32
  }
  func.func @transform_6(%arg0: i32, %arg1: i32) -> (i32, i32) {
    %c0_i32 = arith.constant 0 : i32
    %c0_i32_0 = arith.constant 0 : i32
    %c0_i32_1 = arith.constant 0 : i32
    return %c0_i32, %c0_i32_0 : i32, i32
  }
  func.func @transform_7(%arg0: i32, %arg1: i32) -> (i32, i32) {
    %c0_i32 = arith.constant 0 : i32
    %c0_i32_0 = arith.constant 0 : i32
    %c0_i32_1 = arith.constant 0 : i32
    return %c0_i32, %c0_i32_0 : i32, i32
  }
  func.func @transform_8(%arg0: i32, %arg1: i32) -> (i32, i32) {
    %c0_i32 = arith.constant 0 : i32
    %c0_i32_0 = arith.constant 0 : i32
    %c0_i32_1 = arith.constant 0 : i32
    return %c0_i32, %c0_i32_0 : i32, i32
  }
  func.func @transform_9(%arg0: i32, %arg1: i32) -> (i32, i32) {
    %c0_i32 = arith.constant 0 : i32
    %c0_i32_0 = arith.constant 0 : i32
    %c0_i32_1 = arith.constant 0 : i32
    return %c0_i32, %c0_i32_0 : i32, i32
  }
  func.func @transform_10(%arg0: i32, %arg1: i32) -> (i32, i32) {
    %c0_i32 = arith.constant 0 : i32
    %c0_i32_0 = arith.constant 0 : i32
    %c0_i32_1 = arith.constant 0 : i32
    return %c0_i32, %c0_i32_0 : i32, i32
  }
  func.func @transform_11(%arg0: i32, %arg1: i32) -> (i32, i32) {
    %c0_i32 = arith.constant 0 : i32
    %c0_i32_0 = arith.constant 0 : i32
    %c0_i32_1 = arith.constant 0 : i32
    return %c0_i32, %c0_i32_0 : i32, i32
  }
  func.func @transform_12(%arg0: i32, %arg1: i32) -> (i32, i32) {
    %c0_i32 = arith.constant 0 : i32
    %c0_i32_0 = arith.constant 0 : i32
    %c0_i32_1 = arith.constant 0 : i32
    return %c0_i32, %c0_i32_0 : i32, i32
  }
  func.func @transform_13(%arg0: i32, %arg1: i32) -> (i32, i32) {
    %c0_i32 = arith.constant 0 : i32
    %c0_i32_0 = arith.constant 0 : i32
    %c0_i32_1 = arith.constant 0 : i32
    return %c0_i32, %c0_i32_0 : i32, i32
  }
  func.func @transform_14(%arg0: i32, %arg1: i32) -> (i32, i32) {
    %c0_i32 = arith.constant 0 : i32
    %c0_i32_0 = arith.constant 0 : i32
    %c0_i32_1 = arith.constant 0 : i32
    return %c0_i32, %c0_i32_0 : i32, i32
  }
  func.func @transform_15(%arg0: i32, %arg1: i32) -> (i32, i32) {
    %c0_i32 = arith.constant 0 : i32
    %c0_i32_0 = arith.constant 0 : i32
    %c0_i32_1 = arith.constant 0 : i32
    return %c0_i32, %c0_i32_0 : i32, i32
  }
  func.func @transform_16(%arg0: i32, %arg1: i32) -> (i32, i32) {
    %c0_i32 = arith.constant 0 : i32
    %c0_i32_0 = arith.constant 0 : i32
    %c0_i32_1 = arith.constant 0 : i32
    return %c0_i32, %c0_i32_0 : i32, i32
  }
  func.func @transform_17(%arg0: i32, %arg1: i32) -> (i32, i32) {
    %c0_i32 = arith.constant 0 : i32
    %c0_i32_0 = arith.constant 0 : i32
    %c0_i32_1 = arith.constant 0 : i32
    return %c0_i32, %c0_i32_0 : i32, i32
  }
  func.func @transform_18(%arg0: i32, %arg1: i32) -> (i32, i32) {
    %c0_i32 = arith.constant 0 : i32
    %c0_i32_0 = arith.constant 0 : i32
    %c0_i32_1 = arith.constant 0 : i32
    return %c0_i32, %c0_i32_0 : i32, i32
  }
  func.func @transform_19(%arg0: i32, %arg1: i32) -> (i32, i32) {
    %c0_i32 = arith.constant 0 : i32
    %c0_i32_0 = arith.constant 0 : i32
    %c0_i32_1 = arith.constant 0 : i32
    return %c0_i32, %c0_i32_0 : i32, i32
  }
  func.func @transform_20(%arg0: i32, %arg1: i32) -> (i32, i32, i32) {
    %c0_i32 = arith.constant 0 : i32
    %c0_i32_0 = arith.constant 0 : i32
    %c0_i32_1 = arith.constant 0 : i32
    return %arg0, %c0_i32, %c0_i32_0 : i32, i32, i32
  }
}

</mosaic_0001>

<bundles_post_ra>
// kernel: tpu_custom_call.1
= control target key start
LH: loop header
LB: loop body
LE: loop exit
PB: predicated region body
PF: predicated region fallthrough
CT: control target
= control target key end

     0   :  { %s11322_s0 = inlined_call_operand.hbm [shape: f32[4,8,128], index: 0, kind: input, shape index: {}]   ;;  %s11323_s1 = inlined_call_operand.hbm [shape: f32[4,32,128], index: 1, kind: input, shape index: {}]   ;;  %s11324_s2 = inlined_call_operand.vmem [shape: f32[1,128], index: 2, kind: input, shape index: {}]   ;;  %s11325_s3 = inlined_call_operand.vmem [shape: f32[1,128], index: 3, kind: input, shape index: {}]   ;;  %s11326_s4 = inlined_call_operand.vmem [shape: f32[1,128], index: 4, kind: input, shape index: {}]   ;;  %s11327_s5 = inlined_call_operand.vmem [shape: f32[1,128], index: 5, kind: input, shape index: {}]   ;;  %s11328_s6 = inlined_call_operand.hbm [shape: bf16[128,128], index: 6, kind: input, shape index: {}]   ;;  %s11329_s7 = inlined_call_operand.hbm [shape: f32[1,128], index: 7, kind: input, shape index: {}]   ;;  %s11330_s8 = inlined_call_operand.hbm [shape: bf16[128,128], index: 8, kind: input, shape index: {}]   ;;  %s11331_s9 = inlined_call_operand.hbm [shape: f32[1,128], index: 9, kind: input, shape index: {}]   ;;  %s11332_s10 = inlined_call_operand.hbm [shape: bf16[128,128], index: 10, kind: input, shape index: {}]   ;;  %s11333_s11 = inlined_call_operand.hbm [shape: f32[1,128], index: 11, kind: input, shape index: {}]   ;;  %s11334_s12 = inlined_call_operand.hbm [shape: bf16[128,128], index: 12, kind: input, shape index: {}]   ;;  %s11335_s13 = inlined_call_operand.hbm [shape: f32[1,128], index: 13, kind: input, shape index: {}]   ;;  %s11336_s14 = inlined_call_operand.hbm [shape: f32[1,128], index: 14, kind: input, shape index: {}]   ;;  %s11337_s15 = inlined_call_operand.hbm [shape: f32[1,128], index: 15, kind: input, shape index: {}]   ;;  %s11338_s16 = inlined_call_operand.hbm [shape: bf16[128,128], index: 16, kind: input, shape index: {}]   ;;  %s11339_s17 = inlined_call_operand.hbm [shape: f32[1,128], index: 17, kind: input, shape index: {}]   ;;  %s11340_s18 = inlined_call_operand.vmem [shape: bf16[128,128], index: 18, kind: input, shape index: {}]   ;;  %s11341_s19 = inlined_call_operand.vmem [shape: f32[1,128], index: 19, kind: input, shape index: {}]   ;;  %s11342_s20 = inlined_call_operand.hbm [shape: f32[4,8,128], index: 20, kind: output, shape index: {}]  }
   0x1   :  { %11412 = sst [smem:[#allocation94_spill]] %s11322_s0 }
   0x2   :  { %11413 = sst [smem:[#allocation95_spill]] %s11323_s1 }
   0x3   :  { %11414 = sst [smem:[#allocation96_spill]] %s11324_s2 }
   0x4   :  { %11415 = sst [smem:[#allocation97_spill]] %s11325_s3 }
   0x5   :  { %11416 = sst [smem:[#allocation98_spill]] %s11326_s4 }
   0x6   :  { %11417 = sst [smem:[#allocation99_spill]] %s11327_s5 }
   0x7   :  { %11418 = sst [smem:[#allocation100_spill]] %s11329_s7 }
   0x8   :  { %11419 = sst [smem:[#allocation101_spill]] %s11331_s9 }
   0x9   :  { %11420 = sst [smem:[#allocation102_spill]] %s11333_s11 }
   0xa   :  { %11421 = sst [smem:[#allocation103_spill]] %s11340_s18 }
   0xb   :  { %11422 = sst [smem:[#allocation104_spill]] %s11341_s19 }
   0xc   :  { %11423 = sst [smem:[#allocation105_spill]] %s11342_s20 }
   0xd   :  { %25 = vsyncpa [#allocation7], 0 }
   0xe   :  { %26 = vsyncpa [#allocation10], 0 }
   0xf   :  { %28 = vsyncpa [#allocation10 + $0x1], 0 }
  0x10   :  { %29 = vsyncpa [#allocation13], 0 }
  0x11   :  { %30 = vsyncpa [#allocation16], 0 }
  0x12   :  { %31 = vsyncpa [#allocation19], 0 }
  0x13   :  { %32 = vsyncpa [#allocation22], 0 }
  0x14   :  { %33 = vsyncpa [#allocation25], 0 }
  0x15   :  { %34 = vsyncpa [#allocation28], 0 }
  0x16   :  { %35 = vsyncpa [#allocation8], 0  ;;  %s9089_s1 = smov 0   ;;  %s9091_s22 = smov 0  }
  0x17   :  { %s9093_s23 = smov 0   ;;  %s9095_s24 = smov 0  }
  0x18   :  { %s9097_s2 = smov 0   ;;  %s9099_s25 = smov 0  }
  0x19 LB: > { %11424 = sst [smem:[#allocation43_spill]] %s8913_s22  ;;  %s9118_s3 = sadd.s32 4294967295, %s8929_s25   ;;  %s8929_s25 = sphi %s9099_s25, %s41_s25   ;;  %s8925_s2 = sphi %s9097_s2, %s11615_s2   ;;  %s8921_s24 = sphi %s9095_s24, %s11614_s24   ;;  %s8917_s23 = sphi %s9093_s23, %s11613_s23   ;;  %s8913_s22 = sphi %s9091_s22, %s11612_s22   ;;  %s8909_s1 = sphi %s9089_s1, %s11609_s1  }
  0x1a   : > { %11425 = sst [smem:[#allocation44_spill]] %s8921_s24  ;;  %s50_s26 = sadd.s32 1, %s8925_s2 }
  0x1b   : > { %11426 = sst [smem:[#allocation45_spill]] %s9118_s3  ;;  %p51_p0 = scmp.ge.s32.totalorder %s50_s26, 2 }
  0x1c   : > { %s88_s27 = sadd.s32 1, %s8917_s23  ;;  %p95_p1 = scmp.ne.s32.totalorder %s8917_s23, %s8913_s22 }
  0x1d   : > { %p96_p2 = scmp.eq.s32.totalorder %s8929_s25, 0  ;;  %s11617_s26 = smov (%p51_p0, %s50_s26), 0 }
  0x1e   : > { %11427 = sst [smem:[#allocation46_spill]] %s11617_s26  ;;  %p101_p4 = scmp.ne.s32.totalorder %s8913_s22, %s8909_s1 }
  0x1f   : > { %p9127_p3 = por %p96_p2, %p95_p1  ;;  %s84_s4 = ssub.s32 %s8925_s2, %s11617_s26 }
  0x20   : > { %p11349_p5 = scmp.eq.s32.totalorder %s9118_s3, 0  ;;  %p86_p6 = scmp.eq.s32.totalorder %s84_s4, 0 }
  0x21   : > { %s11428_s28 = scalar_select %p9127_p3, 1, 0 }
  0x22   : > { %p6997_p7 = scmp.ge.s32.totalorder %s8929_s25, 1  ;;  %p9138_p8 = por %p11349_p5, %p101_p4 }
  0x23   : > { %p516_p9 = scmp.lt.s32.totalorder %s8929_s25, 3  ;;  %s8931_s21 = smov [#allocation12]  }
  0x24   : > { %s11429_s29 = scalar_select %p9138_p8, 1, 0 }
  0x25   : > { %s9144_s30 = scalar_select %p86_p6, %s8917_s23, %s88_s27  }
  0x26   : > { %11430 = sst [smem:[#allocation47_spill]] %s11429_s29  ;;  %p9146_p10 = pnand %p6997_p7, %p516_p9 }
  0x27   : > { %11431 = sst [smem:[#allocation48_spill]] %s9144_s30  ;;  %s570_s1 = sshll.u32 %s8931_s21, 4  ;;  %s571_s1 = int_to_ptr.vmem [resolvable:$true] %s570_s1 }
  0x28   : > { %s11432_s0 = scalar_select %p9146_p10, 1, 0 }
  0x29   : > { %p8000_p11 = pneg %p9146_p10  ;;  %s8932_s4 = smov [#allocation15]  }
  0x2a   : > { %s594_s26 = sshll.u32 %s8932_s4, 4  ;;  %s8933_s27 = smov [#allocation18]   ;;  %s9158_s26 = int_to_ptr.vmem [resolvable:$true] %s594_s26 }
  0x2b   : > { %p9154_p12 = pnand %p8000_p11, %p11349_p5  ;;  %s9160_s30 = sshll.u32 %s8933_s27, 4  ;;  %s619_s30 = int_to_ptr.vmem [resolvable:$true] %s9160_s30 }
  0x2c   : > { %s11434_s7 = sld [smem:[#allocation100_spill]] }
  0x2d   : > { %p9170_p0 = pneg %p9154_p12 }
  0x32   : > { %s8453_s5 = scalar_lea.hbm %s11434_s7, 16 }
  0x33   : > { %p8454_p13 = scmp.ne.s32.totalorder %s11434_s7, %s8453_s5  ;;  %p8460_p4 = scmp.lt.u32.totalorder %s8453_s5, %s11434_s7 }
  0x35   : > { %p8456_p1 = pnand %p9170_p0, %p8454_p13 }
  0x37   : > { %p8457_p2 = pneg %p8456_p1 }
  0x39   : > { %p8462_p6 = pnand %p8460_p4, %p8457_p2 }
  0x3b   : > { %8465 = shalt.err (!%p8462_p6)
}
  0x3c   : > { %s8466_s18 = scalar_lea.vmem %s571_s1, 16  ;;  %s8473_s19 = scalar_lea.vmem %s571_s1, 32 }
  0x3d   : > { %p8467_p7 = scmp.ne.s32.totalorder %s571_s1, %s8466_s18  ;;  %p8474_p5 = scmp.lt.s32.totalorder %s571_s1, %s571_s1 }
  0x3e   : > { %p8475_p8 = scmp.lt.s32.totalorder %s8473_s19, %s8466_s18 }
  0x3f   : > { %p8469_p9 = pnand %p8467_p7, %p9170_p0 }
  0x40   : > { %p8476_p10 = por %p8475_p8, %p8474_p5 }
  0x41   : > { %p8470_p11 = pneg %p8469_p9 }
  0x43   : > { %p8477_p3 = pnand %p8476_p10, %p8470_p11 }
  0x45   : > { %8480 = shalt.err (!%p8477_p3)
}
  0x46   : > { %8009 = dma.hbm_to_vmem [thread:$0]  (!%p9154_p12), %s11434_s7, 16, %s571_s1, [#allocation13]  }
  0x47   : > { %s11436_s9 = sld [smem:[#allocation101_spill]] }
  0x4d   : > { %s8481_s27 = scalar_lea.hbm %s11436_s9, 16 }
  0x4e   : > { %p8482_p13 = scmp.ne.s32.totalorder %s11436_s9, %s8481_s27  ;;  %p8488_p3 = scmp.lt.u32.totalorder %s8481_s27, %s11436_s9 }
  0x50   : > { %p8484_p1 = pnand %p8482_p13, %p9170_p0 }
  0x52   : > { %p8485_p5 = pneg %p8484_p1 }
  0x54   : > { %p8490_p8 = pnand %p8488_p3, %p8485_p5 }
  0x56   : > { %8493 = shalt.err (!%p8490_p8)
}
  0x57   : > { %s8494_s1 = scalar_lea.vmem %s9158_s26, 16  ;;  %s8501_s22 = scalar_lea.vmem %s9158_s26, 32 }
  0x58   : > { %p8495_p10 = scmp.ne.s32.totalorder %s9158_s26, %s8494_s1  ;;  %p8502_p6 = scmp.lt.s32.totalorder %s9158_s26, %s9158_s26 }
  0x59   : > { %p8503_p7 = scmp.lt.s32.totalorder %s8501_s22, %s8494_s1 }
  0x5a   : > { %p8497_p2 = pnand %p8495_p10, %p9170_p0 }
  0x5b   : > { %p8504_p9 = por %p8503_p7, %p8502_p6 }
  0x5c   : > { %p8498_p4 = pneg %p8497_p2 }
  0x5e   : > { %p8505_p11 = pnand %p8504_p9, %p8498_p4 }
  0x60   : > { %8508 = shalt.err (!%p8505_p11)
}
  0x61   : > { %8015 = dma.hbm_to_vmem [thread:$0]  (!%p9154_p12), %s11436_s9, 16, %s9158_s26, [#allocation16]  }
  0x62   : > { %s8934_s21 = smov [#allocation21]   ;;  %s11437_s11 = sld [smem:[#allocation102_spill]] }
  0x63   : > { %s642_s5 = sshll.u32 %s8934_s21, 4  ;;  %s643_s5 = int_to_ptr.vmem [resolvable:$true] %s642_s5 }
  0x68   : > { %s8509_s18 = scalar_lea.hbm %s11437_s11, 16 }
  0x69   : > { %p8510_p13 = scmp.ne.s32.totalorder %s11437_s11, %s8509_s18  ;;  %p8516_p3 = scmp.lt.u32.totalorder %s8509_s18, %s11437_s11 }
  0x6b   : > { %p8512_p1 = pnand %p8510_p13, %p9170_p0 }
  0x6d   : > { %p8513_p5 = pneg %p8512_p1 }
  0x6f   : > { %p8518_p8 = pnand %p8516_p3, %p8513_p5 }
  0x71   : > { %8521 = shalt.err (!%p8518_p8)
}
  0x72   : > { %s8522_s26 = scalar_lea.vmem %s619_s30, 16  ;;  %s8529_s3 = scalar_lea.vmem %s619_s30, 32 }
  0x73   : > { %p8523_p10 = scmp.ne.s32.totalorder %s619_s30, %s8522_s26  ;;  %p8530_p6 = scmp.lt.s32.totalorder %s619_s30, %s619_s30 }
  0x74   : > { %p8531_p7 = scmp.lt.s32.totalorder %s8529_s3, %s8522_s26 }
  0x75   : > { %p8525_p2 = pnand %p8523_p10, %p9170_p0 }
  0x76   : > { %p8532_p9 = por %p8531_p7, %p8530_p6 }
  0x77   : > { %p8526_p4 = pneg %p8525_p2 }
  0x79   : > { %p8533_p11 = pnand %p8532_p9, %p8526_p4 }
  0x7b   : > { %8536 = shalt.err (!%p8533_p11)
}
  0x7c   : > { %8021 = dma.hbm_to_vmem [thread:$0]  (!%p9154_p12), %s11437_s11, 16, %s619_s30, [#allocation19]  }
  0x7d   : > { %s8537_s27 = scalar_lea.hbm %s11335_s13, 16 }
  0x7e   : > { %p8538_p13 = scmp.ne.s32.totalorder %s11335_s13, %s8537_s27  ;;  %p8544_p3 = scmp.lt.u32.totalorder %s8537_s27, %s11335_s13 }
  0x80   : > { %p8540_p1 = pnand %p8538_p13, %p9170_p0 }
  0x82   : > { %p8541_p5 = pneg %p8540_p1 }
  0x84   : > { %p8546_p8 = pnand %p8544_p3, %p8541_p5 }
  0x86   : > { %8549 = shalt.err (!%p8546_p8)
}
  0x87   : > { %s8550_s26 = scalar_lea.vmem %s643_s5, 16  ;;  %s8557_s30 = scalar_lea.vmem %s643_s5, 32 }
  0x88   : > { %p8551_p10 = scmp.ne.s32.totalorder %s643_s5, %s8550_s26  ;;  %p8558_p6 = scmp.lt.s32.totalorder %s643_s5, %s643_s5 }
  0x89   : > { %p8559_p7 = scmp.lt.s32.totalorder %s8557_s30, %s8550_s26 }
  0x8a   : > { %p8553_p2 = pnand %p8551_p10, %p9170_p0 }
  0x8b   : > { %p8560_p9 = por %p8559_p7, %p8558_p6 }
  0x8c   : > { %p8554_p4 = pneg %p8553_p2 }
  0x8e   : > { %p8561_p11 = pnand %p8560_p9, %p8554_p4 }
  0x90   : > { %8564 = shalt.err (!%p8561_p11)
}
  0x91   : > { %8027 = dma.hbm_to_vmem [thread:$0]  (!%p9154_p12), %s11335_s13, 16, %s643_s5, [#allocation22]  }
  0x92   : > { %s8935_s21 = smov [#allocation24]   ;;  %s8565_s18 = scalar_lea.hbm %s11337_s15, 16 }
  0x93   : > { %s664_s7 = sshll.u32 %s8935_s21, 4  ;;  %p8566_p13 = scmp.ne.s32.totalorder %s11337_s15, %s8565_s18  ;;  %s665_s7 = int_to_ptr.vmem [resolvable:$true] %s664_s7 }
  0x94   : > { %p8572_p3 = scmp.lt.u32.totalorder %s8565_s18, %s11337_s15 }
  0x95   : > { %p8568_p1 = pnand %p8566_p13, %p9170_p0 }
  0x97   : > { %p8569_p5 = pneg %p8568_p1 }
  0x99   : > { %p8574_p8 = pnand %p8572_p3, %p8569_p5 }
  0x9b   : > { %8577 = shalt.err (!%p8574_p8)
}
  0x9c   : > { %s8578_s5 = scalar_lea.vmem %s665_s7, 16  ;;  %s8585_s30 = scalar_lea.vmem %s665_s7, 32 }
  0x9d   : > { %p8579_p10 = scmp.ne.s32.totalorder %s665_s7, %s8578_s5  ;;  %p8586_p6 = scmp.lt.s32.totalorder %s665_s7, %s665_s7 }
  0x9e   : > { %p8587_p7 = scmp.lt.s32.totalorder %s8585_s30, %s8578_s5 }
  0x9f   : > { %p8581_p2 = pnand %p8579_p10, %p9170_p0 }
  0xa0   : > { %p8588_p9 = por %p8587_p7, %p8586_p6 }
  0xa1   : > { %p8582_p4 = pneg %p8581_p2 }
  0xa3   : > { %p8589_p11 = pnand %p8588_p9, %p8582_p4 }
  0xa5   : > { %8592 = shalt.err (!%p8589_p11)
}
  0xa6   : > { %8033 = dma.hbm_to_vmem [thread:$0]  (!%p9154_p12), %s11337_s15, 16, %s665_s7, [#allocation25]  }
  0xa7   : > { %s8936_s21 = smov [#allocation6]   ;;  %s11438_s19 = sld [smem:[#allocation94_spill]] }
  0xa8   : > { %s531_s29 = sshll.u32 %s8936_s21, 4  ;;  %s532_s29 = int_to_ptr.vmem [resolvable:$true] %s531_s29 }
  0xad   : > { %s8593_s1 = scalar_lea.hbm %s11438_s19, 512 }
  0xae   : > { %p8594_p13 = scmp.ne.s32.totalorder %s11438_s19, %s8593_s1  ;;  %p8600_p3 = scmp.lt.u32.totalorder %s8593_s1, %s11438_s19 }
  0xb0   : > { %p8596_p1 = pnand %p8594_p13, %p9170_p0 }
  0xb2   : > { %p8597_p5 = pneg %p8596_p1 }
  0xb4   : > { %p8602_p8 = pnand %p8600_p3, %p8597_p5 }
  0xb6   : > { %8605 = shalt.err (!%p8602_p8)
}
  0xb7   : > { %s8606_s7 = scalar_lea.vmem %s532_s29, 512  ;;  %p8614_p6 = scmp.lt.s32.totalorder %s532_s29, %s532_s29 }
  0xb8   : > { %p8607_p10 = scmp.ne.s32.totalorder %s532_s29, %s8606_s7  ;;  %p8615_p7 = scmp.lt.s32.totalorder %s8606_s7, %s8606_s7 }
  0xba   : > { %p8609_p2 = pnand %p8607_p10, %p9170_p0  ;;  %p8616_p9 = por %p8615_p7, %p8614_p6 }
  0xbc   : > { %p8610_p4 = pneg %p8609_p2 }
  0xbe   : > { %p8617_p11 = pnand %p8616_p9, %p8610_p4 }
  0xc0   : > { %8620 = shalt.err (!%p8617_p11)
}
  0xc1   : > { %s8937_s3 = smov 128   ;;  %s8938_s24 = smov 8  }
  0xc2   : > { %8003 = dma.hbm_to_vmem [thread:$0]  (!%p9154_p12), %s11438_s19, 512, %s532_s29, [#allocation7], %s8937_s3, %s8937_s3, %s8938_s24  }
  0xc3   : > { %s8939_s18 = smov [#allocation11]   ;;  %s8621_s5 = scalar_lea.hbm %s11328_s6, 1024 }
  0xc4   : > { %s556_s1 = sshll.u32 %s8939_s18, 4  ;;  %p8622_p13 = scmp.ne.s32.totalorder %s11328_s6, %s8621_s5  ;;  %s557_s1 = int_to_ptr.vmem [resolvable:$true] %s556_s1 }
  0xc5   : > { %p8628_p3 = scmp.lt.u32.totalorder %s8621_s5, %s11328_s6 }
  0xc6   : > { %p8624_p1 = pnand %p8622_p13, %p9170_p0 }
  0xc8   : > { %p8625_p5 = pneg %p8624_p1 }
  0xca   : > { %p8630_p8 = pnand %p8628_p3, %p8625_p5 }
  0xcc   : > { %8633 = shalt.err (!%p8630_p8)
}
  0xcd   : > { %s8634_s29 = scalar_lea.vmem %s557_s1, 1024  ;;  %p8642_p6 = scmp.lt.s32.totalorder %s557_s1, %s557_s1 }
  0xce   : > { %p8635_p10 = scmp.ne.s32.totalorder %s557_s1, %s8634_s29  ;;  %p8643_p7 = scmp.lt.s32.totalorder %s8634_s29, %s8634_s29 }
  0xd0   : > { %p8637_p2 = pnand %p8635_p10, %p9170_p0  ;;  %p8644_p9 = por %p8643_p7, %p8642_p6 }
  0xd2   : > { %p8638_p4 = pneg %p8637_p2 }
  0xd4   : > { %p8645_p11 = pnand %p8644_p9, %p8638_p4 }
  0xd6   : > { %8648 = shalt.err (!%p8645_p11)
}
  0xd7   : > { %s8940_s3 = smov 64   ;;  %s8941_s24 = smov 4  }
  0xd8   : > { %8006 = dma.hbm_to_vmem [thread:$0]  (!%p9154_p12), %s11328_s6, 1024, %s557_s1, [#allocation10], %s8940_s3, %s8940_s3, %s8941_s24  }
  0xd9   : > { %s8942_s21 = smov [#allocation14]   ;;  %s8943_s18 = smov [#allocation17]  }
  0xda   : > { %s580_s27 = sshll.u32 %s8942_s21, 4  ;;  %s604_s22 = sshll.u32 %s8943_s18, 4  ;;  %s581_s27 = int_to_ptr.vmem [resolvable:$true] %s580_s27  ;;  %s9304_s22 = int_to_ptr.vmem [resolvable:$true] %s604_s22 }
  0xdb   : > { %s8649_s30 = scalar_lea.hbm %s11330_s8, 1024 }
  0xdc   : > { %p8650_p13 = scmp.ne.s32.totalorder %s11330_s8, %s8649_s30  ;;  %p8656_p3 = scmp.lt.u32.totalorder %s8649_s30, %s11330_s8 }
  0xde   : > { %p8652_p1 = pnand %p8650_p13, %p9170_p0 }
  0xe0   : > { %p8653_p5 = pneg %p8652_p1 }
  0xe2   : > { %p8658_p8 = pnand %p8656_p3, %p8653_p5 }
  0xe4   : > { %8661 = shalt.err (!%p8658_p8)
}
  0xe5   : > { %s8662_s11 = scalar_lea.vmem %s581_s27, 1024  ;;  %p8670_p6 = scmp.lt.s32.totalorder %s581_s27, %s581_s27 }
  0xe6   : > { %p8663_p10 = scmp.ne.s32.totalorder %s581_s27, %s8662_s11  ;;  %p8671_p7 = scmp.lt.s32.totalorder %s8662_s11, %s8662_s11 }
  0xe8   : > { %p8665_p2 = pnand %p8663_p10, %p9170_p0  ;;  %p8672_p9 = por %p8671_p7, %p8670_p6 }
  0xea   : > { %p8666_p4 = pneg %p8665_p2 }
  0xec   : > { %p8673_p11 = pnand %p8672_p9, %p8666_p4 }
  0xee   : > { %8676 = shalt.err (!%p8673_p11)
}
  0xef   : > { %8012 = dma.hbm_to_vmem [thread:$0]  (!%p9154_p12), %s11330_s8, 1024, %s581_s27, [#allocation13], %s8940_s3, %s8940_s3, %s8941_s24  }
  0xf0   : > { %s8677_s30 = scalar_lea.hbm %s11332_s10, 1024 }
  0xf1   : > { %p8678_p13 = scmp.ne.s32.totalorder %s11332_s10, %s8677_s30  ;;  %p8684_p3 = scmp.lt.u32.totalorder %s8677_s30, %s11332_s10 }
  0xf3   : > { %p8680_p1 = pnand %p8678_p13, %p9170_p0 }
  0xf5   : > { %p8681_p5 = pneg %p8680_p1 }
  0xf7   : > { %p8686_p8 = pnand %p8684_p3, %p8681_p5 }
  0xf9   : > { %8689 = shalt.err (!%p8686_p8)
}
  0xfa   : > { %s8690_s27 = scalar_lea.vmem %s9304_s22, 1024  ;;  %p8698_p6 = scmp.lt.s32.totalorder %s9304_s22, %s9304_s22 }
  0xfb   : > { %p8691_p10 = scmp.ne.s32.totalorder %s9304_s22, %s8690_s27  ;;  %p8699_p7 = scmp.lt.s32.totalorder %s8690_s27, %s8690_s27 }
  0xfd   : > { %p8693_p2 = pnand %p8691_p10, %p9170_p0  ;;  %p8700_p9 = por %p8699_p7, %p8698_p6 }
  0xff   : > { %p8694_p4 = pneg %p8693_p2 }
 0x101   : > { %p8701_p11 = pnand %p8700_p9, %p8694_p4 }
 0x103   : > { %8704 = shalt.err (!%p8701_p11)
}
 0x104   : > { %8018 = dma.hbm_to_vmem [thread:$0]  (!%p9154_p12), %s11332_s10, 1024, %s9304_s22, [#allocation16], %s8940_s3, %s8940_s3, %s8941_s24  }
 0x105   : > { %s8944_s18 = smov [#allocation20]   ;;  %s8945_s5 = smov [#allocation23]  }
 0x106   : > { %s628_s26 = sshll.u32 %s8944_s18, 4  ;;  %s653_s30 = sshll.u32 %s8945_s5, 4  ;;  %s629_s26 = int_to_ptr.vmem [resolvable:$true] %s628_s26  ;;  %s9353_s30 = int_to_ptr.vmem [resolvable:$true] %s653_s30 }
 0x107   : > { %s8705_s9 = scalar_lea.hbm %s11334_s12, 1024 }
 0x108   : > { %p8706_p13 = scmp.ne.s32.totalorder %s11334_s12, %s8705_s9  ;;  %p8712_p3 = scmp.lt.u32.totalorder %s8705_s9, %s11334_s12 }
 0x10a   : > { %p8708_p1 = pnand %p8706_p13, %p9170_p0 }
 0x10c   : > { %p8709_p5 = pneg %p8708_p1 }
 0x10e   : > { %p8714_p8 = pnand %p8712_p3, %p8709_p5 }
 0x110   : > { %8717 = shalt.err (!%p8714_p8)
}
 0x111   : > { %s8718_s21 = scalar_lea.vmem %s629_s26, 1024  ;;  %p8726_p6 = scmp.lt.s32.totalorder %s629_s26, %s629_s26 }
 0x112   : > { %p8719_p10 = scmp.ne.s32.totalorder %s629_s26, %s8718_s21  ;;  %p8727_p7 = scmp.lt.s32.totalorder %s8718_s21, %s8718_s21 }
 0x114   : > { %p8721_p2 = pnand %p8719_p10, %p9170_p0  ;;  %p8728_p9 = por %p8727_p7, %p8726_p6 }
 0x116   : > { %p8722_p4 = pneg %p8721_p2 }
 0x118   : > { %p8729_p11 = pnand %p8728_p9, %p8722_p4 }
 0x11a   : > { %8732 = shalt.err (!%p8729_p11)
}
 0x11b   : > { %8024 = dma.hbm_to_vmem [thread:$0]  (!%p9154_p12), %s11334_s12, 1024, %s629_s26, [#allocation19], %s8940_s3, %s8940_s3, %s8941_s24  }
 0x11c   : > { %s8733_s9 = scalar_lea.hbm %s11336_s14, 16 }
 0x11d   : > { %p8734_p13 = scmp.ne.s32.totalorder %s11336_s14, %s8733_s9  ;;  %p8740_p3 = scmp.lt.u32.totalorder %s8733_s9, %s11336_s14 }
 0x11f   : > { %p8736_p1 = pnand %p8734_p13, %p9170_p0 }
 0x121   : > { %p8737_p5 = pneg %p8736_p1 }
 0x123   : > { %p8742_p8 = pnand %p8740_p3, %p8737_p5 }
 0x125   : > { %8745 = shalt.err (!%p8742_p8)
}
 0x126   : > { %s8746_s26 = scalar_lea.vmem %s9353_s30, 16  ;;  %s8753_s21 = scalar_lea.vmem %s9353_s30, 32 }
 0x127   : > { %p8747_p10 = scmp.ne.s32.totalorder %s9353_s30, %s8746_s26  ;;  %p8754_p6 = scmp.lt.s32.totalorder %s9353_s30, %s9353_s30 }
 0x128   : > { %p8755_p7 = scmp.lt.s32.totalorder %s8753_s21, %s8746_s26 }
 0x129   : > { %p8749_p2 = pnand %p8747_p10, %p9170_p0 }
 0x12a   : > { %p8756_p9 = por %p8755_p7, %p8754_p6 }
 0x12b   : > { %p8750_p4 = pneg %p8749_p2 }
 0x12d   : > { %p8757_p11 = pnand %p8756_p9, %p8750_p4 }
 0x12f   : > { %8760 = shalt.err (!%p8757_p11)
}
 0x130   : > { %8030 = dma.hbm_to_vmem [thread:$0]  (!%p9154_p12), %s11336_s14, 16, %s9353_s30, [#allocation22]  }
 0x131   : > { %s8946_s7 = smov [#allocation26]   ;;  %s8947_s9 = smov [#allocation27]  }
 0x132   : > { %s674_s29 = sshll.u32 %s8946_s7, 4  ;;  %s688_s1 = sshll.u32 %s8947_s9, 4  ;;  %s675_s29 = int_to_ptr.vmem [resolvable:$true] %s674_s29  ;;  %s9400_s1 = int_to_ptr.vmem [resolvable:$true] %s688_s1 }
 0x133   : > { %s8761_s22 = scalar_lea.hbm %s11338_s16, 1024 }
 0x134   : > { %p8762_p13 = scmp.ne.s32.totalorder %s11338_s16, %s8761_s22  ;;  %p8768_p3 = scmp.lt.u32.totalorder %s8761_s22, %s11338_s16 }
 0x136   : > { %p8764_p1 = pnand %p8762_p13, %p9170_p0 }
 0x138   : > { %p8765_p5 = pneg %p8764_p1 }
 0x13a   : > { %p8770_p8 = pnand %p8768_p3, %p8765_p5 }
 0x13c   : > { %8773 = shalt.err (!%p8770_p8)
}
 0x13d   : > { %s8774_s5 = scalar_lea.vmem %s675_s29, 1024  ;;  %p8782_p6 = scmp.lt.s32.totalorder %s675_s29, %s675_s29 }
 0x13e   : > { %p8775_p10 = scmp.ne.s32.totalorder %s675_s29, %s8774_s5  ;;  %p8783_p7 = scmp.lt.s32.totalorder %s8774_s5, %s8774_s5 }
 0x140   : > { %p8777_p2 = pnand %p8775_p10, %p9170_p0  ;;  %p8784_p9 = por %p8783_p7, %p8782_p6 }
 0x142   : > { %p8778_p4 = pneg %p8777_p2 }
 0x144   : > { %p8785_p11 = pnand %p8784_p9, %p8778_p4 }
 0x146   : > { %8788 = shalt.err (!%p8785_p11)
}
 0x147   : > { %8036 = dma.hbm_to_vmem [thread:$0]  (!%p9154_p12), %s11338_s16, 1024, %s675_s29, [#allocation25], %s8940_s3, %s8940_s3, %s8941_s24  }
 0x148   : > { %s8789_s22 = scalar_lea.hbm %s11339_s17, 16 }
 0x149   : > { %p8790_p13 = scmp.ne.s32.totalorder %s11339_s17, %s8789_s22  ;;  %p8796_p3 = scmp.lt.u32.totalorder %s8789_s22, %s11339_s17 }
 0x14b   : > { %p8792_p1 = pnand %p8790_p13, %p9170_p0 }
 0x14d   : > { %p8793_p5 = pneg %p8792_p1 }
 0x14f   : > { %p8798_p8 = pnand %p8796_p3, %p8793_p5 }
 0x151   : > { %8801 = shalt.err (!%p8798_p8)
}
 0x152   : > { %s8802_s3 = scalar_lea.vmem %s9400_s1, 16  ;;  %s8809_s24 = scalar_lea.vmem %s9400_s1, 32 }
 0x153   : > { %p8803_p10 = scmp.ne.s32.totalorder %s9400_s1, %s8802_s3  ;;  %p8810_p6 = scmp.lt.s32.totalorder %s9400_s1, %s9400_s1 }
 0x154   : > { %p8811_p7 = scmp.lt.s32.totalorder %s8809_s24, %s8802_s3 }
 0x155   : > { %p8805_p2 = pnand %p8803_p10, %p9170_p0 }
 0x156   : > { %p8812_p9 = por %p8811_p7, %p8810_p6 }
 0x157   : > { %p8806_p4 = pneg %p8805_p2 }
 0x159   : > { %p8813_p11 = pnand %p8812_p9, %p8806_p4 }
 0x15b   : > { %8816 = shalt.err (!%p8813_p11)
}
 0x15c   : > { %8039 = dma.hbm_to_vmem [thread:$0]  (!%p9154_p12), %s11339_s17, 16, %s9400_s1, [#allocation28]  }
 0x15d   : > { %p7011_p13 = scmp.ge.s32.totalorder %s8929_s25, 2 }
 0x15f   : > { %701 = sbr.rel (%p7011_p13) target bundleno = 373 (0x175), region = 92 }
 0x166   : > { %s705_s4 = sand.u32 1, %s8929_s25   ;;  %s707_s7 = sand.u32 1, %s8917_s23  }
 0x167   : > { %s7012_s9 = sshll.u32 %s707_s7, 6  ;;  %s7210_s20 = sshll.u32 %s8925_s2, 8 }
 0x168   : > { %s11439_s22 = sld [smem:[#allocation95_spill]]  ;;  %p11440_p12 = scmp.ne.s32.totalorder %s11428_s28, 0 }
 0x169   : > { %s709_s21 = scalar_lea.vmem [#allocation9], %s7012_s9  ;;  %s8948_s3 = smov 512  }
 0x16a   : > { %s7961_s26 = scalar_select %p11440_p12, [#allocation0], [#allocation32] }
 0x16b   : > { %s731_s18 = sshll.u32 %s709_s21, 4  ;;  %7962 = sst [smem:[#allocation31]] (%p11440_p12), %s8948_s3  ;;  %s732_s18 = int_to_ptr.vmem [resolvable:$true] %s731_s18 }
 0x16c   : > { %s723_s30 = sld [smem:[%s7961_s26]]   ;;  %s8949_s24 = smov 256  }
 0x16d   : > { %7963 = sst [smem:[#allocation31 + $0x1]] (%p11440_p12), %s8949_s24  ;;  %s8950_s29 = smov 2  }
 0x16e   : > { %s718_s1 = scalar_lea.hbm %s11439_s22, %s7210_s20  ;;  %7964 = sst [smem:[#allocation31 + $0x2]] (%p11440_p12), %s8950_s29 }
 0x16f   : > { %s8951_s5 = smov 128   ;;  %s8952_s9 = smov 8  }
 0x170   : > { %7965 = sst [smem:[#allocation31 + $0x3]] (%p11440_p12), %s8951_s5  ;;  %s706_s27 = scalar_lea.sflag [#allocation10], %s705_s4 }
 0x171   : > { %7966 = sst [smem:[#allocation31 + $0x4]] (%p11440_p12), %s8951_s5  ;;  %s8953_s11 = smov [#allocation30]  }
 0x172   : > { %s7015_s7 = sshll.u32 %s723_s30, 26  ;;  %7967 = sst [smem:[#allocation31 + $0x5]] (%p11440_p12), %s8952_s9 }
 0x173   : > { %s7016_s20 = sadd.s32 134217728, %s7015_s7 }
 0x174   : > { %7968 = dma.general (%p11440_p12), %s718_s1, 1024, %s732_s18, %s706_s27, %s8953_s11, [#allocation31], %s7016_s20, 0  }
 0x175 PF: > { %p11441_p0 = scmp.ne.s32.totalorder %s11432_s0, 0 }
 0x177   : > { %756 = sbr.rel (%p11441_p0) target bundleno = 4050 (0xfd2), region = 100 }
 0x17e   : > { %s11442_s22 = sld [smem:[#allocation45_spill]] }
 0x184   : > { %p11443_p1 = scmp.eq.s32.totalorder %s11442_s22, 0 }
 0x186   : > { %8868 = dma.done.wait (%p11443_p1), [#allocation7], 512   ;;  %p11444_p5 = pmov %p11443_p1 }
 0x187   : > { %s11445_s26 = sld [smem:[#allocation43_spill]]  ;;  %s11446_s21 = sld [smem:[#allocation47_spill]] }
 0x188   : > { %8870 = vsyncadd (%p11444_p5), [#allocation7], 4294966784  ;;  %s762_s30 = sand.u32 1, %s11442_s22  }
 0x189   : > { %s763_s4 = scalar_lea.sflag [#allocation10], %s762_s30 }
 0x18d   : > { %s764_s3 = sand.u32 1, %s11445_s26   ;;  %p11447_p3 = scmp.ne.s32.totalorder %s11446_s21, 0 }
 0x18e   : > { %s7019_s24 = sshll.u32 %s764_s3, 6 }
 0x18f   : > { %s9478_s29 = scalar_lea.vmem [#allocation9], %s7019_s24 }
 0x190   : > { %8872 = dma.done.wait (%p11447_p3), %s763_s4, 1024  }
 0x191   : > { %8874 = vsyncadd (%p11447_p3), %s763_s4, 4294966272  ;;  %p11448_p8 = pmov %p11443_p1 }
 0x192   : > { %p11449_p10 = pmov %p11443_p1 }
 0x193   : > { %8876 = dma.done.wait (%p11448_p8), [#allocation10], 1024  }
 0x194   : > { %8878 = vsyncadd (%p11449_p10), [#allocation10], 4294966272  ;;  %p11450_p2 = pmov %p11443_p1 }
 0x195   : > { %p11451_p4 = pmov %p11443_p1 }
 0x196   : > { %8880 = dma.done.wait (%p11450_p2), [#allocation13], 1040  }
 0x197   : > { %8882 = vsyncadd (%p11451_p4), [#allocation13], 4294966256  ;;  %p11452_p6 = pmov %p11443_p1 }
 0x198   : > { %p11453_p7 = pmov %p11443_p1 }
 0x199   : > { %8884 = dma.done.wait (%p11452_p6), [#allocation16], 1040  }
 0x19a   : > { %8886 = vsyncadd (%p11453_p7), [#allocation16], 4294966256  ;;  %p11454_p9 = pmov %p11443_p1 }
 0x19b   : > { %p11455_p11 = pmov %p11443_p1 }
 0x19c   : > { %8888 = dma.done.wait (%p11454_p9), [#allocation19], 1040  }
 0x19d   : > { %8890 = vsyncadd (%p11455_p11), [#allocation19], 4294966256  ;;  %p11456_p13 = pmov %p11443_p1 }
 0x19e   : > { %p11457_p12 = pmov %p11443_p1 }
 0x19f   : > { %8892 = dma.done.wait (%p11456_p13), [#allocation22], 32  }
 0x1a0   : > { %8894 = vsyncadd (%p11457_p12), [#allocation22], 4294967264  ;;  %p11458_p0 = pmov %p11443_p1 }
 0x1a2   : > { %8896 = dma.done.wait (%p11458_p0), [#allocation25], 1040   ;;  %p11459_p1 = pmov %p11458_p0 }
 0x1a3   : > { %p11460_p5 = pmov %p11458_p0 }
 0x1a4   : > { %8898 = vsyncadd (%p11459_p1), [#allocation25], 4294966256 }
 0x1a5   : > { %8900 = dma.done.wait (%p11460_p5), [#allocation28], 16   ;;  %p11461_p3 = pmov %p11458_p0 }
 0x1a6   : > { %s11462_s28 = sld [smem:[#allocation44_spill]] }
 0x1a7   : > { %8902 = vsyncadd (%p11461_p3), [#allocation28], 4294967280 }
 0x1ac   : > { %p7032_p8 = scmp.ne.s32.totalorder %s11462_s28, 0 }
 0x1ad   : > { %v875_v0 = vld [vmem:[#allocation6] sm:$0xff] (!%p7032_p8)  ;;  %v877_v1 = vld [vmem:[#allocation6 + $0x10] sm:$0xff] (!%p7032_p8)  ;;  %v876_v2 = vld [vmem:[#allocation6 + $0x8] sm:$0xff] (!%p7032_p8)  ;;  %s11463_s18 = sld [smem:[#allocation96_spill]] (!%p7032_p8)  ;;  %s11464_s9 = sld [smem:[#allocation97_spill]] (!%p7032_p8)  ;;  %vm1196_vm0 = vcmask (!%p7032_p8), 125952  }
 0x1ae   : > { %874 = sbr.rel (%p7032_p8) target bundleno = 1115 (0x45b), region = 160  ;;  %881 = vadd.xlane.f32.xlu0 (!%p7032_p8), %v875_v0  ;;  %885 = vadd.xlane.f32.xlu1 (!%p7032_p8), %v877_v1  ;;  %v878_v3 = vld [vmem:[#allocation6 + $0x18] sm:$0xff] (!%p7032_p8)  ;;  %v8169_v4 = vld [vmem:[#allocation11] sm:$0xff] (!%p7032_p8)   ;;  %v8170_v21 = vld [vmem:[#allocation11 + $0x8] sm:$0xff] (!%p7032_p8)   ;;  %s8954_s20 = smov (!%p7032_p8), 112   ;;  %vm1229_vm1 = vcmask (!%p7032_p8), 7168  }
 0x1af   : > { %7423 = vmatprep.subr.bf16.mxu0 (!%p7032_p8), %v8169_v4  ;;  %v8171_v22 = vld [vmem:[#allocation11 + $0x10] sm:$0xff] (!%p7032_p8)   ;;  %v8172_v23 = vld [vmem:[#allocation11 + $0x18] sm:$0xff] (!%p7032_p8)   ;;  %v8173_v24 = vld [vmem:[#allocation11 + $0x20] sm:$0xff] (!%p7032_p8)   ;;  %s8955_s27 = smov (!%p7032_p8), 96   ;;  %s8956_s11 = smov (!%p7032_p8), 80   ;;  %vm1294_vm2 = vcmask (!%p7032_p8), 130048  }
 0x1b0   : > { %7424 = vmatpush3.bf16.msra.mxu0 (!%p7032_p8), %v8169_v4  ;;  %v8174_v25 = vld [vmem:[#allocation11 + $0x28] sm:$0xff] (!%p7032_p8)   ;;  %v8175_v26 = vld [vmem:[#allocation11 + $0x30] sm:$0xff] (!%p7032_p8)   ;;  %v8176_v27 = vld [vmem:[#allocation11 + $0x38] sm:$0xff] (!%p7032_p8)   ;;  %s8957_s22 = smov (!%p7032_p8), 64   ;;  %s8958_s26 = smov (!%p7032_p8), 48  }
 0x1b1   : > { %7425 = vmatprep.subr.bf16.mxu0 (!%p7032_p8), %v8170_v21  ;;  %v7035_v60 = vld [vmem:[#allocation12] ss:$0 sm:$0xff] (!%p7032_p8)  ;;  %s8959_s21 = smov (!%p7032_p8), 32   ;;  %s8962_s30 = smov (!%p7032_p8), 16  }
 0x1b2   : > { %883 = vadd.xlane.f32.xlu0 (!%p7032_p8), %v876_v2  ;;  %887 = vadd.xlane.f32.xlu1 (!%p7032_p8), %v878_v3 }
 0x1b3   : > { %v7033_v42 = vld [vmem:[%s11463_s18] ss:$0 sm:$0xff] (!%p7032_p8) }
 0x1b4   : > { %7426 = vmatpush3.bf16.msra.mxu0 (!%p7032_p8), %v8170_v21  ;;  %v7034_v47 = vld [vmem:[%s11464_s9] ss:$0 sm:$0xff] (!%p7032_p8) }
 0x1b5   : > { %7427 = vmatprep.subr.bf16.mxu0 %v8171_v22 }
 0x1b8   : > { %7428 = vmatpush3.bf16.msra.mxu0 %v8171_v22 }
 0x1b9   : > { %7429 = vmatprep.subr.bf16.mxu0 %v8172_v23 }
 0x1bc   : > { %7430 = vmatpush3.bf16.msra.mxu0 %v8172_v23 }
 0x1bd   : > { %7431 = vmatprep.subr.bf16.mxu0 %v8173_v24 }
 0x1c0   : > { %7432 = vmatpush3.bf16.msra.mxu0 %v8173_v24 }
 0x1c1   : > { %7433 = vmatprep.subr.bf16.mxu0 %v8174_v25 }
 0x1c4   : > { %7434 = vmatpush3.bf16.msra.mxu0 %v8174_v25 }
 0x1c5   : > { %7435 = vmatprep.subr.bf16.mxu0 %v8175_v26 }
 0x1c8   : > { %7436 = vmatpush3.bf16.msra.mxu0 %v8175_v26 }
 0x1c9   : > { %7437 = vmatprep.subr.bf16.mxu0 %v8176_v27 }
 0x1cc   : > { %7438 = vmatpush3.bf16.msra.mxu0 %v8176_v27 }
 0x23b   : > { %v882_v5 = vpop.xlane.xlu0 %881  ;;  %v886_v6 = vpop.xlane.xlu1 %885 }
 0x23c   : > { %v890_v7 = vmul.f32 0.0078125, %v882_v5  ;;  %v892_v8 = vmul.f32 0.0078125, %v886_v6 }
 0x23e   : > { %v894_v9 = vsub.f32 %v875_v0, %v890_v7  ;;  %v896_v10 = vsub.f32 %v877_v1, %v892_v8 }
 0x23f   : > { %v884_v11 = vpop.xlane.xlu0 %883  ;;  %v888_v12 = vpop.xlane.xlu1 %887 }
 0x240   : > { %v891_v13 = vmul.f32 0.0078125, %v884_v11  ;;  %v898_v14 = vmul.f32 %v894_v9, %v894_v9  ;;  %v893_v15 = vmul.f32 0.0078125, %v888_v12  ;;  %v900_v18 = vmul.f32 %v896_v10, %v896_v10 }
 0x241   : > { %v8960_v11 = vmov -inf   ;;  %v8961_v12 = vmov 0.0  }
 0x242   : > { %v895_v16 = vsub.f32 %v876_v2, %v891_v13  ;;  %902 = vadd.xlane.f32.xlu0 %v898_v14  ;;  %v897_v17 = vsub.f32 %v878_v3, %v893_v15  ;;  %1230 = vst.msk [vmem:[#allocation3] sm:$0xff] %vm1229_vm1, %v8960_v11  ;;  %1231 = vst.msk [vmem:[#allocation3 + $0x8] sm:$0xff] %vm1229_vm1, %v8960_v11 }
 0x243   : > { %1232 = vst.msk [vmem:[#allocation3 + $0x10] sm:$0xff] %vm1229_vm1, %v8960_v11  ;;  %1233 = vst.msk [vmem:[#allocation3 + $0x18] sm:$0xff] %vm1229_vm1, %v8960_v11 }
 0x244   : > { %v899_v19 = vmul.f32 %v895_v16, %v895_v16  ;;  %v901_v20 = vmul.f32 %v897_v17, %v897_v17  ;;  %1234 = vst.msk [vmem:[#allocation3 + $0x20] sm:$0xff] %vm1229_vm1, %v8960_v11  ;;  %1235 = vst.msk [vmem:[#allocation3 + $0x28] sm:$0xff] %vm1229_vm1, %v8960_v11 }
 0x245   : > { %1236 = vst.msk [vmem:[#allocation3 + $0x30] sm:$0xff] %vm1229_vm1, %v8960_v11  ;;  %1237 = vst.msk [vmem:[#allocation3 + $0x38] sm:$0xff] %vm1229_vm1, %v8960_v11 }
 0x246   : > { %906 = vadd.xlane.f32.xlu0 %v900_v18  ;;  %904 = vadd.xlane.f32.xlu1 %v899_v19  ;;  %1238 = vst.msk [vmem:[#allocation3 + $0x40] sm:$0xff] %vm1229_vm1, %v8960_v11  ;;  %1239 = vst.msk [vmem:[#allocation3 + $0x48] sm:$0xff] %vm1229_vm1, %v8960_v11 }
 0x247   : > { %1240 = vst.msk [vmem:[#allocation3 + $0x50] sm:$0xff] %vm1229_vm1, %v8960_v11  ;;  %1241 = vst.msk [vmem:[#allocation3 + $0x58] sm:$0xff] %vm1229_vm1, %v8960_v11 }
 0x248   : > { %1242 = vst.msk [vmem:[#allocation3 + $0x60] sm:$0xff] %vm1229_vm1, %v8960_v11  ;;  %1243 = vst.msk [vmem:[#allocation3 + $0x68] sm:$0xff] %vm1229_vm1, %v8960_v11 }
 0x249   : > { %1244 = vst.msk [vmem:[#allocation3 + $0x70] sm:$0xff] %vm1229_vm1, %v8960_v11  ;;  %1245 = vst.msk [vmem:[#allocation3 + $0x78] sm:$0xff] %vm1229_vm1, %v8960_v11 }
 0x24a   : > { %908 = vadd.xlane.f32.xlu1 %v901_v20  ;;  %1246 = vst.msk [vmem:[#allocation3 + $0x80] sm:$0xff] %vm1229_vm1, %v8960_v11  ;;  %1247 = vst.msk [vmem:[#allocation3 + $0x88] sm:$0xff] %vm1229_vm1, %v8960_v11 }
 0x24b   : > { %1248 = vst.msk [vmem:[#allocation3 + $0x90] sm:$0xff] %vm1229_vm1, %v8960_v11  ;;  %1249 = vst.msk [vmem:[#allocation3 + $0x98] sm:$0xff] %vm1229_vm1, %v8960_v11 }
 0x24c   : > { %1250 = vst.msk [vmem:[#allocation3 + $0xa0] sm:$0xff] %vm1229_vm1, %v8960_v11  ;;  %1251 = vst.msk [vmem:[#allocation3 + $0xa8] sm:$0xff] %vm1229_vm1, %v8960_v11 }
 0x24d   : > { %1252 = vst.msk [vmem:[#allocation3 + $0xb0] sm:$0xff] %vm1229_vm1, %v8960_v11  ;;  %1253 = vst.msk [vmem:[#allocation3 + $0xb8] sm:$0xff] %vm1229_vm1, %v8960_v11 }
 0x24e   : > { %1254 = vst.msk [vmem:[#allocation3 + $0xc0] sm:$0xff] %vm1229_vm1, %v8960_v11  ;;  %1255 = vst.msk [vmem:[#allocation3 + $0xc8] sm:$0xff] %vm1229_vm1, %v8960_v11 }
 0x24f   : > { %1256 = vst.msk [vmem:[#allocation3 + $0xd0] sm:$0xff] %vm1229_vm1, %v8960_v11  ;;  %1257 = vst.msk [vmem:[#allocation3 + $0xd8] sm:$0xff] %vm1229_vm1, %v8960_v11 }
 0x250   : > { %1258 = vst.msk [vmem:[#allocation3 + $0xe0] sm:$0xff] %vm1229_vm1, %v8960_v11  ;;  %1259 = vst.msk [vmem:[#allocation3 + $0xe8] sm:$0xff] %vm1229_vm1, %v8960_v11 }
 0x251   : > { %1260 = vst.msk [vmem:[#allocation3 + $0xf0] sm:$0xff] %vm1229_vm1, %v8960_v11  ;;  %1261 = vst.msk [vmem:[#allocation3 + $0xf8] sm:$0xff] %vm1229_vm1, %v8960_v11 }
 0x252   : > { %1262 = vst.msk [vmem:[#allocation4] sm:$0xff] %vm1229_vm1, %v8961_v12  ;;  %1263 = vst.msk [vmem:[#allocation4 + $0x8] sm:$0xff] %vm1229_vm1, %v8961_v12 }
 0x253   : > { %1264 = vst.msk [vmem:[#allocation4 + $0x10] sm:$0xff] %vm1229_vm1, %v8961_v12  ;;  %1265 = vst.msk [vmem:[#allocation4 + $0x18] sm:$0xff] %vm1229_vm1, %v8961_v12 }
 0x254   : > { %1266 = vst.msk [vmem:[#allocation4 + $0x20] sm:$0xff] %vm1229_vm1, %v8961_v12  ;;  %1267 = vst.msk [vmem:[#allocation4 + $0x28] sm:$0xff] %vm1229_vm1, %v8961_v12 }
 0x255   : > { %1268 = vst.msk [vmem:[#allocation4 + $0x30] sm:$0xff] %vm1229_vm1, %v8961_v12  ;;  %1269 = vst.msk [vmem:[#allocation4 + $0x38] sm:$0xff] %vm1229_vm1, %v8961_v12 }
 0x256   : > { %1270 = vst.msk [vmem:[#allocation4 + $0x40] sm:$0xff] %vm1229_vm1, %v8961_v12  ;;  %1271 = vst.msk [vmem:[#allocation4 + $0x48] sm:$0xff] %vm1229_vm1, %v8961_v12 }
 0x257   : > { %1272 = vst.msk [vmem:[#allocation4 + $0x50] sm:$0xff] %vm1229_vm1, %v8961_v12  ;;  %1273 = vst.msk [vmem:[#allocation4 + $0x58] sm:$0xff] %vm1229_vm1, %v8961_v12 }
 0x258   : > { %1274 = vst.msk [vmem:[#allocation4 + $0x60] sm:$0xff] %vm1229_vm1, %v8961_v12  ;;  %1275 = vst.msk [vmem:[#allocation4 + $0x68] sm:$0xff] %vm1229_vm1, %v8961_v12 }
 0x259   : > { %1276 = vst.msk [vmem:[#allocation4 + $0x70] sm:$0xff] %vm1229_vm1, %v8961_v12  ;;  %1277 = vst.msk [vmem:[#allocation4 + $0x78] sm:$0xff] %vm1229_vm1, %v8961_v12 }
 0x25a   : > { %1278 = vst.msk [vmem:[#allocation4 + $0x80] sm:$0xff] %vm1229_vm1, %v8961_v12  ;;  %1279 = vst.msk [vmem:[#allocation4 + $0x88] sm:$0xff] %vm1229_vm1, %v8961_v12 }
 0x25b   : > { %1280 = vst.msk [vmem:[#allocation4 + $0x90] sm:$0xff] %vm1229_vm1, %v8961_v12  ;;  %1281 = vst.msk [vmem:[#allocation4 + $0x98] sm:$0xff] %vm1229_vm1, %v8961_v12 }
 0x25c   : > { %1282 = vst.msk [vmem:[#allocation4 + $0xa0] sm:$0xff] %vm1229_vm1, %v8961_v12  ;;  %1283 = vst.msk [vmem:[#allocation4 + $0xa8] sm:$0xff] %vm1229_vm1, %v8961_v12 }
 0x25d   : > { %1284 = vst.msk [vmem:[#allocation4 + $0xb0] sm:$0xff] %vm1229_vm1, %v8961_v12  ;;  %1285 = vst.msk [vmem:[#allocation4 + $0xb8] sm:$0xff] %vm1229_vm1, %v8961_v12 }
 0x25e   : > { %1286 = vst.msk [vmem:[#allocation4 + $0xc0] sm:$0xff] %vm1229_vm1, %v8961_v12  ;;  %1287 = vst.msk [vmem:[#allocation4 + $0xc8] sm:$0xff] %vm1229_vm1, %v8961_v12 }
 0x25f   : > { %1288 = vst.msk [vmem:[#allocation4 + $0xd0] sm:$0xff] %vm1229_vm1, %v8961_v12  ;;  %1289 = vst.msk [vmem:[#allocation4 + $0xd8] sm:$0xff] %vm1229_vm1, %v8961_v12 }
 0x260   : > { %1290 = vst.msk [vmem:[#allocation4 + $0xe0] sm:$0xff] %vm1229_vm1, %v8961_v12  ;;  %1291 = vst.msk [vmem:[#allocation4 + $0xe8] sm:$0xff] %vm1229_vm1, %v8961_v12 }
 0x261   : > { %1292 = vst.msk [vmem:[#allocation4 + $0xf0] sm:$0xff] %vm1229_vm1, %v8961_v12  ;;  %1293 = vst.msk [vmem:[#allocation4 + $0xf8] sm:$0xff] %vm1229_vm1, %v8961_v12 }
 0x262   : > { %1295 = vst.msk [vmem:[#allocation5] sm:$0xff] %vm1294_vm2, %v8961_v12  ;;  %1296 = vst.msk [vmem:[#allocation5 + $0x8] sm:$0xff] %vm1294_vm2, %v8961_v12 }
 0x263   : > { %1297 = vst.msk [vmem:[#allocation5 + $0x10] sm:$0xff] %vm1294_vm2, %v8961_v12  ;;  %1298 = vst.msk [vmem:[#allocation5 + $0x18] sm:$0xff] %vm1294_vm2, %v8961_v12 }
 0x264   : > { %1299 = vst.msk [vmem:[#allocation5 + $0x20] sm:$0xff] %vm1294_vm2, %v8961_v12  ;;  %1300 = vst.msk [vmem:[#allocation5 + $0x28] sm:$0xff] %vm1294_vm2, %v8961_v12 }
 0x265   : > { %1301 = vst.msk [vmem:[#allocation5 + $0x30] sm:$0xff] %vm1294_vm2, %v8961_v12  ;;  %1302 = vst.msk [vmem:[#allocation5 + $0x38] sm:$0xff] %vm1294_vm2, %v8961_v12 }
 0x266   : > { %1303 = vst.msk [vmem:[#allocation5 + $0x40] sm:$0xff] %vm1294_vm2, %v8961_v12  ;;  %1304 = vst.msk [vmem:[#allocation5 + $0x48] sm:$0xff] %vm1294_vm2, %v8961_v12 }
 0x267   : > { %1305 = vst.msk [vmem:[#allocation5 + $0x50] sm:$0xff] %vm1294_vm2, %v8961_v12  ;;  %1306 = vst.msk [vmem:[#allocation5 + $0x58] sm:$0xff] %vm1294_vm2, %v8961_v12 }
 0x268   : > { %1307 = vst.msk [vmem:[#allocation5 + $0x60] sm:$0xff] %vm1294_vm2, %v8961_v12  ;;  %1308 = vst.msk [vmem:[#allocation5 + $0x68] sm:$0xff] %vm1294_vm2, %v8961_v12 }
 0x269   : > { %1309 = vst.msk [vmem:[#allocation5 + $0x70] sm:$0xff] %vm1294_vm2, %v8961_v12  ;;  %1310 = vst.msk [vmem:[#allocation5 + $0x78] sm:$0xff] %vm1294_vm2, %v8961_v12 }
 0x26a   : > { %1311 = vst.msk [vmem:[#allocation5 + $0x80] sm:$0xff] %vm1294_vm2, %v8961_v12  ;;  %1312 = vst.msk [vmem:[#allocation5 + $0x88] sm:$0xff] %vm1294_vm2, %v8961_v12 }
 0x26b   : > { %1313 = vst.msk [vmem:[#allocation5 + $0x90] sm:$0xff] %vm1294_vm2, %v8961_v12  ;;  %1314 = vst.msk [vmem:[#allocation5 + $0x98] sm:$0xff] %vm1294_vm2, %v8961_v12 }
 0x26c   : > { %1315 = vst.msk [vmem:[#allocation5 + $0xa0] sm:$0xff] %vm1294_vm2, %v8961_v12  ;;  %1316 = vst.msk [vmem:[#allocation5 + $0xa8] sm:$0xff] %vm1294_vm2, %v8961_v12 }
 0x26d   : > { %1317 = vst.msk [vmem:[#allocation5 + $0xb0] sm:$0xff] %vm1294_vm2, %v8961_v12  ;;  %1318 = vst.msk [vmem:[#allocation5 + $0xb8] sm:$0xff] %vm1294_vm2, %v8961_v12 }
 0x26e   : > { %1319 = vst.msk [vmem:[#allocation5 + $0xc0] sm:$0xff] %vm1294_vm2, %v8961_v12  ;;  %1320 = vst.msk [vmem:[#allocation5 + $0xc8] sm:$0xff] %vm1294_vm2, %v8961_v12 }
 0x26f   : > { %1321 = vst.msk [vmem:[#allocation5 + $0xd0] sm:$0xff] %vm1294_vm2, %v8961_v12  ;;  %1322 = vst.msk [vmem:[#allocation5 + $0xd8] sm:$0xff] %vm1294_vm2, %v8961_v12 }
 0x270   : > { %1323 = vst.msk [vmem:[#allocation5 + $0xe0] sm:$0xff] %vm1294_vm2, %v8961_v12  ;;  %1324 = vst.msk [vmem:[#allocation5 + $0xe8] sm:$0xff] %vm1294_vm2, %v8961_v12 }
 0x271   : > { %1325 = vst.msk [vmem:[#allocation5 + $0xf0] sm:$0xff] %vm1294_vm2, %v8961_v12  ;;  %1326 = vst.msk [vmem:[#allocation5 + $0xf8] sm:$0xff] %vm1294_vm2, %v8961_v12 }
 0x2cf   : > { %v903_v28 = vpop.xlane.xlu0 %902 }
 0x2d0   : > { %v910_v29 = vmul.f32 0.0078125, %v903_v28 }
 0x2d2   : > { %v914_v30 = vadd.f32 1e-05, %v910_v29 }
 0x2d3   : > { %v905_v31 = vpop.xlane.xlu1 %904  ;;  %v907_v32 = vpop.xlane.xlu0 %906 }
 0x2d4   : > { %8177 = vrsqrt.f32 %v914_v30  ;;  %v911_v33 = vmul.f32 0.0078125, %v905_v31  ;;  %v912_v34 = vmul.f32 0.0078125, %v907_v32 }
 0x2d6   : > { %v915_v35 = vadd.f32 1e-05, %v911_v33  ;;  %v916_v36 = vadd.f32 1e-05, %v912_v34 }
 0x2d7   : > { %v909_v37 = vpop.xlane.xlu1 %908 }
 0x2d8   : > { %8179 = vrsqrt.f32 %v915_v35  ;;  %v913_v38 = vmul.f32 0.0078125, %v909_v37 }
 0x2d9   : > { %8181 = vrsqrt.f32 %v916_v36 }
 0x2da   : > { %v917_v39 = vadd.f32 1e-05, %v913_v38 }
 0x2dc   : > { %8183 = vrsqrt.f32 %v917_v39 }
 0x2de   : > { %v8178_v40 = vpop.eup %8177 }
 0x2df   : > { %v922_v41 = vmul.f32 %v8178_v40, %v894_v9 }
 0x2e1   : > { %v932_v46 = vmul.f32 %v7033_v42, %v922_v41 }
 0x2e2   : > { %v8180_v43 = vpop.eup %8179 }
 0x2e3   : > { %v8182_v44 = vpop.eup %8181  ;;  %v923_v45 = vmul.f32 %v8180_v43, %v895_v16  ;;  %v942_v51 = vadd.f32 %v7034_v47, %v932_v46 }
 0x2e4   : > { %v924_v48 = vmul.f32 %v8182_v44, %v896_v10 }
 0x2e5   : > { %v933_v49 = vmul.f32 %v7033_v42, %v923_v45 }
 0x2e6   : > { %v8184_v50 = vpop.eup %8183  ;;  %v934_v54 = vmul.f32 %v7033_v42, %v924_v48 }
 0x2e7   : > { %v943_v52 = vadd.f32 %v7034_v47, %v933_v49  ;;  %v925_v53 = vmul.f32 %v8184_v50, %v897_v17 }
 0x2e8   : > { %v944_v57 = vadd.f32 %v7034_v47, %v934_v54 }
 0x2e9   : > { %v946_v55 = vpack.c.bf16 %v943_v52, %v942_v51  ;;  %v935_v56 = vmul.f32 %v7033_v42, %v925_v53 }
 0x2eb   : > { %7439 = vmatprep.mubr.bf16.mxu0 %v946_v55  ;;  %v945_v58 = vadd.f32 %v7034_v47, %v935_v56 }
 0x2ed   : > { %v947_v59 = vpack.c.bf16 %v945_v58, %v944_v57 }
 0x2ef   : > { %7440 = vmatmul.mubr.bf16.vlgmr.msra.gmra.mrb[0].mxu0 %v947_v59 }
 0x3c2   : > { %v7441_v61 = vpop.f32.mrb[0].mxu0 }
 0x3c3   : > { %v1062_v62 = vadd.f32 %v7441_v61, %v7035_v60  ;;  %v1053_v63 = vpop.f32.mrb[1].mxu0 }
 0x3c4   : > { %v1054_v0 = vadd.f32 %v7035_v60, %v1053_v63  ;;  %v7442_v1 = vpop.f32.mrb[2].mxu0 }
 0x3c5   : > { %v7213_v2 = vpack.c.bf16 %v1062_v62, %v1062_v62  ;;  %v1065_v3 = vadd.f32 %v7442_v1, %v7035_v60  ;;  %v1056_v4 = vpop.f32.mrb[3].mxu0 }
 0x3c6   : > { %v7211_v5 = vpack.c.bf16 %v1054_v0, %v1054_v0  ;;  %v1057_v6 = vadd.f32 %v7035_v60, %v1056_v4 }
 0x3c7   : > { %1199 = vst.msk [vmem:[#allocation2 + $0x8] sm:$0xf] %vm1196_vm0, %v7213_v2  ;;  %v9520_v7 = vpack.c.bf16 %v1065_v3, %v1062_v62  ;;  %v7214_v8 = vpack.c.bf16 %v1065_v3, %v1065_v3 }
 0x3c8   : > { %1197 = vst.msk [vmem:[#allocation2] sm:$0xf] %vm1196_vm0, %v7211_v5  ;;  %v9523_v9 = vpack.c.bf16 %v1057_v6, %v1054_v0  ;;  %v7212_v10 = vpack.c.bf16 %v1057_v6, %v1057_v6 }
 0x3c9   : > { %1200 = vst.msk [vmem:[#allocation2 + $0xc] sm:$0xf] %vm1196_vm0, %v7214_v8  ;;  %1074 = vrot.lane.b32.xlu1 %v9520_v7, %s8954_s20 }
 0x3ca   : > { %1198 = vst.msk [vmem:[#allocation2 + $0x4] sm:$0xf] %vm1196_vm0, %v7212_v10  ;;  %1072 = vrot.lane.b32.xlu0 %v9523_v9, %s8954_s20 }
 0x3cd   : > { %1078 = vrot.lane.b32.xlu1 %v9520_v7, %s8955_s27 }
 0x3ce   : > { %1080 = vrot.lane.b32.xlu0 %v9523_v9, %s8956_s11 }
 0x3d1   : > { %1082 = vrot.lane.b32.xlu1 %v9520_v7, %s8956_s11 }
 0x3d2   : > { %1084 = vrot.lane.b32.xlu0 %v9523_v9, %s8957_s22 }
 0x3d5   : > { %1086 = vrot.lane.b32.xlu1 %v9520_v7, %s8957_s22 }
 0x3d6   : > { %1088 = vrot.lane.b32.xlu0 %v9523_v9, %s8958_s26 }
 0x3d9   : > { %1090 = vrot.lane.b32.xlu1 %v9520_v7, %s8958_s26 }
 0x3da   : > { %1092 = vrot.lane.b32.xlu0 %v9523_v9, %s8959_s21 }
 0x3dd   : > { %1094 = vrot.lane.b32.xlu1 %v9520_v7, %s8959_s21 }
 0x3de   : > { %1096 = vrot.lane.b32.xlu0 %v9523_v9, %s8962_s30 }
 0x3e1   : > { %1076 = vrot.lane.b32.xlu1 %v9523_v9, %s8955_s27 }
 0x3e5   : > { %1098 = vrot.lane.b32.xlu1 %v9520_v7, %s8962_s30 }
 0x43b   : > { %v1075_v13 = vpop.permute.xlu1 %1074 }
 0x43c   : > { %v7050_v14 = vcombine.low %v1075_v13, %v1075_v13  ;;  %v7051_v15 = vcombine.high %v1075_v13, %v1075_v13  ;;  %v1073_v16 = vpop.permute.xlu0 %1072 }
 0x43d   : > { %v7048_v17 = vcombine.low %v1073_v16, %v1073_v16  ;;  %v7049_v18 = vcombine.high %v1073_v16, %v1073_v16 }
 0x43e   : > { %1203 = vst.msk [vmem:[#allocation2 + $0x18] sm:$0xf] %vm1196_vm0, %v7050_v14  ;;  %1204 = vst.msk [vmem:[#allocation2 + $0x1c] sm:$0xf] %vm1196_vm0, %v7051_v15 }
 0x43f   : > { %1201 = vst.msk [vmem:[#allocation2 + $0x10] sm:$0xf] %vm1196_vm0, %v7048_v17  ;;  %1202 = vst.msk [vmem:[#allocation2 + $0x14] sm:$0xf] %vm1196_vm0, %v7049_v18  ;;  %v1079_v19 = vpop.permute.xlu1 %1078 }
 0x440   : > { %v7054_v20 = vcombine.low %v1079_v19, %v1079_v19  ;;  %v7055_v21 = vcombine.high %v1079_v19, %v1079_v19  ;;  %v1081_v22 = vpop.permute.xlu0 %1080 }
 0x441   : > { %v7056_v23 = vcombine.low %v1081_v22, %v1081_v22  ;;  %v7057_v24 = vcombine.high %v1081_v22, %v1081_v22 }
 0x442   : > { %1207 = vst.msk [vmem:[#allocation2 + $0x28] sm:$0xf] %vm1196_vm0, %v7054_v20  ;;  %1208 = vst.msk [vmem:[#allocation2 + $0x2c] sm:$0xf] %vm1196_vm0, %v7055_v21 }
 0x443   : > { %1209 = vst.msk [vmem:[#allocation2 + $0x30] sm:$0xf] %vm1196_vm0, %v7056_v23  ;;  %1210 = vst.msk [vmem:[#allocation2 + $0x34] sm:$0xf] %vm1196_vm0, %v7057_v24  ;;  %v1083_v25 = vpop.permute.xlu1 %1082 }
 0x444   : > { %v7058_v26 = vcombine.low %v1083_v25, %v1083_v25  ;;  %v7059_v27 = vcombine.high %v1083_v25, %v1083_v25  ;;  %v1085_v28 = vpop.permute.xlu0 %1084 }
 0x445   : > { %v7060_v29 = vcombine.low %v1085_v28, %v1085_v28  ;;  %v7061_v30 = vcombine.high %v1085_v28, %v1085_v28 }
 0x446   : > { %1211 = vst.msk [vmem:[#allocation2 + $0x38] sm:$0xf] %vm1196_vm0, %v7058_v26  ;;  %1212 = vst.msk [vmem:[#allocation2 + $0x3c] sm:$0xf] %vm1196_vm0, %v7059_v27 }
 0x447   : > { %1213 = vst.msk [vmem:[#allocation2 + $0x40] sm:$0xf] %vm1196_vm0, %v7060_v29  ;;  %1214 = vst.msk [vmem:[#allocation2 + $0x44] sm:$0xf] %vm1196_vm0, %v7061_v30  ;;  %v1087_v31 = vpop.permute.xlu1 %1086 }
 0x448   : > { %v7062_v32 = vcombine.low %v1087_v31, %v1087_v31  ;;  %v7063_v33 = vcombine.high %v1087_v31, %v1087_v31  ;;  %v1089_v34 = vpop.permute.xlu0 %1088 }
 0x449   : > { %v7064_v35 = vcombine.low %v1089_v34, %v1089_v34  ;;  %v7065_v36 = vcombine.high %v1089_v34, %v1089_v34 }
 0x44a   : > { %1215 = vst.msk [vmem:[#allocation2 + $0x48] sm:$0xf] %vm1196_vm0, %v7062_v32  ;;  %1216 = vst.msk [vmem:[#allocation2 + $0x4c] sm:$0xf] %vm1196_vm0, %v7063_v33 }
 0x44b   : > { %1217 = vst.msk [vmem:[#allocation2 + $0x50] sm:$0xf] %vm1196_vm0, %v7064_v35  ;;  %1218 = vst.msk [vmem:[#allocation2 + $0x54] sm:$0xf] %vm1196_vm0, %v7065_v36  ;;  %v1091_v37 = vpop.permute.xlu1 %1090 }
 0x44c   : > { %v7066_v38 = vcombine.low %v1091_v37, %v1091_v37  ;;  %v7067_v39 = vcombine.high %v1091_v37, %v1091_v37  ;;  %v1093_v40 = vpop.permute.xlu0 %1092 }
 0x44d   : > { %v7068_v41 = vcombine.low %v1093_v40, %v1093_v40  ;;  %v7069_v42 = vcombine.high %v1093_v40, %v1093_v40 }
 0x44e   : > { %1219 = vst.msk [vmem:[#allocation2 + $0x58] sm:$0xf] %vm1196_vm0, %v7066_v38  ;;  %1220 = vst.msk [vmem:[#allocation2 + $0x5c] sm:$0xf] %vm1196_vm0, %v7067_v39 }
 0x44f   : > { %1221 = vst.msk [vmem:[#allocation2 + $0x60] sm:$0xf] %vm1196_vm0, %v7068_v41  ;;  %1222 = vst.msk [vmem:[#allocation2 + $0x64] sm:$0xf] %vm1196_vm0, %v7069_v42  ;;  %v1095_v43 = vpop.permute.xlu1 %1094 }
 0x450   : > { %v7070_v44 = vcombine.low %v1095_v43, %v1095_v43  ;;  %v7071_v45 = vcombine.high %v1095_v43, %v1095_v43  ;;  %v1097_v46 = vpop.permute.xlu0 %1096 }
 0x451   : > { %v7072_v47 = vcombine.low %v1097_v46, %v1097_v46  ;;  %v7073_v48 = vcombine.high %v1097_v46, %v1097_v46 }
 0x452   : > { %1223 = vst.msk [vmem:[#allocation2 + $0x68] sm:$0xf] %vm1196_vm0, %v7070_v44  ;;  %1224 = vst.msk [vmem:[#allocation2 + $0x6c] sm:$0xf] %vm1196_vm0, %v7071_v45 }
 0x453   : > { %1225 = vst.msk [vmem:[#allocation2 + $0x70] sm:$0xf] %vm1196_vm0, %v7072_v47  ;;  %1226 = vst.msk [vmem:[#allocation2 + $0x74] sm:$0xf] %vm1196_vm0, %v7073_v48  ;;  %v1077_v49 = vpop.permute.xlu1 %1076 }
 0x454   : > { %v7052_v50 = vcombine.low %v1077_v49, %v1077_v49  ;;  %v7053_v51 = vcombine.high %v1077_v49, %v1077_v49 }
 0x456   : > { %1205 = vst.msk [vmem:[#allocation2 + $0x20] sm:$0xf] %vm1196_vm0, %v7052_v50  ;;  %1206 = vst.msk [vmem:[#allocation2 + $0x24] sm:$0xf] %vm1196_vm0, %v7053_v51 }
 0x457   : > { %v1099_v52 = vpop.permute.xlu1 %1098 }
 0x458   : > { %v7074_v53 = vcombine.low %v1099_v52, %v1099_v52  ;;  %v7075_v54 = vcombine.high %v1099_v52, %v1099_v52 }
 0x45a   : > { %1227 = vst.msk [vmem:[#allocation2 + $0x78] sm:$0xf] %vm1196_vm0, %v7074_v53  ;;  %1228 = vst.msk [vmem:[#allocation2 + $0x7c] sm:$0xf] %vm1196_vm0, %v7075_v54 }
 0x45b PF: > { %v1327_v55 = vld [vmem:[%s9478_s29] sm:$0xff]  ;;  %v1329_v56 = vld [vmem:[%s9478_s29 + $0x10] sm:$0xff]  ;;  %v1328_v57 = vld [vmem:[%s9478_s29 + $0x8] sm:$0xff]  ;;  %s11465_s4 = sld [smem:[#allocation98_spill]]  ;;  %s11466_s0 = sld [smem:[#allocation99_spill]]  ;;  %vm8964_vm3 = vmmov 0  }
 0x45c   : > { %1337 = vadd.xlane.f32.xlu0 %v1327_v55  ;;  %1341 = vadd.xlane.f32.xlu1 %v1329_v56  ;;  %v1330_v58 = vld [vmem:[%s9478_s29 + $0x18] sm:$0xff]  ;;  %v1331_v59 = vld [vmem:[%s9478_s29 + $0x20] sm:$0xff]  ;;  %v1332_v60 = vld [vmem:[%s9478_s29 + $0x28] sm:$0xff]  ;;  %vm1918_vm4 = vcmask 130048   ;;  %s8965_s1 = smov 112   ;;  %s8966_s18 = smov 96  }
 0x45d   : > { %v1333_v61 = vld [vmem:[%s9478_s29 + $0x30] sm:$0xff]  ;;  %v1334_v62 = vld [vmem:[%s9478_s29 + $0x38] sm:$0xff]  ;;  %v8187_v63 = vld [vmem:[#allocation14] sm:$0xff]   ;;  %s8967_s5 = smov 80   ;;  %s8968_s7 = smov 64   ;;  %vm4095_vm5 = vcmask 7168  }
 0x45e   : > { %v8188_v0 = vld [vmem:[#allocation17] sm:$0xff]   ;;  %7443 = vmatprep.subr.bf16.mxu0 %v8187_v63  ;;  %v8190_v34 = vld [vmem:[#allocation17 + $0x8] sm:$0xff]   ;;  %v8192_v36 = vld [vmem:[#allocation17 + $0x10] sm:$0xff]   ;;  %s8969_s9 = smov 48   ;;  %s8970_s20 = smov 32  }
 0x45f   : > { %7467 = vmatprep.subr.bf16.mxu1 %v8188_v0  ;;  %7444 = vmatpush3.bf16.msra.mxu0 %v8187_v63  ;;  %v8189_v33 = vld [vmem:[#allocation14 + $0x8] sm:$0xff]   ;;  %v8191_v35 = vld [vmem:[#allocation14 + $0x10] sm:$0xff]   ;;  %v8193_v37 = vld [vmem:[#allocation14 + $0x18] sm:$0xff]   ;;  %s8971_s27 = smov 16   ;;  %s11604_s11 = sld [smem:[#allocation44_spill]] }
 0x460   : > { %1339 = vadd.xlane.f32.xlu0 %v1328_v57  ;;  %1343 = vadd.xlane.f32.xlu1 %v1330_v58  ;;  %v8194_v38 = vld [vmem:[#allocation17 + $0x18] sm:$0xff]   ;;  %v8196_v40 = vld [vmem:[#allocation17 + $0x20] sm:$0xff]   ;;  %v8198_v42 = vld [vmem:[#allocation17 + $0x28] sm:$0xff]  }
 0x461   : > { %7468 = vmatpush3.bf16.msra.mxu1 %v8188_v0  ;;  %7445 = vmatprep.subr.bf16.mxu0 %v8189_v33  ;;  %v8195_v39 = vld [vmem:[#allocation14 + $0x20] sm:$0xff]   ;;  %v8197_v41 = vld [vmem:[#allocation14 + $0x28] sm:$0xff]   ;;  %v8199_v43 = vld [vmem:[#allocation14 + $0x30] sm:$0xff]  }
 0x462   : > { %7469 = vmatprep.subr.bf16.mxu1 %v8190_v34  ;;  %v8200_v44 = vld [vmem:[#allocation17 + $0x30] sm:$0xff]   ;;  %v8202_v46 = vld [vmem:[#allocation17 + $0x38] sm:$0xff]  }
 0x463   : > { %7446 = vmatpush3.bf16.msra.mxu0 %v8189_v33  ;;  %v8201_v45 = vld [vmem:[#allocation14 + $0x38] sm:$0xff]  }
 0x464   : > { %1345 = vadd.xlane.f32.xlu0 %v1331_v59  ;;  %1347 = vadd.xlane.f32.xlu1 %v1332_v60 }
 0x465   : > { %7470 = vmatpush3.bf16.msra.mxu1 %v8190_v34  ;;  %7447 = vmatprep.subr.bf16.mxu0 %v8191_v35  ;;  %p7160_p10 = scmp.ne.s32.totalorder %s11604_s11, 1 }
 0x466   : > { %7471 = vmatprep.subr.bf16.mxu1 %v8192_v36  ;;  %s8974_s22 = smov (!%p7160_p10), 16   ;;  %s8975_s26 = smov (!%p7160_p10), 32   ;;  %vm6294_vm6 = vcmask (!%p7160_p10), 261120   ;;  %vm6299_vm7 = vcmask (!%p7160_p10), 392192   ;;  %vm6304_vm8 = vcmask (!%p7160_p10), 523264   ;;  %vm6309_vm9 = vcmask (!%p7160_p10), 654336  }
 0x467   : > { %7448 = vmatpush3.bf16.msra.mxu0 %v8191_v35  ;;  %s8976_s21 = smov (!%p7160_p10), 48   ;;  %s8977_s30 = smov (!%p7160_p10), 64   ;;  %vm6314_vm10 = vcmask (!%p7160_p10), 785408   ;;  %vm6319_vm11 = vcmask (!%p7160_p10), 916480  }
 0x468   : > { %1349 = vadd.xlane.f32.xlu0 %v1333_v61  ;;  %1351 = vadd.xlane.f32.xlu1 %v1334_v62  ;;  %s8978_s3 = smov (!%p7160_p10), 80   ;;  %s8979_s24 = smov (!%p7160_p10), 96  }
 0x469   : > { %7472 = vmatpush3.bf16.msra.mxu1 %v8192_v36  ;;  %7449 = vmatprep.subr.bf16.mxu0 %v8193_v37  ;;  %s11606_s28 = sld [smem:[#allocation104_spill]] (!%p7160_p10) }
 0x46a   : > { %7473 = vmatprep.subr.bf16.mxu1 %v8194_v38 }
 0x46b   : > { %7450 = vmatpush3.bf16.msra.mxu0 %v8193_v37 }
 0x46c   : > { %7451 = vmatprep.subr.bf16.mxu0 %v8195_v39 }
 0x46d   : > { %7474 = vmatpush3.bf16.msra.mxu1 %v8194_v38 }
 0x46e   : > { %7475 = vmatprep.subr.bf16.mxu1 %v8196_v40 }
 0x46f   : > { %7452 = vmatpush3.bf16.msra.mxu0 %v8195_v39 }
 0x470   : > { %7453 = vmatprep.subr.bf16.mxu0 %v8197_v41 }
 0x471   : > { %7476 = vmatpush3.bf16.msra.mxu1 %v8196_v40 }
 0x472   : > { %7477 = vmatprep.subr.bf16.mxu1 %v8198_v42 }
 0x473   : > { %7454 = vmatpush3.bf16.msra.mxu0 %v8197_v41 }
 0x474   : > { %7455 = vmatprep.subr.bf16.mxu0 %v8199_v43 }
 0x475   : > { %7478 = vmatpush3.bf16.msra.mxu1 %v8198_v42 }
 0x476   : > { %7479 = vmatprep.subr.bf16.mxu1 %v8200_v44 }
 0x477   : > { %7456 = vmatpush3.bf16.msra.mxu0 %v8199_v43 }
 0x478   : > { %7457 = vmatprep.subr.bf16.mxu0 %v8201_v45 }
 0x479   : > { %7480 = vmatpush3.bf16.msra.mxu1 %v8200_v44 }
 0x47a   : > { %7481 = vmatprep.subr.bf16.mxu1 %v8202_v46 }
 0x47b   : > { %7458 = vmatpush3.bf16.msra.mxu0 %v8201_v45 }
 0x47d   : > { %7482 = vmatpush3.bf16.msra.mxu1 %v8202_v46 }
 0x4e9   : > { %v1338_v1 = vpop.xlane.xlu0 %1337  ;;  %v1342_v2 = vpop.xlane.xlu1 %1341 }
 0x4ea   : > { %v1354_v3 = vmul.f32 0.0078125, %v1338_v1  ;;  %v1356_v4 = vmul.f32 0.0078125, %v1342_v2 }
 0x4ec   : > { %v9741_v5 = vsub.f32 %v1327_v55, %v1354_v3  ;;  %v9743_v6 = vsub.f32 %v1329_v56, %v1356_v4 }
 0x4ed   : > { %v1340_v7 = vpop.xlane.xlu0 %1339  ;;  %v1344_v8 = vpop.xlane.xlu1 %1343 }
 0x4ee   : > { %v1355_v9 = vmul.f32 0.0078125, %v1340_v7  ;;  %v1370_v10 = vmul.f32 %v9741_v5, %v9741_v5  ;;  %v1357_v11 = vmul.f32 0.0078125, %v1344_v8  ;;  %v1372_v12 = vmul.f32 %v9743_v6, %v9743_v6 }
 0x4f0   : > { %1378 = vadd.xlane.f32.xlu0 %v1370_v10  ;;  %v9749_v13 = vsub.f32 %v1328_v57, %v1355_v9  ;;  %v9751_v14 = vsub.f32 %v1330_v58, %v1357_v11  ;;  %v7076_v10 = vld [vmem:[%s11465_s4] ss:$0 sm:$0xff]  ;;  %s8980_s4 = smov (!%p7160_p10), 112  }
 0x4f1   : > { %v1346_v15 = vpop.xlane.xlu0 %1345  ;;  %v1348_v16 = vpop.xlane.xlu1 %1347 }
 0x4f2   : > { %v1358_v17 = vmul.f32 0.0078125, %v1346_v15  ;;  %v1371_v18 = vmul.f32 %v9749_v13, %v9749_v13  ;;  %v1359_v19 = vmul.f32 0.0078125, %v1348_v16  ;;  %v1373_v20 = vmul.f32 %v9751_v14, %v9751_v14 }
 0x4f4   : > { %1382 = vadd.xlane.f32.xlu0 %v1372_v12  ;;  %1380 = vadd.xlane.f32.xlu1 %v1371_v18  ;;  %v9757_v21 = vsub.f32 %v1331_v59, %v1358_v17  ;;  %v9759_v22 = vsub.f32 %v1332_v60, %v1359_v19  ;;  %v7077_v18 = vld [vmem:[%s11466_s0] ss:$0 sm:$0xff]  ;;  %s11605_s0 = sld [smem:[#allocation103_spill]] (!%p7160_p10) }
 0x4f5   : > { %v1350_v23 = vpop.xlane.xlu0 %1349  ;;  %v1352_v24 = vpop.xlane.xlu1 %1351 }
 0x4f6   : > { %v1360_v25 = vmul.f32 0.0078125, %v1350_v23  ;;  %v1374_v26 = vmul.f32 %v9757_v21, %v9757_v21  ;;  %v1361_v27 = vmul.f32 0.0078125, %v1352_v24  ;;  %v1375_v28 = vmul.f32 %v9759_v22, %v9759_v22 }
 0x4f8   : > { %1384 = vadd.xlane.f32.xlu1 %v1373_v20  ;;  %1386 = vadd.xlane.f32.xlu0 %v1374_v26  ;;  %v9765_v29 = vsub.f32 %v1333_v61, %v1360_v25  ;;  %v9767_v30 = vsub.f32 %v1334_v62, %v1361_v27 }
 0x4fa   : > { %v1376_v31 = vmul.f32 %v9765_v29, %v9765_v29  ;;  %v1377_v32 = vmul.f32 %v9767_v30, %v9767_v30 }
 0x4fc   : > { %1388 = vadd.xlane.f32.xlu1 %v1375_v28  ;;  %1390 = vadd.xlane.f32.xlu0 %v1376_v31 }
 0x500   : > { %1392 = vadd.xlane.f32.xlu1 %v1377_v32 }
 0x57d   : > { %v1379_v47 = vpop.xlane.xlu0 %1378 }
 0x57e   : > { %v1394_v48 = vmul.f32 0.0078125, %v1379_v47 }
 0x580   : > { %v1402_v49 = vadd.f32 1e-05, %v1394_v48 }
 0x581   : > { %v1381_v50 = vpop.xlane.xlu1 %1380  ;;  %v1383_v51 = vpop.xlane.xlu0 %1382 }
 0x582   : > { %8203 = vrsqrt.f32 %v1402_v49  ;;  %v1395_v52 = vmul.f32 0.0078125, %v1381_v50  ;;  %v1396_v53 = vmul.f32 0.0078125, %v1383_v51  ;;  %v7087_v49 = vld [vmem:[#allocation18] ss:$0 sm:$0xff] }
 0x584   : > { %v1403_v54 = vadd.f32 1e-05, %v1395_v52  ;;  %v1404_v55 = vadd.f32 1e-05, %v1396_v53 }
 0x585   : > { %v1385_v56 = vpop.xlane.xlu1 %1384  ;;  %v1387_v57 = vpop.xlane.xlu0 %1386 }
 0x586   : > { %8205 = vrsqrt.f32 %v1403_v54  ;;  %v1397_v58 = vmul.f32 0.0078125, %v1385_v56  ;;  %v1398_v59 = vmul.f32 0.0078125, %v1387_v57 }
 0x587   : > { %8207 = vrsqrt.f32 %v1404_v55 }
 0x588   : > { %v1405_v60 = vadd.f32 1e-05, %v1397_v58  ;;  %v1406_v61 = vadd.f32 1e-05, %v1398_v59 }
 0x589   : > { %v1389_v62 = vpop.xlane.xlu1 %1388  ;;  %v1391_v63 = vpop.xlane.xlu0 %1390 }
 0x58a   : > { %8209 = vrsqrt.f32 %v1405_v60  ;;  %v1399_v0 = vmul.f32 0.0078125, %v1389_v62  ;;  %v1400_v1 = vmul.f32 0.0078125, %v1391_v63 }
 0x58b   : > { %8211 = vrsqrt.f32 %v1406_v61 }
 0x58c   : > { %v8204_v2 = vpop.eup %8203  ;;  %v1407_v3 = vadd.f32 1e-05, %v1399_v0  ;;  %v1408_v4 = vadd.f32 1e-05, %v1400_v1 }
 0x58d   : > { %v1393_v7 = vpop.xlane.xlu1 %1392  ;;  %v1418_v8 = vmul.f32 %v8204_v2, %v9741_v5 }
 0x58e   : > { %8213 = vrsqrt.f32 %v1407_v3  ;;  %v1401_v9 = vmul.f32 0.0078125, %v1393_v7 }
 0x58f   : > { %8215 = vrsqrt.f32 %v1408_v4  ;;  %v1432_v17 = vmul.f32 %v7076_v10, %v1418_v8 }
 0x590   : > { %v8206_v11 = vpop.eup %8205  ;;  %v1409_v12 = vadd.f32 1e-05, %v1401_v9 }
 0x591   : > { %v8208_v15 = vpop.eup %8207  ;;  %v1419_v16 = vmul.f32 %v8206_v11, %v9749_v13  ;;  %v1446_v24 = vadd.f32 %v7077_v18, %v1432_v17 }
 0x592   : > { %8217 = vrsqrt.f32 %v1409_v12  ;;  %v1420_v5 = vmul.f32 %v8208_v15, %v9743_v6 }
 0x593   : > { %v1433_v19 = vmul.f32 %v7076_v10, %v1419_v16 }
 0x594   : > { %v8210_v20 = vpop.eup %8209  ;;  %v1434_v27 = vmul.f32 %v7076_v10, %v1420_v5 }
 0x595   : > { %v8212_v23 = vpop.eup %8211  ;;  %v1447_v25 = vadd.f32 %v7077_v18, %v1433_v19  ;;  %v1421_v26 = vmul.f32 %v8210_v20, %v9751_v14 }
 0x596   : > { %v1422_v28 = vmul.f32 %v8212_v23, %v9757_v21  ;;  %v1448_v35 = vadd.f32 %v7077_v18, %v1434_v27  ;;  %v1887_v27 = vld [vmem:[#allocation2 + $0x4] sm:$0xf] }
 0x597   : > { %v1454_v31 = vpack.c.bf16 %v1447_v25, %v1446_v24  ;;  %v1435_v13 = vmul.f32 %v7076_v10, %v1421_v26 }
 0x598   : > { %v8214_v32 = vpop.eup %8213  ;;  %v1436_v33 = vmul.f32 %v7076_v10, %v1422_v28 }
 0x599   : > { %v8216_v34 = vpop.eup %8215  ;;  %7459 = vmatprep.mubr.bf16.mxu0 %v1454_v31  ;;  %7483 = vmatprep.mubr.bf16.mxu1 %v1454_v31  ;;  %v1449_v36 = vadd.f32 %v7077_v18, %v1435_v13  ;;  %v1423_v6 = vmul.f32 %v8214_v32, %v9759_v22  ;;  %v11357_v22 = vmov 0.0  }
 0x59a   : > { %v1424_v37 = vmul.f32 %v8216_v34, %v9765_v29  ;;  %v1450_v14 = vadd.f32 %v7077_v18, %v1436_v33  ;;  %7497 = vmatprep.subr.bf16.mxu1 %v11357_v22  ;;  %7491 = vmatprep.subr.bf16.mxu0 %v11357_v22  ;;  %v1886_v33 = vld [vmem:[#allocation2] sm:$0xf] }
 0x59b   : > { %v1455_v38 = vpack.c.bf16 %v1449_v36, %v1448_v35  ;;  %v1437_v39 = vmul.f32 %v7076_v10, %v1423_v6  ;;  %v1889_v36 = vld [vmem:[#allocation2 + $0xc] sm:$0xf]  ;;  %v1888_v6 = vld [vmem:[#allocation2 + $0x8] sm:$0xf] }
 0x59c   : > { %v8218_v40 = vpop.eup %8217  ;;  %v1438_v42 = vmul.f32 %v7076_v10, %v1424_v37 }
 0x59d   : > { %7460 = vmatmul.mubr.bf16.vlgmr.msra.gmra.mrb[0].mxu0 %v1455_v38  ;;  %7484 = vmatmul.mubr.bf16.vlgmr.msra.gmra.mrb[0].mxu1 %v1455_v38  ;;  %v1451_v21 = vadd.f32 %v7077_v18, %v1437_v39  ;;  %v1425_v41 = vmul.f32 %v8218_v40, %v9767_v30  ;;  %v7078_v30 = vld [vmem:[#allocation15] ss:$0 sm:$0xff] }
 0x59e   : > { %v1452_v45 = vadd.f32 %v7077_v18, %v1438_v42 }
 0x59f   : > { %v1456_v43 = vpack.c.bf16 %v1451_v21, %v1450_v14  ;;  %v1439_v44 = vmul.f32 %v7076_v10, %v1425_v41  ;;  %v1891_v14 = vld [vmem:[#allocation2 + $0x14] sm:$0xf]  ;;  %v1890_v21 = vld [vmem:[#allocation2 + $0x10] sm:$0xf] }
 0x5a1   : > { %7463 = vmatprep.mubr.bf16.mxu0 %v1456_v43  ;;  %7487 = vmatprep.mubr.bf16.mxu1 %v1456_v43  ;;  %v1453_v46 = vadd.f32 %v7077_v18, %v1439_v44 }
 0x5a3   : > { %v1457_v47 = vpack.c.bf16 %v1453_v46, %v1452_v45  ;;  %v1892_v46 = vld [vmem:[#allocation2 + $0x18] sm:$0xf] }
 0x5a5   : > { %7464 = vmatmul.mubr.bf16.gmra.mrb[4].mxu0 %v1457_v47  ;;  %7488 = vmatmul.mubr.bf16.gmra.mrb[4].mxu1 %v1457_v47 }
 0x5a6   : > { %7499 = vmatprep.mubr.msk.bf16.mxu1 %vm8964_vm3, %v11357_v22  ;;  %7493 = vmatprep.mubr.msk.bf16.mxu0 %vm8964_vm3, %v11357_v22 }
 0x670   : > { %v7461_v29 = vpop.f32.mrb[0].mxu0  ;;  %v7485_v48 = vpop.f32.mrb[0].mxu1 }
 0x671   : > { %v1563_v50 = vpop.f32.mrb[1].mxu0  ;;  %v1699_v51 = vpop.f32.mrb[1].mxu1  ;;  %v1572_v54 = vadd.f32 %v7461_v29, %v7078_v30  ;;  %v1708_v55 = vadd.f32 %v7485_v48, %v7087_v49  ;;  %v1893_v48 = vld [vmem:[#allocation2 + $0x1c] sm:$0xf] }
 0x672   : > { %v7462_v52 = vpop.f32.mrb[2].mxu0  ;;  %v7486_v53 = vpop.f32.mrb[2].mxu1  ;;  %v1564_v60 = vadd.f32 %v7078_v30, %v1563_v50  ;;  %v1700_v61 = vadd.f32 %v7087_v49, %v1699_v51  ;;  %v1894_v51 = vld [vmem:[#allocation2 + $0x20] sm:$0xf] }
 0x673   : > { %v1575_v56 = vadd.f32 %v7462_v52, %v7078_v30  ;;  %v1711_v57 = vadd.f32 %v7486_v53, %v7087_v49  ;;  %v1566_v58 = vpop.f32.mrb[3].mxu0  ;;  %v1702_v59 = vpop.f32.mrb[3].mxu1 }
 0x674   : > { %v1567_v62 = vadd.f32 %v7078_v30, %v1566_v58  ;;  %v1703_v63 = vadd.f32 %v7087_v49, %v1702_v59 }
 0x675   : > { %v9793_v0 = vpack.c.bf16 %v1575_v56, %v1572_v54  ;;  %v9795_v1 = vpack.c.bf16 %v1711_v57, %v1708_v55  ;;  %v1895_v54 = vld [vmem:[#allocation2 + $0x24] sm:$0xf]  ;;  %v1896_v57 = vld [vmem:[#allocation2 + $0x28] sm:$0xf] }
 0x676   : > { %v9797_v2 = vpack.c.bf16 %v1567_v62, %v1564_v60  ;;  %v9799_v3 = vpack.c.bf16 %v1703_v63, %v1700_v61  ;;  %v1897_v61 = vld [vmem:[#allocation2 + $0x2c] sm:$0xf]  ;;  %v1898_v63 = vld [vmem:[#allocation2 + $0x30] sm:$0xf] }
 0x677   : > { %1740 = vrot.lane.b32.xlu1 %v9793_v0, %s8965_s1  ;;  %v1969_v4 = vsel %vm1918_vm4, %v9793_v0, 0 }
 0x678   : > { %7498 = vmatpush3.bf16.xpose.msra.mxu1 %v1969_v4  ;;  %1738 = vrot.lane.b32.xlu0 %v9797_v2, %s8965_s1  ;;  %v7465_v7 = vpop.f32.mrb[4].mxu0  ;;  %v7489_v8 = vpop.f32.mrb[4].mxu1  ;;  %v1923_v9 = vsel %vm1918_vm4, %v9797_v2, 0 }
 0x679   : > { %v1579_v10 = vpop.f32.mrb[5].mxu0  ;;  %v1715_v11 = vpop.f32.mrb[5].mxu1  ;;  %7492 = vmatpush3.bf16.xpose.msra.mxu0 %v1923_v9  ;;  %7509 = vmatprep.subr.bf16.mxu1 %v11357_v22  ;;  %v1588_v16 = vadd.f32 %v7465_v7, %v7078_v30  ;;  %v1724_v17 = vadd.f32 %v7489_v8, %v7087_v49  ;;  %v1899_v7 = vld [vmem:[#allocation2 + $0x34] sm:$0xf] }
 0x67a   : > { %v7466_v12 = vpop.f32.mrb[6].mxu0  ;;  %v7490_v15 = vpop.f32.mrb[6].mxu1  ;;  %7503 = vmatprep.subr.bf16.mxu0 %v11357_v22  ;;  %v1580_v23 = vadd.f32 %v7078_v30, %v1579_v10  ;;  %v1716_v24 = vadd.f32 %v7087_v49, %v1715_v11  ;;  %v1900_v10 = vld [vmem:[#allocation2 + $0x38] sm:$0xf] }
 0x67b   : > { %v1591_v18 = vadd.f32 %v7466_v12, %v7078_v30  ;;  %v1727_v5 = vadd.f32 %v7490_v15, %v7087_v49  ;;  %v1582_v19 = vpop.f32.mrb[7].mxu0  ;;  %v1718_v20 = vpop.f32.mrb[7].mxu1  ;;  %v1901_v15 = vld [vmem:[#allocation2 + $0x3c] sm:$0xf] }
 0x67c   : > { %v1583_v25 = vadd.f32 %v7078_v30, %v1582_v19  ;;  %v1719_v26 = vadd.f32 %v7087_v49, %v1718_v20  ;;  %1746 = vrot.lane.b32.xlu0 %v9797_v2, %s8966_s18 }
 0x67d   : > { %v1733_v28 = vpack.c.bf16 %v1591_v18, %v1588_v16  ;;  %v9813_v31 = vpack.c.bf16 %v1727_v5, %v1724_v17  ;;  %v1902_v18 = vld [vmem:[#allocation2 + $0x40] sm:$0xf] }
 0x67e   : > { %v1732_v13 = vpack.c.bf16 %v1583_v25, %v1580_v23  ;;  %v9815_v32 = vpack.c.bf16 %v1719_v26, %v1716_v24  ;;  %v1903_v23 = vld [vmem:[#allocation2 + $0x44] sm:$0xf]  ;;  %v1904_v25 = vld [vmem:[#allocation2 + $0x48] sm:$0xf] }
 0x67f   : > { %7500 = vmatmul.mubr.msk.bf16.vlgmr.msra.gmra.mrb[8].mxu1 %vm1918_vm4, %v1887_v27  ;;  %v2061_v34 = vsel %vm1918_vm4, %v1733_v28, 0 }
 0x680   : > { %7510 = vmatpush3.bf16.xpose.msra.mxu1 %v2061_v34  ;;  %1750 = vrot.lane.b32.xlu0 %v1732_v13, %s8966_s18  ;;  %v2015_v35 = vsel %vm1918_vm4, %v1732_v13, 0 }
 0x681   : > { %1742 = vrot.lane.b32.xlu1 %v1732_v13, %s8965_s1  ;;  %7494 = vmatmul.mubr.msk.bf16.vlgmr.msra.gmra.mrb[8].mxu0 %vm1918_vm4, %v1886_v33 }
 0x682   : > { %7504 = vmatpush3.bf16.xpose.msra.mxu0 %v2015_v35  ;;  %7511 = vmatprep.mubr.msk.bf16.mxu1 %vm8964_vm3, %v11357_v22  ;;  %v1906_v35 = vld [vmem:[#allocation2 + $0x50] sm:$0xf] }
 0x683   : > { %7505 = vmatprep.mubr.msk.bf16.mxu0 %vm8964_vm3, %v11357_v22  ;;  %7521 = vmatprep.subr.bf16.mxu1 %v11357_v22 }
 0x684   : > { %1754 = vrot.lane.b32.xlu0 %v9797_v2, %s8967_s5  ;;  %7515 = vmatprep.subr.bf16.mxu0 %v11357_v22 }
 0x685   : > { %1744 = vrot.lane.b32.xlu1 %v1733_v28, %s8965_s1 }
 0x687   : > { %7512 = vmatmul.mubr.msk.bf16.vlgmr.msra.gmra.mrb[12].mxu1 %vm1918_vm4, %v1889_v36 }
 0x688   : > { %1758 = vrot.lane.b32.xlu0 %v1732_v13, %s8967_s5  ;;  %7523 = vmatprep.mubr.msk.bf16.mxu1 %vm8964_vm3, %v11357_v22 }
 0x689   : > { %1748 = vrot.lane.b32.xlu1 %v9793_v0, %s8966_s18  ;;  %7506 = vmatmul.mubr.msk.bf16.vlgmr.msra.gmra.mrb[12].mxu0 %vm1918_vm4, %v1888_v6 }
 0x68a   : > { %7517 = vmatprep.mubr.msk.bf16.mxu0 %vm8964_vm3, %v11357_v22 }
 0x68c   : > { %1762 = vrot.lane.b32.xlu0 %v9797_v2, %s8968_s7 }
 0x68d   : > { %1752 = vrot.lane.b32.xlu1 %v1733_v28, %s8966_s18 }
 0x690   : > { %1770 = vrot.lane.b32.xlu0 %v9797_v2, %s8969_s9 }
 0x691   : > { %1756 = vrot.lane.b32.xlu1 %v9793_v0, %s8967_s5 }
 0x694   : > { %1766 = vrot.lane.b32.xlu0 %v1732_v13, %s8968_s7 }
 0x695   : > { %1760 = vrot.lane.b32.xlu1 %v1733_v28, %s8967_s5 }
 0x698   : > { %1778 = vrot.lane.b32.xlu0 %v9797_v2, %s8970_s20 }
 0x699   : > { %1764 = vrot.lane.b32.xlu1 %v9793_v0, %s8968_s7 }
 0x69c   : > { %1786 = vrot.lane.b32.xlu0 %v9797_v2, %s8971_s27 }
 0x69d   : > { %1768 = vrot.lane.b32.xlu1 %v1733_v28, %s8968_s7 }
 0x6a0   : > { %1802 = vrot.lane.b32.xlu0 %v9799_v3, %s8965_s1 }
 0x6a1   : > { %1772 = vrot.lane.b32.xlu1 %v9793_v0, %s8969_s9 }
 0x6a4   : > { %1774 = vrot.lane.b32.xlu0 %v1732_v13, %s8969_s9 }
 0x6a5   : > { %1776 = vrot.lane.b32.xlu1 %v1733_v28, %s8969_s9 }
 0x6a8   : > { %1814 = vrot.lane.b32.xlu0 %v9799_v3, %s8966_s18 }
 0x6a9   : > { %1780 = vrot.lane.b32.xlu1 %v9793_v0, %s8970_s20 }
 0x6ac   : > { %1782 = vrot.lane.b32.xlu0 %v1732_v13, %s8970_s20 }
 0x6ad   : > { %1784 = vrot.lane.b32.xlu1 %v1733_v28, %s8970_s20 }
 0x6b0   : > { %1790 = vrot.lane.b32.xlu0 %v1732_v13, %s8971_s27  ;;  %v1905_v13 = vld [vmem:[#allocation2 + $0x4c] sm:$0xf] }
 0x6b1   : > { %1788 = vrot.lane.b32.xlu1 %v9793_v0, %s8971_s27 }
 0x6b4   : > { %1806 = vrot.lane.b32.xlu0 %v9815_v32, %s8965_s1 }
 0x6b5   : > { %1792 = vrot.lane.b32.xlu1 %v1733_v28, %s8971_s27 }
 0x6b8   : > { %1818 = vrot.lane.b32.xlu0 %v9815_v32, %s8966_s18 }
 0x6b9   : > { %1804 = vrot.lane.b32.xlu1 %v9795_v1, %s8965_s1 }
 0x6bd   : > { %1808 = vrot.lane.b32.xlu1 %v9813_v31, %s8965_s1 }
 0x6c1   : > { %1816 = vrot.lane.b32.xlu1 %v9795_v1, %s8966_s18 }
 0x6c5   : > { %1820 = vrot.lane.b32.xlu1 %v9813_v31, %s8966_s18 }
 0x6e9   : > { %v1741_v37 = vpop.permute.xlu1 %1740 }
 0x6ea   : > { %v2153_v38 = vsel %vm1918_vm4, %v1741_v37, 0  ;;  %v1739_v39 = vpop.permute.xlu0 %1738  ;;  %v1907_v37 = vld [vmem:[#allocation2 + $0x54] sm:$0xf] }
 0x6eb   : > { %v2107_v40 = vsel %vm1918_vm4, %v1739_v39, 0  ;;  %7522 = vmatpush3.bf16.xpose.msra.mxu1 %v2153_v38  ;;  %v1908_v39 = vld [vmem:[#allocation2 + $0x58] sm:$0xf] }
 0x6ec   : > { %7516 = vmatpush3.bf16.xpose.msra.mxu0 %v2107_v40  ;;  %7533 = vmatprep.subr.bf16.mxu1 %v11357_v22 }
 0x6ed   : > { %7527 = vmatprep.subr.bf16.mxu0 %v11357_v22 }
 0x6ee   : > { %v1747_v43 = vpop.permute.xlu0 %1746 }
 0x6ef   : > { %v2291_v29 = vsel %vm1918_vm4, %v1747_v43, 0 }
 0x6f2   : > { %7524 = vmatmul.mubr.msk.bf16.vlgmr.msra.gmra.mrb[16].mxu1 %vm1918_vm4, %v1891_v14  ;;  %v1751_v47 = vpop.permute.xlu0 %1750 }
 0x6f3   : > { %v1743_v41 = vpop.permute.xlu1 %1742  ;;  %7518 = vmatmul.mubr.msk.bf16.vlgmr.msra.gmra.mrb[16].mxu0 %vm1918_vm4, %v1890_v21  ;;  %7535 = vmatprep.mubr.msk.bf16.mxu1 %vm8964_vm3, %v11357_v22  ;;  %v2383_v52 = vsel %vm1918_vm4, %v1751_v47, 0  ;;  %v1911_v47 = vld [vmem:[#allocation2 + $0x64] sm:$0xf] }
 0x6f4   : > { %v2199_v42 = vsel %vm1918_vm4, %v1743_v41, 0  ;;  %7529 = vmatprep.mubr.msk.bf16.mxu0 %vm8964_vm3, %v11357_v22  ;;  %v1909_v41 = vld [vmem:[#allocation2 + $0x5c] sm:$0xf] }
 0x6f5   : > { %7528 = vmatpush3.bf16.xpose.msra.mxu0 %v2199_v42 }
 0x6f6   : > { %7539 = vmatprep.subr.bf16.mxu0 %v11357_v22  ;;  %v1755_v50 = vpop.permute.xlu0 %1754 }
 0x6f7   : > { %v1745_v44 = vpop.permute.xlu1 %1744  ;;  %v2475_v58 = vsel %vm1918_vm4, %v1755_v50, 0  ;;  %v1913_v50 = vld [vmem:[#allocation2 + $0x6c] sm:$0xf] }
 0x6f8   : > { %v2245_v45 = vsel %vm1918_vm4, %v1745_v44, 0  ;;  %v1910_v44 = vld [vmem:[#allocation2 + $0x60] sm:$0xf] }
 0x6f9   : > { %7534 = vmatpush3.bf16.xpose.msra.mxu1 %v2245_v45 }
 0x6fa   : > { %7545 = vmatprep.subr.bf16.mxu1 %v11357_v22  ;;  %v1759_v55 = vpop.permute.xlu0 %1758 }
 0x6fb   : > { %v1749_v30 = vpop.permute.xlu1 %1748  ;;  %v2567_v2 = vsel %vm1918_vm4, %v1759_v55, 0 }
 0x6fc   : > { %7530 = vmatmul.mubr.msk.bf16.vlgmr.msra.gmra.mrb[20].mxu0 %vm1918_vm4, %v1892_v46  ;;  %v2337_v49 = vsel %vm1918_vm4, %v1749_v30, 0  ;;  %v1912_v30 = vld [vmem:[#allocation2 + $0x68] sm:$0xf] }
 0x6fd   : > { %7540 = vmatpush3.bf16.xpose.msra.mxu0 %v2291_v29  ;;  %7541 = vmatprep.mubr.msk.bf16.mxu0 %vm8964_vm3, %v11357_v22 }
 0x6fe   : > { %7551 = vmatprep.subr.bf16.mxu0 %v11357_v22  ;;  %v1763_v59 = vpop.permute.xlu0 %1762 }
 0x6ff   : > { %v1753_v53 = vpop.permute.xlu1 %1752  ;;  %v2659_v11 = vsel %vm1918_vm4, %v1763_v59, 0 }
 0x700   : > { %7536 = vmatmul.mubr.msk.bf16.vlgmr.msra.gmra.mrb[20].mxu1 %vm1918_vm4, %v1893_v48  ;;  %v2429_v56 = vsel %vm1918_vm4, %v1753_v53, 0  ;;  %v1914_v53 = vld [vmem:[#allocation2 + $0x70] sm:$0xf] }
 0x701   : > { %7546 = vmatpush3.bf16.xpose.msra.mxu1 %v2337_v49  ;;  %7547 = vmatprep.mubr.msk.bf16.mxu1 %vm8964_vm3, %v11357_v22 }
 0x702   : > { %7557 = vmatprep.subr.bf16.mxu1 %v11357_v22  ;;  %v1771_v0 = vpop.permute.xlu0 %1770 }
 0x703   : > { %v1757_v60 = vpop.permute.xlu1 %1756  ;;  %v2843_v27 = vsel %vm1918_vm4, %v1771_v0, 0 }
 0x704   : > { %7542 = vmatmul.mubr.msk.bf16.vlgmr.msra.gmra.mrb[24].mxu0 %vm1918_vm4, %v1894_v51  ;;  %v2521_v62 = vsel %vm1918_vm4, %v1757_v60, 0 }
 0x705   : > { %7552 = vmatpush3.bf16.xpose.msra.mxu0 %v2383_v52  ;;  %7553 = vmatprep.mubr.msk.bf16.mxu0 %vm8964_vm3, %v11357_v22 }
 0x706   : > { %7563 = vmatprep.subr.bf16.mxu0 %v11357_v22  ;;  %v1767_v9 = vpop.permute.xlu0 %1766 }
 0x707   : > { %v1761_v4 = vpop.permute.xlu1 %1760  ;;  %v2751_v5 = vsel %vm1918_vm4, %v1767_v9, 0 }
 0x708   : > { %7548 = vmatmul.mubr.msk.bf16.vlgmr.msra.gmra.mrb[24].mxu1 %vm1918_vm4, %v1895_v54  ;;  %v2613_v8 = vsel %vm1918_vm4, %v1761_v4, 0 }
 0x709   : > { %7558 = vmatpush3.bf16.xpose.msra.mxu1 %v2429_v56  ;;  %7559 = vmatprep.mubr.msk.bf16.mxu1 %vm8964_vm3, %v11357_v22 }
 0x70a   : > { %7569 = vmatprep.subr.bf16.mxu1 %v11357_v22  ;;  %v1779_v16 = vpop.permute.xlu0 %1778 }
 0x70b   : > { %v1765_v12 = vpop.permute.xlu1 %1764  ;;  %v3027_v14 = vsel %vm1918_vm4, %v1779_v16, 0  ;;  %v1917_v16 = vld [vmem:[#allocation2 + $0x7c] sm:$0xf] }
 0x70c   : > { %7554 = vmatmul.mubr.msk.bf16.vlgmr.msra.gmra.mrb[28].mxu0 %vm1918_vm4, %v1896_v57  ;;  %v2705_v17 = vsel %vm1918_vm4, %v1765_v12, 0 }
 0x70d   : > { %7564 = vmatpush3.bf16.xpose.msra.mxu0 %v2475_v58  ;;  %7565 = vmatprep.mubr.msk.bf16.mxu0 %vm8964_vm3, %v11357_v22 }
 0x70e   : > { %7575 = vmatprep.subr.bf16.mxu0 %v11357_v22  ;;  %v9951_v20 = vpop.permute.xlu0 %1786 }
 0x70f   : > { %v1769_v19 = vpop.permute.xlu1 %1768  ;;  %v3211_v48 = vsel %vm1918_vm4, %v9951_v20, 0 }
 0x710   : > { %7560 = vmatmul.mubr.msk.bf16.vlgmr.msra.gmra.mrb[28].mxu1 %vm1918_vm4, %v1897_v61  ;;  %v2797_v24 = vsel %vm1918_vm4, %v1769_v19, 0  ;;  %v1915_v61 = vld [vmem:[#allocation2 + $0x74] sm:$0xf] }
 0x711   : > { %7570 = vmatpush3.bf16.xpose.msra.mxu1 %v2521_v62  ;;  %7571 = vmatprep.mubr.msk.bf16.mxu1 %vm8964_vm3, %v11357_v22 }
 0x712   : > { %7581 = vmatprep.subr.bf16.mxu1 %v11357_v22  ;;  %v9961_v26 = vpop.permute.xlu0 %1802 }
 0x713   : > { %v1773_v28 = vpop.permute.xlu1 %1772 }
 0x714   : > { %7566 = vmatmul.mubr.msk.bf16.vlgmr.msra.gmra.mrb[32].mxu0 %vm1918_vm4, %v1898_v63  ;;  %v2889_v33 = vsel %vm1918_vm4, %v1773_v28, 0 }
 0x715   : > { %7576 = vmatpush3.bf16.xpose.msra.mxu0 %v2567_v2  ;;  %7577 = vmatprep.mubr.msk.bf16.mxu0 %vm8964_vm3, %v11357_v22 }
 0x716   : > { %7587 = vmatprep.subr.bf16.mxu0 %v11357_v22  ;;  %v1775_v34 = vpop.permute.xlu0 %1774 }
 0x717   : > { %v2935_v36 = vsel %vm1918_vm4, %v1775_v34, 0  ;;  %v1777_v6 = vpop.permute.xlu1 %1776 }
 0x718   : > { %7572 = vmatmul.mubr.msk.bf16.vlgmr.msra.gmra.mrb[32].mxu1 %vm1918_vm4, %v1899_v7  ;;  %v2981_v38 = vsel %vm1918_vm4, %v1777_v6, 0 }
 0x719   : > { %7582 = vmatpush3.bf16.xpose.msra.mxu1 %v2613_v8  ;;  %7583 = vmatprep.mubr.msk.bf16.mxu1 %vm8964_vm3, %v11357_v22  ;;  %v1916_v8 = vld [vmem:[#allocation2 + $0x78] sm:$0xf] }
 0x71a   : > { %7593 = vmatprep.subr.bf16.mxu1 %v11357_v22  ;;  %v9983_v40 = vpop.permute.xlu0 %1814 }
 0x71b   : > { %v1781_v21 = vpop.permute.xlu1 %1780 }
 0x71c   : > { %7578 = vmatmul.mubr.msk.bf16.vlgmr.msra.gmra.mrb[36].mxu0 %vm1918_vm4, %v1900_v10  ;;  %v3073_v42 = vsel %vm1918_vm4, %v1781_v21, 0 }
 0x71d   : > { %7588 = vmatpush3.bf16.xpose.msra.mxu0 %v2659_v11  ;;  %7589 = vmatprep.mubr.msk.bf16.mxu0 %vm8964_vm3, %v11357_v22 }
 0x71e   : > { %7599 = vmatprep.subr.bf16.mxu0 %v11357_v22  ;;  %v1783_v43 = vpop.permute.xlu0 %1782 }
 0x71f   : > { %v3119_v45 = vsel %vm1918_vm4, %v1783_v43, 0  ;;  %v1785_v46 = vpop.permute.xlu1 %1784 }
 0x720   : > { %7584 = vmatmul.mubr.msk.bf16.vlgmr.msra.gmra.mrb[36].mxu1 %vm1918_vm4, %v1901_v15  ;;  %v3165_v29 = vsel %vm1918_vm4, %v1785_v46, 0 }
 0x721   : > { %7594 = vmatpush3.bf16.xpose.msra.mxu1 %v2705_v17  ;;  %7595 = vmatprep.mubr.msk.bf16.mxu1 %vm8964_vm3, %v11357_v22 }
 0x722   : > { %7605 = vmatprep.subr.bf16.mxu1 %v11357_v22  ;;  %v1791_v52 = vpop.permute.xlu0 %1790 }
 0x723   : > { %v1789_v49 = vpop.permute.xlu1 %1788  ;;  %v3303_v58 = vsel %vm1918_vm4, %v1791_v52, 0 }
 0x724   : > { %7590 = vmatmul.mubr.msk.bf16.vlgmr.msra.gmra.mrb[40].mxu0 %vm1918_vm4, %v1902_v18  ;;  %v3257_v51 = vsel %vm1918_vm4, %v1789_v49, 0 }
 0x725   : > { %7600 = vmatpush3.bf16.xpose.msra.mxu0 %v2751_v5  ;;  %7601 = vmatprep.mubr.msk.bf16.mxu0 %vm8964_vm3, %v11357_v22 }
 0x726   : > { %7611 = vmatprep.subr.bf16.mxu0 %v11357_v22 }
 0x727   : > { %v1793_v55 = vpop.permute.xlu1 %1792 }
 0x728   : > { %7596 = vmatmul.mubr.msk.bf16.vlgmr.msra.gmra.mrb[40].mxu1 %vm1918_vm4, %v1903_v23  ;;  %v3349_v7 = vsel %vm1918_vm4, %v1793_v55, 0  ;;  %v8972_v23 = vmov 0  }
 0x729   : > { %7606 = vmatpush3.bf16.xpose.msra.mxu1 %v2797_v24  ;;  %7607 = vmatprep.mubr.msk.bf16.mxu1 %vm8964_vm3, %v11357_v22 }
 0x72a   : > { %7617 = vmatprep.subr.bf16.mxu1 %v11357_v22  ;;  %8185 = vset.pattern.permute.xlu1 %v8972_v23 }
 0x72b   : > { %8186 = vset.pattern.permute.xlu0 %v8972_v23 }
 0x72c   : > { %7602 = vmatmul.mubr.msk.bf16.vlgmr.msra.gmra.mrb[44].mxu0 %vm1918_vm4, %v1904_v25 }
 0x72d   : > { %7612 = vmatpush3.bf16.xpose.msra.mxu0 %v2843_v27  ;;  %7613 = vmatprep.mubr.msk.bf16.mxu0 %vm8964_vm3, %v11357_v22 }
 0x72e   : > { %7623 = vmatprep.subr.bf16.mxu0 %v11357_v22 }
 0x730   : > { %7608 = vmatmul.mubr.msk.bf16.vlgmr.msra.gmra.mrb[44].mxu1 %vm1918_vm4, %v1905_v13 }
 0x731   : > { %7618 = vmatpush3.bf16.xpose.msra.mxu1 %v2889_v33  ;;  %7619 = vmatprep.mubr.msk.bf16.mxu1 %vm8964_vm3, %v11357_v22 }
 0x732   : > { %7629 = vmatprep.subr.bf16.mxu1 %v11357_v22 }
 0x734   : > { %7614 = vmatmul.mubr.msk.bf16.vlgmr.msra.gmra.mrb[48].mxu0 %vm1918_vm4, %v1906_v35 }
 0x735   : > { %7624 = vmatpush3.bf16.xpose.msra.mxu0 %v2935_v36  ;;  %7625 = vmatprep.mubr.msk.bf16.mxu0 %vm8964_vm3, %v11357_v22 }
 0x736   : > { %7635 = vmatprep.subr.bf16.mxu0 %v11357_v22 }
 0x738   : > { %7620 = vmatmul.mubr.msk.bf16.vlgmr.msra.gmra.mrb[48].mxu1 %vm1918_vm4, %v1907_v37  ;;  %v10060_v37 = vpop.permute.xlu1 %1804 }
 0x739   : > { %7630 = vmatpush3.bf16.xpose.msra.mxu1 %v2981_v38  ;;  %7631 = vmatprep.mubr.msk.bf16.mxu1 %vm8964_vm3, %v11357_v22 }
 0x73a   : > { %7641 = vmatprep.subr.bf16.mxu1 %v11357_v22 }
 0x73c   : > { %7626 = vmatmul.mubr.msk.bf16.vlgmr.msra.gmra.mrb[52].mxu0 %vm1918_vm4, %v1908_v39 }
 0x73d   : > { %7636 = vmatpush3.bf16.xpose.msra.mxu0 %v3027_v14  ;;  %7637 = vmatprep.mubr.msk.bf16.mxu0 %vm8964_vm3, %v11357_v22 }
 0x73e   : > { %7647 = vmatprep.subr.bf16.mxu0 %v11357_v22 }
 0x740   : > { %7632 = vmatmul.mubr.msk.bf16.vlgmr.msra.gmra.mrb[52].mxu1 %vm1918_vm4, %v1909_v41 }
 0x741   : > { %7642 = vmatpush3.bf16.xpose.msra.mxu1 %v3073_v42  ;;  %7643 = vmatprep.mubr.msk.bf16.mxu1 %vm8964_vm3, %v11357_v22  ;;  %v10066_v42 = vpop.permute.xlu1 %1808 }
 0x742   : > { %7653 = vmatprep.subr.bf16.mxu1 %v11357_v22 }
 0x744   : > { %7638 = vmatmul.mubr.msk.bf16.vlgmr.msra.gmra.mrb[56].mxu0 %vm1918_vm4, %v1910_v44 }
 0x745   : > { %7648 = vmatpush3.bf16.xpose.msra.mxu0 %v3119_v45  ;;  %7649 = vmatprep.mubr.msk.bf16.mxu0 %vm8964_vm3, %v11357_v22  ;;  %v10076_v49 = vpop.permute.xlu1 %1816 }
 0x746   : > { %7659 = vmatprep.subr.bf16.mxu0 %v11357_v22 }
 0x748   : > { %7644 = vmatmul.mubr.msk.bf16.vlgmr.msra.gmra.mrb[56].mxu1 %vm1918_vm4, %v1911_v47 }
 0x749   : > { %7654 = vmatpush3.bf16.xpose.msra.mxu1 %v3165_v29  ;;  %7655 = vmatprep.mubr.msk.bf16.mxu1 %vm8964_vm3, %v11357_v22  ;;  %v10072_v29 = vpop.permute.xlu0 %1806 }
 0x74a   : > { %7665 = vmatprep.subr.bf16.mxu1 %v11357_v22 }
 0x74c   : > { %7650 = vmatmul.mubr.msk.bf16.vlgmr.msra.gmra.mrb[60].mxu0 %vm1918_vm4, %v1912_v30 }
 0x74d   : > { %7660 = vmatpush3.bf16.xpose.msra.mxu0 %v3211_v48  ;;  %7661 = vmatprep.mubr.msk.bf16.mxu0 %vm8964_vm3, %v11357_v22 }
 0x74e   : > { %7671 = vmatprep.subr.bf16.mxu0 %v11357_v22 }
 0x750   : > { %7656 = vmatmul.mubr.msk.bf16.vlgmr.msra.gmra.mrb[60].mxu1 %vm1918_vm4, %v1913_v50 }
 0x751   : > { %7666 = vmatpush3.bf16.xpose.msra.mxu1 %v3257_v51  ;;  %7667 = vmatprep.mubr.msk.bf16.mxu1 %vm8964_vm3, %v11357_v22 }
 0x752   : > { %v10015_v54 = vpop.f32.mrb[8].mxu1  ;;  %7677 = vmatprep.subr.bf16.mxu1 %v11357_v22 }
 0x753   : > { %v3426_v56 = vsel %vm1918_vm4, %v10015_v54, -inf  ;;  %v7501_v57 = vpop.f32.mrb[9].mxu1 }
 0x754   : > { %3427 = vmax.xlane.f32.xlu0 %v3426_v56  ;;  %7662 = vmatmul.mubr.msk.bf16.vlgmr.msra.gmra.mrb[64].mxu0 %vm1918_vm4, %v1914_v53  ;;  %v10022_v59 = vpop.f32.mrb[8].mxu0  ;;  %v2008_v60 = vpop.f32.mrb[10].mxu1 }
 0x755   : > { %7672 = vmatpush3.bf16.xpose.msra.mxu0 %v3303_v58  ;;  %7673 = vmatprep.mubr.msk.bf16.mxu0 %vm8964_vm3, %v11357_v22  ;;  %v7495_v62 = vpop.f32.mrb[9].mxu0  ;;  %v3423_v63 = vsel %vm1918_vm4, %v10022_v59, -inf  ;;  %v7502_v0 = vpop.f32.mrb[11].mxu1 }
 0x756   : > { %7683 = vmatprep.subr.bf16.mxu0 %v11357_v22  ;;  %v1962_v2 = vpop.f32.mrb[10].mxu0  ;;  %3424 = vmax.xlane.f32.xlu1 %v3423_v63  ;;  %v10082_v56 = vpop.permute.xlu0 %1818  ;;  %v10088_v62 = vld [vmem:[#allocation3 + $0x8] sm:$0xff] }
 0x757   : > { %v7496_v4 = vpop.f32.mrb[11].mxu0 }
 0x758   : > { %7668 = vmatmul.mubr.msk.bf16.vlgmr.msra.gmra.mrb[64].mxu1 %vm1918_vm4, %v1915_v61  ;;  %v10086_v61 = vpop.permute.xlu1 %1820 }
 0x759   : > { %7678 = vmatpush3.bf16.xpose.msra.mxu1 %v3349_v7  ;;  %7679 = vmatprep.mubr.msk.bf16.mxu1 %vm8964_vm3, %v11357_v22  ;;  %v10092_v7 = vld [vmem:[#allocation3] sm:$0xff] }
 0x75a   : > { %7689 = vmatprep.subr.bf16.mxu1 %v11357_v22  ;;  %v10034_v9 = vpop.f32.mrb[12].mxu1 }
 0x75b   : > { %v3432_v10 = vsel %vm1918_vm4, %v10034_v9, -inf  ;;  %v7513_v11 = vpop.f32.mrb[13].mxu1 }
 0x75c   : > { %7674 = vmatmul.mubr.msk.bf16.vlgmr.msra.gmra.mrb[68].mxu0 %vm1918_vm4, %v1916_v8  ;;  %3433 = vmax.xlane.f32.xlu0 %v3432_v10  ;;  %v10039_v12 = vpop.f32.mrb[12].mxu0  ;;  %v2100_v15 = vpop.f32.mrb[14].mxu1 }
 0x75d   : > { %7684 = vmatpush3.bf16.msra.mxu0 %v9799_v3  ;;  %v3429_v17 = vsel %vm1918_vm4, %v10039_v12, -inf  ;;  %v7514_v18 = vpop.f32.mrb[15].mxu1  ;;  %v7507_v5 = vpop.f32.mrb[13].mxu0  ;;  %7685 = vmatprep.mubr.msk.bf16.mxu0 %vm8964_vm3, %v11357_v22 }
 0x75e   : > { %v2054_v19 = vpop.f32.mrb[14].mxu0  ;;  %7695 = vmatprep.subr.bf16.mxu0 %v11357_v22 }
 0x75f   : > { %v7508_v20 = vpop.f32.mrb[15].mxu0 }
 0x760   : > { %7680 = vmatmul.mubr.msk.bf16.vlgmr.msra.gmra.mrb[68].mxu1 %vm1918_vm4, %v1917_v16  ;;  %3430 = vmax.xlane.f32.xlu0 %v3429_v17 }
 0x761   : > { %7690 = vmatpush3.bf16.msra.mxu1 %v9795_v1  ;;  %7691 = vmatprep.mubr.msk.bf16.mxu1 %vm8964_vm3, %v11357_v22 }
 0x762   : > { %7701 = vmatprep.subr.bf16.mxu1 %v11357_v22 }
 0x7c5   : > { %v10052_v24 = vpop.f32.mrb[16].mxu1 }
 0x7c6   : > { %v7525_v25 = vpop.f32.mrb[17].mxu1  ;;  %v10054_v27 = vpop.f32.mrb[16].mxu0  ;;  %v3438_v28 = vsel %vm1918_vm4, %v10052_v24, -inf }
 0x7c7   : > { %v2192_v13 = vpop.f32.mrb[18].mxu1  ;;  %3439 = vmax.xlane.f32.xlu0 %v3438_v28  ;;  %v7519_v33 = vpop.f32.mrb[17].mxu0  ;;  %v3435_v34 = vsel %vm1918_vm4, %v10054_v27, -inf }
 0x7c8   : > { %v7526_v35 = vpop.f32.mrb[19].mxu1  ;;  %v2146_v36 = vpop.f32.mrb[18].mxu0  ;;  %3436 = vmax.xlane.f32.xlu1 %v3435_v34  ;;  %v10117_v13 = vld [vmem:[#allocation3 + $0x18] sm:$0xff] }
 0x7c9   : > { %v7520_v6 = vpop.f32.mrb[19].mxu0  ;;  %11467 = vst [vmem:[#allocation49_spill] sm:$0xff] %v10117_v13 }
 0x7cf   : > { %v10062_v38 = vpop.f32.mrb[20].mxu0 }
 0x7d0   : > { %v3441_v39 = vsel %vm1918_vm4, %v10062_v38, -inf  ;;  %v7531_v14 = vpop.f32.mrb[21].mxu0 }
 0x7d1   : > { %3442 = vmax.xlane.f32.xlu1 %v3441_v39  ;;  %v2238_v21 = vpop.f32.mrb[22].mxu0  ;;  %v10122_v39 = vld [vmem:[#allocation3 + $0x10] sm:$0xff] }
 0x7d2   : > { %v7532_v41 = vpop.f32.mrb[23].mxu0  ;;  %11468 = vst [vmem:[#allocation50_spill] sm:$0xff] %v10122_v39 }
 0x7d3   : > { %v10068_v43 = vpop.f32.mrb[20].mxu1 }
 0x7d4   : > { %v7537_v44 = vpop.f32.mrb[21].mxu1  ;;  %v3444_v45 = vsel %vm1918_vm4, %v10068_v43, -inf }
 0x7d5   : > { %v2284_v46 = vpop.f32.mrb[22].mxu1  ;;  %3445 = vmax.xlane.f32.xlu0 %v3444_v45 }
 0x7d6   : > { %v7538_v47 = vpop.f32.mrb[23].mxu1 }
 0x7d7   : > { %v10074_v30 = vpop.f32.mrb[24].mxu0 }
 0x7d8   : > { %v7543_v48 = vpop.f32.mrb[25].mxu0  ;;  %v3447_v60 = vsel %vm1918_vm4, %v10074_v30, -inf }
 0x7d9   : > { %v2330_v50 = vpop.f32.mrb[26].mxu0 }
 0x7da   : > { %v7544_v51 = vpop.f32.mrb[27].mxu0 }
 0x7db   : > { %v10078_v52 = vpop.f32.mrb[24].mxu1 }
 0x7dc   : > { %v7549_v53 = vpop.f32.mrb[25].mxu1  ;;  %v3450_v55 = vsel %vm1918_vm4, %v10078_v52, -inf }
 0x7dd   : > { %v2376_v57 = vpop.f32.mrb[26].mxu1  ;;  %3451 = vmax.xlane.f32.xlu0 %v3450_v55 }
 0x7de   : > { %v7550_v58 = vpop.f32.mrb[27].mxu1 }
 0x7df   : > { %v10090_v63 = vpop.f32.mrb[28].mxu0 }
 0x7e0   : > { %v7555_v0 = vpop.f32.mrb[29].mxu0  ;;  %v3453_v23 = vsel %vm1918_vm4, %v10090_v63, -inf }
 0x7e1   : > { %3448 = vmax.xlane.f32.xlu0 %v3447_v60  ;;  %v3428_v2 = vpop.xlane.xlu0 %3427  ;;  %v2422_v4 = vpop.f32.mrb[30].mxu0 }
 0x7e2   : > { %v10095_v8 = vmax.f32 %v10088_v62, %v3428_v2  ;;  %v7556_v10 = vpop.f32.mrb[31].mxu0 }
 0x7e3   : > { %v10097_v11 = vpop.f32.mrb[28].mxu1  ;;  %v3425_v15 = vpop.xlane.xlu1 %3424 }
 0x7e4   : > { %5825 = vst.msk [vmem:[#allocation3 + $0x8] sm:$0xff] %vm4095_vm5, %v10095_v8  ;;  %v7561_v17 = vpop.f32.mrb[29].mxu1  ;;  %v3456_v18 = vsel %vm1918_vm4, %v10097_v11, -inf  ;;  %3654 = vperm.xlu1 %8185, %v10095_v8   ;;  %v10107_v5 = vmax.f32 %v10092_v7, %v3425_v15 }
 0x7e5   : > { %v2468_v19 = vpop.f32.mrb[30].mxu1  ;;  %3457 = vmax.xlane.f32.xlu0 %v3456_v18 }
 0x7e6   : > { %v7562_v20 = vpop.f32.mrb[31].mxu1  ;;  %5824 = vst.msk [vmem:[#allocation3] sm:$0xff] %vm4095_vm5, %v10107_v5 }
 0x7e7   : > { %v10115_v28 = vpop.f32.mrb[32].mxu0 }
 0x7e8   : > { %v7567_v33 = vpop.f32.mrb[33].mxu0 }
 0x7e9   : > { %3454 = vmax.xlane.f32.xlu0 %v3453_v23  ;;  %v3434_v34 = vpop.xlane.xlu0 %3433  ;;  %v2514_v35 = vpop.f32.mrb[34].mxu0 }
 0x7ea   : > { %v10120_v36 = vmax.f32 %v10117_v13, %v3434_v34  ;;  %v7568_v6 = vpop.f32.mrb[35].mxu0 }
 0x7eb   : > { %v10124_v14 = vpop.f32.mrb[32].mxu1 }
 0x7ec   : > { %5827 = vst.msk [vmem:[#allocation3 + $0x18] sm:$0xff] %vm4095_vm5, %v10120_v36  ;;  %v7573_v21 = vpop.f32.mrb[33].mxu1 }
 0x7ed   : > { %v3431_v41 = vpop.xlane.xlu0 %3430  ;;  %v2560_v44 = vpop.f32.mrb[34].mxu1  ;;  %v3459_v21 = vsel %vm1918_vm4, %v10115_v28, -inf }
 0x7ee   : > { %v10129_v45 = vmax.f32 %v10122_v39, %v3431_v41  ;;  %v7574_v46 = vpop.f32.mrb[35].mxu1 }
 0x7ef   : > { %v10131_v47 = vpop.f32.mrb[36].mxu0 }
 0x7f0   : > { %11469 = vst [vmem:[#allocation51_spill] sm:$0xff] %v10129_v45  ;;  %5826 = vst.msk [vmem:[#allocation3 + $0x10] sm:$0xff] %vm4095_vm5, %v10129_v45  ;;  %v7579_v50 = vpop.f32.mrb[37].mxu0 }
 0x7f1   : > { %v2606_v51 = vpop.f32.mrb[38].mxu0 }
 0x7f2   : > { %v7580_v53 = vpop.f32.mrb[39].mxu0 }
 0x7f3   : > { %v10137_v55 = vpop.f32.mrb[36].mxu1 }
 0x7f4   : > { %v7585_v57 = vpop.f32.mrb[37].mxu1 }
 0x7f5   : > { %v2652_v58 = vpop.f32.mrb[38].mxu1 }
 0x7f6   : > { %v7586_v60 = vpop.f32.mrb[39].mxu1 }
 0x7f7   : > { %v10139_v0 = vpop.f32.mrb[40].mxu0 }
 0x7f8   : > { %v7591_v2 = vpop.f32.mrb[41].mxu0 }
 0x7f9   : > { %v2698_v4 = vpop.f32.mrb[42].mxu0 }
 0x7fa   : > { %v7592_v10 = vpop.f32.mrb[43].mxu0 }
 0x7fb   : > { %v10141_v15 = vpop.f32.mrb[40].mxu1 }
 0x7fc   : > { %v7597_v17 = vpop.f32.mrb[41].mxu1 }
 0x7fd   : > { %v2744_v18 = vpop.f32.mrb[42].mxu1 }
 0x7fe   : > { %v7598_v19 = vpop.f32.mrb[43].mxu1 }
 0x7ff   : > { %3649 = vperm.xlu0 %8186, %v10107_v5   ;;  %v10144_v20 = vpop.f32.mrb[44].mxu0 }
 0x800   : > { %v7603_v23 = vpop.f32.mrb[45].mxu0 }
 0x801   : > { %v2790_v33 = vpop.f32.mrb[46].mxu0 }
 0x802   : > { %v7604_v34 = vpop.f32.mrb[47].mxu0 }
 0x803   : > { %v10146_v35 = vpop.f32.mrb[44].mxu1 }
 0x804   : > { %v7609_v6 = vpop.f32.mrb[45].mxu1  ;;  %v3480_v22 = vsel %vm1918_vm4, %v10146_v35, -inf }
 0x805   : > { %v2836_v41 = vpop.f32.mrb[46].mxu1 }
 0x806   : > { %v7610_v44 = vpop.f32.mrb[47].mxu1 }
 0x807   : > { %v10150_v46 = vpop.f32.mrb[48].mxu0 }
 0x808   : > { %3460 = vmax.xlane.f32.xlu1 %v3459_v21  ;;  %v7615_v50 = vpop.f32.mrb[49].mxu0 }
 0x809   : > { %v2882_v51 = vpop.f32.mrb[50].mxu0  ;;  %v3462_v50 = vsel %vm1918_vm4, %v10124_v14, -inf }
 0x80a   : > { %v7616_v53 = vpop.f32.mrb[51].mxu0 }
 0x80b   : > { %v10152_v57 = vpop.f32.mrb[48].mxu1 }
 0x80c   : > { %v7621_v58 = vpop.f32.mrb[49].mxu1 }
 0x80d   : > { %v2928_v60 = vpop.f32.mrb[50].mxu1 }
 0x80e   : > { %v7622_v2 = vpop.f32.mrb[51].mxu1 }
 0x80f   : > { %v10154_v4 = vpop.f32.mrb[52].mxu0 }
 0x810   : > { %11470 = vst [vmem:[#allocation52_spill] sm:$0xff] %v10154_v4  ;;  %v7627_v10 = vpop.f32.mrb[53].mxu0 }
 0x811   : > { %v2974_v17 = vpop.f32.mrb[54].mxu0 }
 0x812   : > { %v7628_v18 = vpop.f32.mrb[55].mxu0 }
 0x813   : > { %v10156_v19 = vpop.f32.mrb[52].mxu1 }
 0x814   : > { %11471 = vst [vmem:[#allocation53_spill] sm:$0xff] %v10156_v19  ;;  %v7633_v23 = vpop.f32.mrb[53].mxu1 }
 0x815   : > { %v3020_v33 = vpop.f32.mrb[54].mxu1 }
 0x816   : > { %v7634_v34 = vpop.f32.mrb[55].mxu1 }
 0x817   : > { %v10158_v6 = vpop.f32.mrb[56].mxu0 }
 0x818   : > { %11472 = vst [vmem:[#allocation54_spill] sm:$0xff] %v10158_v6  ;;  %v7639_v21 = vpop.f32.mrb[57].mxu0 }
 0x819   : > { %3659 = vperm.xlu1 %8185, %v10129_v45   ;;  %v3066_v41 = vpop.f32.mrb[58].mxu0 }
 0x81a   : > { %v7640_v44 = vpop.f32.mrb[59].mxu0 }
 0x81b   : > { %v10163_v51 = vpop.f32.mrb[56].mxu1 }
 0x81c   : > { %11473 = vst [vmem:[#allocation55_spill] sm:$0xff] %v10163_v51  ;;  %v7645_v53 = vpop.f32.mrb[57].mxu1 }
 0x81d   : > { %v3112_v58 = vpop.f32.mrb[58].mxu1 }
 0x81e   : > { %3463 = vmax.xlane.f32.xlu0 %v3462_v50  ;;  %v7646_v60 = vpop.f32.mrb[59].mxu1 }
 0x81f   : > { %v10165_v2 = vpop.f32.mrb[60].mxu0 }
 0x820   : > { %11474 = vst [vmem:[#allocation56_spill] sm:$0xff] %v10165_v2  ;;  %v7651_v10 = vpop.f32.mrb[61].mxu0 }
 0x821   : > { %v3158_v17 = vpop.f32.mrb[62].mxu0 }
 0x822   : > { %v7652_v18 = vpop.f32.mrb[63].mxu0 }
 0x823   : > { %v10167_v23 = vpop.f32.mrb[60].mxu1 }
 0x824   : > { %11475 = vst [vmem:[#allocation57_spill] sm:$0xff] %v10167_v23  ;;  %v7657_v33 = vpop.f32.mrb[61].mxu1 }
 0x825   : > { %v3204_v34 = vpop.f32.mrb[62].mxu1 }
 0x826   : > { %v7658_v21 = vpop.f32.mrb[63].mxu1 }
 0x827   : > { %v10169_v41 = vpop.f32.mrb[64].mxu0  ;;  %v3483_v21 = vsel %vm1918_vm4, %v10150_v46, -inf }
 0x828   : > { %11476 = vst [vmem:[#allocation58_spill] sm:$0xff] %v10169_v41  ;;  %v7663_v44 = vpop.f32.mrb[65].mxu0 }
 0x829   : > { %v3250_v48 = vpop.f32.mrb[66].mxu0  ;;  %v3489_v44 = vsel %vm1918_vm4, %v10154_v4, -inf  ;;  %v10273_v4 = vld [vmem:[#allocation3 + $0x50] sm:$0xff] }
 0x82a   : > { %v7664_v25 = vpop.f32.mrb[67].mxu0 }
 0x82b   : > { %v10171_v16 = vpop.f32.mrb[64].mxu1 }
 0x82c   : > { %11477 = vst [vmem:[#allocation59_spill] sm:$0xff] %v10171_v16  ;;  %v7669_v53 = vpop.f32.mrb[65].mxu1 }
 0x82d   : > { %v3296_v50 = vpop.f32.mrb[66].mxu1  ;;  %v3495_v53 = vsel %vm1918_vm4, %v10158_v6, -inf  ;;  %v3477_v6 = vsel %vm1918_vm4, %v10144_v20, -inf }
 0x82e   : > { %v7670_v58 = vpop.f32.mrb[67].mxu1  ;;  %v3501_v50 = vsel %vm1918_vm4, %v10165_v2, -inf }
 0x82f   : > { %v10173_v60 = vpop.f32.mrb[68].mxu0  ;;  %v3507_v58 = vsel %vm1918_vm4, %v10169_v41, -inf }
 0x830   : > { %11478 = vst [vmem:[#allocation60_spill] sm:$0xff] %v10173_v60  ;;  %v7675_v10 = vpop.f32.mrb[69].mxu0 }
 0x831   : > { %v3342_v17 = vpop.f32.mrb[70].mxu0  ;;  %v3468_v10 = vsel %vm1918_vm4, %v10137_v55, -inf }
 0x832   : > { %v7676_v18 = vpop.f32.mrb[71].mxu0  ;;  %v10190_v17 = vld [vmem:[#allocation3 + $0x28] sm:$0xff] }
 0x833   : > { %v10176_v33 = vpop.f32.mrb[68].mxu1  ;;  %11480 = vst [vmem:[#allocation62_spill] sm:$0xff] %v10190_v17  ;;  %v10192_v18 = vld [vmem:[#allocation3 + $0x20] sm:$0xff] }
 0x834   : > { %3664 = vperm.xlu0 %8186, %v10120_v36   ;;  %11479 = vst [vmem:[#allocation61_spill] sm:$0xff] %v10176_v33  ;;  %v7681_v34 = vpop.f32.mrb[69].mxu1 }
 0x835   : > { %v3388_v48 = vpop.f32.mrb[70].mxu1 }
 0x836   : > { %v7682_v25 = vpop.f32.mrb[71].mxu1 }
 0x837   : > { %v3465_v25 = vsel %vm1918_vm4, %v10131_v47, -inf }
 0x83d   : > { %3484 = vmax.xlane.f32.xlu1 %v3483_v21 }
 0x841   : > { %3490 = vmax.xlane.f32.xlu1 %v3489_v44 }
 0x845   : > { %3496 = vmax.xlane.f32.xlu1 %v3495_v53  ;;  %v10220_v53 = vld [vmem:[#allocation3 + $0x38] sm:$0xff] }
 0x846   : > { %11482 = vst [vmem:[#allocation64_spill] sm:$0xff] %v10220_v53 }
 0x849   : > { %3502 = vmax.xlane.f32.xlu1 %v3501_v50 }
 0x84d   : > { %3508 = vmax.xlane.f32.xlu1 %v3507_v58  ;;  %v3474_v58 = vsel %vm1918_vm4, %v10141_v15, -inf }
 0x853   : > { %3469 = vmax.xlane.f32.xlu0 %v3468_v10  ;;  %v10212_v10 = vld [vmem:[#allocation3 + $0x30] sm:$0xff] }
 0x854   : > { %v3440_v34 = vpop.xlane.xlu0 %3439 }
 0x855   : > { %v10195_v21 = vmax.f32 %v10190_v17, %v3440_v34  ;;  %v3437_v48 = vpop.xlane.xlu1 %3436  ;;  %v3471_v34 = vsel %vm1918_vm4, %v10139_v0, -inf  ;;  %v10239_v17 = vld [vmem:[#allocation3 + $0x48] sm:$0xff] }
 0x856   : > { %v10200_v44 = vmax.f32 %v10192_v18, %v3437_v48  ;;  %11484 = vst [vmem:[#allocation66_spill] sm:$0xff] %v10239_v17 }
 0x857   : > { %11481 = vst [vmem:[#allocation63_spill] sm:$0xff] %v10195_v21  ;;  %3466 = vmax.xlane.f32.xlu0 %v3465_v25  ;;  %5829 = vst.msk [vmem:[#allocation3 + $0x28] sm:$0xff] %vm4095_vm5, %v10195_v21 }
 0x858   : > { %5828 = vst.msk [vmem:[#allocation3 + $0x20] sm:$0xff] %vm4095_vm5, %v10200_v44 }
 0x85b   : > { %3475 = vmax.xlane.f32.xlu0 %v3474_v58 }
 0x85e   : > { %3669 = vperm.xlu1 %8185, %v10200_v44   ;;  %v3443_v48 = vpop.xlane.xlu1 %3442 }
 0x85f   : > { %3472 = vmax.xlane.f32.xlu0 %v3471_v34  ;;  %v10218_v25 = vmax.f32 %v10212_v10, %v3443_v48 }
 0x861   : > { %5830 = vst.msk [vmem:[#allocation3 + $0x30] sm:$0xff] %vm4095_vm5, %v10218_v25 }
 0x862   : > { %v3446_v58 = vpop.xlane.xlu0 %3445  ;;  %3679 = vperm.xlu1 %8185, %v10218_v25  }
 0x863   : > { %v10230_v41 = vmax.f32 %v10220_v53, %v3446_v58  ;;  %3481 = vmax.xlane.f32.xlu0 %v3480_v22  ;;  %v3655_v34 = vpop.permute.xlu1 %3654  ;;  %v3486_v22 = vsel %vm1918_vm4, %v10152_v57, -inf  ;;  %v10257_v53 = vld [vmem:[#allocation3 + $0x58] sm:$0xff] }
 0x864   : > { %v3808_v48 = vsub.f32 %v10015_v54, %v3655_v34  ;;  %v10246_v34 = vld [vmem:[#allocation3 + $0x40] sm:$0xff]  ;;  %11486 = vst [vmem:[#allocation68_spill] sm:$0xff] %v10257_v53 }
 0x865   : > { %11483 = vst [vmem:[#allocation65_spill] sm:$0xff] %v10230_v41  ;;  %5831 = vst.msk [vmem:[#allocation3 + $0x38] sm:$0xff] %vm4095_vm5, %v10230_v41 }
 0x866   : > { %v3841_v50 = vmul.f32 1.442695, %v3808_v48 }
 0x867   : > { %3478 = vmax.xlane.f32.xlu0 %v3477_v6 }
 0x868   : > { %8219 = vpow2.f32 %v3841_v50  ;;  %v3492_v50 = vsel %vm1918_vm4, %v10156_v19, -inf }
 0x86a   : > { %v3452_v58 = vpop.xlane.xlu0 %3451 }
 0x86b   : > { %v10244_v54 = vmax.f32 %v10239_v17, %v3452_v58  ;;  %3487 = vmax.xlane.f32.xlu0 %v3486_v22  ;;  %v3498_v17 = vsel %vm1918_vm4, %v10163_v51, -inf  ;;  %v3510_v58 = vsel %vm1918_vm4, %v10171_v16, -inf }
 0x86d   : > { %11485 = vst [vmem:[#allocation67_spill] sm:$0xff] %v10244_v54  ;;  %5833 = vst.msk [vmem:[#allocation3 + $0x48] sm:$0xff] %vm4095_vm5, %v10244_v54 }
 0x86e   : > { %v3449_v6 = vpop.xlane.xlu0 %3448 }
 0x86f   : > { %v10255_v2 = vmax.f32 %v10246_v34, %v3449_v6  ;;  %3493 = vmax.xlane.f32.xlu0 %v3492_v50 }
 0x871   : > { %5832 = vst.msk [vmem:[#allocation3 + $0x40] sm:$0xff] %vm4095_vm5, %v10255_v2  ;;  %3689 = vperm.xlu1 %8185, %v10255_v2  }
 0x872   : > { %v10264_v22 = vpop.eup %8219  ;;  %v3458_v48 = vpop.xlane.xlu0 %3457 }
 0x873   : > { %v10269_v6 = vmax.f32 %v10257_v53, %v3458_v48  ;;  %3499 = vmax.xlane.f32.xlu0 %v3498_v17  ;;  %v4353_v50 = vpack.c.bf16 %v10264_v22, %v10264_v22  ;;  %v3504_v48 = vsel %vm1918_vm4, %v10167_v23, -inf  ;;  %v11488_v17 = vmov 0.0  }
 0x875   : > { %11487 = vst [vmem:[#allocation69_spill] sm:$0xff] %v10269_v6  ;;  %5835 = vst.msk [vmem:[#allocation3 + $0x58] sm:$0xff] %vm4095_vm5, %v10269_v6  ;;  %7692 = vmatmul.mubr.msk.bf16.vlgmr.msra.gmra.mrb[72].mxu1 %vm1918_vm4, %v4353_v50  ;;  %v3513_v50 = vsel %vm1918_vm4, %v10173_v60, -inf }
 0x876   : > { %7702 = vmatpush3.bf16.msra.mxu1 %v9813_v31  ;;  %v3455_v51 = vpop.xlane.xlu0 %3454  ;;  %7703 = vmatprep.mubr.msk.bf16.mxu1 %vm8964_vm3, %v11488_v17 }
 0x877   : > { %v10286_v19 = vmax.f32 %v10273_v4, %v3455_v51  ;;  %3505 = vmax.xlane.f32.xlu0 %v3504_v48  ;;  %7713 = vmatprep.subr.bf16.mxu1 %v11488_v17 }
 0x879   : > { %5834 = vst.msk [vmem:[#allocation3 + $0x50] sm:$0xff] %vm4095_vm5, %v10286_v19 }
 0x87b   : > { %3511 = vmax.xlane.f32.xlu0 %v3510_v58 }
 0x87e   : > { %v3650_v23 = vpop.permute.xlu0 %3649 }
 0x87f   : > { %v3807_v53 = vsub.f32 %v10022_v59, %v3650_v23  ;;  %v10308_v59 = vld [vmem:[#allocation3 + $0x60] sm:$0xff] }
 0x881   : > { %v3839_v45 = vmul.f32 1.442695, %v3807_v53 }
 0x883   : > { %8221 = vpow2.f32 %v3839_v45 }
 0x88d   : > { %v10296_v51 = vpop.eup %8221 }
 0x88e   : > { %v4352_v48 = vpack.c.bf16 %v10296_v51, %v10296_v51 }
 0x890   : > { %7686 = vmatmul.mubr.msk.bf16.vlgmr.msra.gmra.mrb[72].mxu0 %vm1918_vm4, %v4352_v48 }
 0x891   : > { %7696 = vmatpush3.bf16.msra.mxu0 %v9815_v32  ;;  %3674 = vperm.xlu0 %8186, %v10195_v21  }
 0x892   : > { %7697 = vmatprep.mubr.msk.bf16.mxu0 %vm8964_vm3, %v11488_v17  ;;  %7707 = vmatprep.subr.bf16.mxu0 %v11488_v17 }
 0x895   : > { %3684 = vperm.xlu0 %8186, %v10230_v41   ;;  %3514 = vmax.xlane.f32.xlu1 %v3513_v50  ;;  %v3461_v45 = vpop.xlane.xlu1 %3460  ;;  %v10388_v41 = vld [vmem:[#allocation3 + $0xe0] sm:$0xff] }
 0x896   : > { %v10312_v23 = vmax.f32 %v10308_v59, %v3461_v45  ;;  %v10324_v45 = vld [vmem:[#allocation3 + $0x68] sm:$0xff]  ;;  %11495 = vst [vmem:[#allocation76_spill] sm:$0xff] %v10388_v41 }
 0x897   : > { %11489 = vst [vmem:[#allocation70_spill] sm:$0xff] %v10324_v45 }
 0x898   : > { %5836 = vst.msk [vmem:[#allocation3 + $0x60] sm:$0xff] %vm4095_vm5, %v10312_v23 }
 0x899   : > { %3694 = vperm.xlu0 %8186, %v10244_v54   ;;  %v3660_v58 = vpop.permute.xlu1 %3659 }
 0x89a   : > { %v3809_v48 = vsub.f32 %v10039_v12, %v3660_v58 }
 0x89c   : > { %v3843_v16 = vmul.f32 1.442695, %v3809_v48 }
 0x89d   : > { %3704 = vperm.xlu0 %8186, %v10269_v6  }
 0x89e   : > { %8223 = vpow2.f32 %v3843_v16  ;;  %v10369_v16 = vld [vmem:[#allocation3 + $0xc0] sm:$0xff] }
 0x89f   : > { %11493 = vst [vmem:[#allocation74_spill] sm:$0xff] %v10369_v16 }
 0x8a6   : > { %3699 = vperm.xlu1 %8185, %v10286_v19  }
 0x8a8   : > { %v10322_v50 = vpop.eup %8223 }
 0x8a9   : > { %v4354_v53 = vpack.c.bf16 %v10322_v50, %v10322_v50 }
 0x8aa   : > { %1826 = vrot.lane.b32.xlu1 %v9799_v3, %s8967_s5 }
 0x8ab   : > { %v3464_v60 = vpop.xlane.xlu0 %3463  ;;  %7698 = vmatmul.mubr.msk.bf16.vlgmr.msra.gmra.mrb[76].mxu0 %vm1918_vm4, %v4354_v53 }
 0x8ac   : > { %v10332_v12 = vmax.f32 %v10324_v45, %v3464_v60  ;;  %7708 = vmatpush3.bf16.msra.mxu0 %v9961_v26  ;;  %7709 = vmatprep.mubr.msk.bf16.mxu0 %vm8964_vm3, %v11488_v17  ;;  %v3516_v26 = vsel %vm1918_vm4, %v10176_v33, -inf  ;;  %v10379_v45 = vld [vmem:[#allocation3 + $0xd0] sm:$0xff] }
 0x8ad   : > { %7719 = vmatprep.subr.bf16.mxu0 %v11488_v17  ;;  %11494 = vst [vmem:[#allocation75_spill] sm:$0xff] %v10379_v45 }
 0x8ae   : > { %11490 = vst [vmem:[#allocation71_spill] sm:$0xff] %v10332_v12  ;;  %5837 = vst.msk [vmem:[#allocation3 + $0x68] sm:$0xff] %vm4095_vm5, %v10332_v12  ;;  %3709 = vperm.xlu1 %8185, %v10312_v23  }
 0x8b3   : > { %v3665_v58 = vpop.permute.xlu0 %3664 }
 0x8b4   : > { %v3810_v53 = vsub.f32 %v10034_v9, %v3665_v58  ;;  %v10355_v9 = vld [vmem:[#allocation3 + $0xa0] sm:$0xff] }
 0x8b5   : > { %11491 = vst [vmem:[#allocation72_spill] sm:$0xff] %v10355_v9 }
 0x8b6   : > { %v3845_v60 = vmul.f32 1.442695, %v3810_v53 }
 0x8b8   : > { %8225 = vpow2.f32 %v3845_v60  ;;  %v10360_v60 = vld [vmem:[#allocation3 + $0xb0] sm:$0xff] }
 0x8b9   : > { %11492 = vst [vmem:[#allocation73_spill] sm:$0xff] %v10360_v60 }
 0x8bc   : > { %3517 = vmax.xlane.f32.xlu0 %v3516_v26 }
 0x8c2   : > { %v10346_v48 = vpop.eup %8225 }
 0x8c3   : > { %v4355_v6 = vpack.c.bf16 %v10346_v48, %v10346_v48 }
 0x8c5   : > { %7704 = vmatmul.mubr.msk.bf16.vlgmr.msra.gmra.mrb[76].mxu1 %vm1918_vm4, %v4355_v6 }
 0x8c6   : > { %7714 = vmatpush3.bf16.msra.mxu1 %v10060_v37  ;;  %7715 = vmatprep.mubr.msk.bf16.mxu1 %vm8964_vm3, %v11488_v17 }
 0x8c7   : > { %7725 = vmatprep.subr.bf16.mxu1 %v11488_v17 }
 0x8ca   : > { %v3485_v58 = vpop.xlane.xlu1 %3484 }
 0x8cb   : > { %v10358_v53 = vmax.f32 %v10355_v9, %v3485_v58 }
 0x8cd   : > { %5844 = vst.msk [vmem:[#allocation3 + $0xa0] sm:$0xff] %vm4095_vm5, %v10358_v53 }
 0x8ce   : > { %v3491_v37 = vpop.xlane.xlu1 %3490 }
 0x8cf   : > { %v10367_v6 = vmax.f32 %v10360_v60, %v3491_v37 }
 0x8d1   : > { %5846 = vst.msk [vmem:[#allocation3 + $0xb0] sm:$0xff] %vm4095_vm5, %v10367_v6 }
 0x8d2   : > { %3714 = vperm.xlu0 %8186, %v10332_v12   ;;  %v3497_v58 = vpop.xlane.xlu1 %3496 }
 0x8d3   : > { %v10377_v26 = vmax.f32 %v10369_v16, %v3497_v58  ;;  %v10399_v16 = vld [vmem:[#allocation3 + $0x78] sm:$0xff] }
 0x8d4   : > { %11496 = vst [vmem:[#allocation77_spill] sm:$0xff] %v10399_v16 }
 0x8d5   : > { %5848 = vst.msk [vmem:[#allocation3 + $0xc0] sm:$0xff] %vm4095_vm5, %v10377_v26 }
 0x8d6   : > { %v3503_v54 = vpop.xlane.xlu1 %3502 }
 0x8d7   : > { %v10386_v33 = vmax.f32 %v10379_v45, %v3503_v54  ;;  %v10405_v45 = vld [vmem:[#allocation3 + $0x70] sm:$0xff] }
 0x8d9   : > { %5850 = vst.msk [vmem:[#allocation3 + $0xd0] sm:$0xff] %vm4095_vm5, %v10386_v33 }
 0x8da   : > { %v3509_v58 = vpop.xlane.xlu1 %3508 }
 0x8db   : > { %v10395_v60 = vmax.f32 %v10388_v41, %v3509_v58 }
 0x8dd   : > { %5852 = vst.msk [vmem:[#allocation3 + $0xe0] sm:$0xff] %vm4095_vm5, %v10395_v60 }
 0x8de   : > { %v3670_v37 = vpop.permute.xlu1 %3669 }
 0x8df   : > { %v3811_v54 = vsub.f32 %v10054_v27, %v3670_v37 }
 0x8e0   : > { %v3470_v21 = vpop.xlane.xlu0 %3469 }
 0x8e1   : > { %v3847_v9 = vmul.f32 1.442695, %v3811_v54  ;;  %v10403_v39 = vmax.f32 %v10399_v16, %v3470_v21  ;;  %v10416_v21 = vld [vmem:[#allocation3 + $0x88] sm:$0xff]  ;;  %v10455_v16 = vld [vmem:[#allocation3 + $0x90] sm:$0xff] }
 0x8e2   : > { %v3680_v12 = vpop.permute.xlu1 %3679  ;;  %11498 = vst [vmem:[#allocation79_spill] sm:$0xff] %v10416_v21 }
 0x8e3   : > { %11497 = vst [vmem:[#allocation78_spill] sm:$0xff] %v10403_v39  ;;  %8227 = vpow2.f32 %v3847_v9  ;;  %5839 = vst.msk [vmem:[#allocation3 + $0x78] sm:$0xff] %vm4095_vm5, %v10403_v39  ;;  %v3813_v41 = vsub.f32 %v10062_v38, %v3680_v12  ;;  %3724 = vperm.xlu1 %8185, %v10403_v39   ;;  %v10426_v12 = vld [vmem:[#allocation3 + $0x80] sm:$0xff] }
 0x8e4   : > { %v3467_v27 = vpop.xlane.xlu0 %3466 }
 0x8e5   : > { %v3851_v37 = vmul.f32 1.442695, %v3813_v41  ;;  %v10414_v54 = vmax.f32 %v10405_v45, %v3467_v27 }
 0x8e7   : > { %5838 = vst.msk [vmem:[#allocation3 + $0x70] sm:$0xff] %vm4095_vm5, %v10414_v54  ;;  %3719 = vperm.xlu1 %8185, %v10414_v54   ;;  %8229 = vpow2.f32 %v3851_v37  ;;  %v10438_v37 = vld [vmem:[#allocation3 + $0x98] sm:$0xff] }
 0x8e8   : > { %v3476_v58 = vpop.xlane.xlu0 %3475  ;;  %11501 = vst [vmem:[#allocation82_spill] sm:$0xff] %v10438_v37 }
 0x8e9   : > { %v10424_v38 = vmax.f32 %v10416_v21, %v3476_v58 }
 0x8eb   : > { %11499 = vst [vmem:[#allocation80_spill] sm:$0xff] %v10424_v38  ;;  %5841 = vst.msk [vmem:[#allocation3 + $0x88] sm:$0xff] %vm4095_vm5, %v10424_v38  ;;  %3734 = vperm.xlu1 %8185, %v10424_v38  }
 0x8ec   : > { %v3473_v27 = vpop.xlane.xlu0 %3472 }
 0x8ed   : > { %v10433_v9 = vpop.eup %8227  ;;  %v10436_v39 = vmax.f32 %v10426_v12, %v3473_v27 }
 0x8ee   : > { %11500 = vst [vmem:[#allocation81_spill] sm:$0xff] %v10433_v9  ;;  %v4356_v58 = vpack.c.bf16 %v10433_v9, %v10433_v9 }
 0x8ef   : > { %5840 = vst.msk [vmem:[#allocation3 + $0x80] sm:$0xff] %vm4095_vm5, %v10436_v39  ;;  %3729 = vperm.xlu1 %8185, %v10436_v39  }
 0x8f0   : > { %v3690_v41 = vpop.permute.xlu1 %3689  ;;  %v3482_v38 = vpop.xlane.xlu0 %3481  ;;  %7710 = vmatmul.mubr.msk.bf16.vlgmr.msra.gmra.mrb[80].mxu0 %vm1918_vm4, %v4356_v58 }
 0x8f1   : > { %v3815_v27 = vsub.f32 %v10074_v30, %v3690_v41  ;;  %v10450_v21 = vmax.f32 %v10438_v37, %v3482_v38  ;;  %7720 = vmatpush3.bf16.msra.mxu0 %v10072_v29  ;;  %7721 = vmatprep.mubr.msk.bf16.mxu0 %vm8964_vm3, %v11488_v17  ;;  %v10458_v9 = vpop.eup %8229  ;;  %v10469_v38 = vld [vmem:[#allocation3 + $0xa8] sm:$0xff]  ;;  %v10516_v37 = vld [vmem:[#allocation3 + $0xd8] sm:$0xff] }
 0x8f2   : > { %7731 = vmatprep.subr.bf16.mxu0 %v11488_v17  ;;  %11503 = vst [vmem:[#allocation84_spill] sm:$0xff] %v10458_v9  ;;  %11504 = vst [vmem:[#allocation85_spill] sm:$0xff] %v10469_v38  ;;  %v4358_v41 = vpack.c.bf16 %v10458_v9, %v10458_v9 }
 0x8f3   : > { %11502 = vst [vmem:[#allocation83_spill] sm:$0xff] %v10450_v21  ;;  %v3855_v13 = vmul.f32 1.442695, %v3815_v27  ;;  %5843 = vst.msk [vmem:[#allocation3 + $0x98] sm:$0xff] %vm4095_vm5, %v10450_v21  ;;  %1828 = vrot.lane.b32.xlu1 %v9795_v1, %s8967_s5  ;;  %v10533_v27 = vld [vmem:[#allocation3 + $0xe8] sm:$0xff] }
 0x8f4   : > { %v3479_v29 = vpop.xlane.xlu0 %3478  ;;  %11509 = vst [vmem:[#allocation90_spill] sm:$0xff] %v10516_v37  ;;  %11510 = vst [vmem:[#allocation91_spill] sm:$0xff] %v10533_v27 }
 0x8f5   : > { %8231 = vpow2.f32 %v3855_v13  ;;  %v10467_v30 = vmax.f32 %v10455_v16, %v3479_v29  ;;  %v10486_v29 = vld [vmem:[#allocation3 + $0xb8] sm:$0xff] }
 0x8f7   : > { %5842 = vst.msk [vmem:[#allocation3 + $0x90] sm:$0xff] %vm4095_vm5, %v10467_v30  ;;  %3744 = vperm.xlu1 %8185, %v10450_v21   ;;  %3739 = vperm.xlu0 %8186, %v10467_v30  }
 0x8f8   : > { %v3488_v58 = vpop.xlane.xlu0 %3487  ;;  %7722 = vmatmul.mubr.msk.bf16.vlgmr.msra.gmra.mrb[84].mxu0 %vm1918_vm4, %v4358_v41  ;;  %v10500_v41 = vld [vmem:[#allocation3 + $0xc8] sm:$0xff] }
 0x8f9   : > { %v10481_v13 = vmax.f32 %v10469_v38, %v3488_v58  ;;  %7732 = vmatpush3.bf16.msra.mxu0 %v9983_v40  ;;  %7733 = vmatprep.mubr.msk.bf16.mxu0 %vm8964_vm3, %v11488_v17  ;;  %11506 = vst [vmem:[#allocation87_spill] sm:$0xff] %v10500_v41 }
 0x8fa   : > { %7743 = vmatprep.subr.bf16.mxu0 %v11488_v17 }
 0x8fb   : > { %5845 = vst.msk [vmem:[#allocation3 + $0xa8] sm:$0xff] %vm4095_vm5, %v10481_v13  ;;  %1832 = vrot.lane.b32.xlu1 %v9813_v31, %s8967_s5  ;;  %1830 = vrot.lane.b32.xlu0 %v9815_v32, %s8967_s5 }
 0x8fc   : > { %v3494_v40 = vpop.xlane.xlu0 %3493 }
 0x8fd   : > { %v10498_v58 = vmax.f32 %v10486_v29, %v3494_v40 }
 0x8ff   : > { %11505 = vst [vmem:[#allocation86_spill] sm:$0xff] %v10498_v58  ;;  %v10502_v9 = vpop.eup %8231  ;;  %5847 = vst.msk [vmem:[#allocation3 + $0xb8] sm:$0xff] %vm4095_vm5, %v10498_v58  ;;  %3749 = vperm.xlu0 %8186, %v10358_v53   ;;  %3754 = vperm.xlu1 %8185, %v10481_v13  }
 0x900   : > { %11507 = vst [vmem:[#allocation88_spill] sm:$0xff] %v10502_v9  ;;  %v3500_v38 = vpop.xlane.xlu0 %3499  ;;  %v4360_v21 = vpack.c.bf16 %v10502_v9, %v10502_v9 }
 0x901   : > { %v10513_v40 = vmax.f32 %v10500_v41, %v3500_v38 }
 0x902   : > { %7734 = vmatmul.mubr.msk.bf16.vlgmr.msra.gmra.mrb[88].mxu0 %vm1918_vm4, %v4360_v21 }
 0x903   : > { %11508 = vst [vmem:[#allocation89_spill] sm:$0xff] %v10513_v40  ;;  %5849 = vst.msk [vmem:[#allocation3 + $0xc8] sm:$0xff] %vm4095_vm5, %v10513_v40  ;;  %7744 = vmatpush3.bf16.msra.mxu0 %v10082_v56  ;;  %1838 = vrot.lane.b32.xlu0 %v9799_v3, %s8968_s7 }
 0x904   : > { %1840 = vrot.lane.b32.xlu1 %v9795_v1, %s8968_s7  ;;  %v3506_v38 = vpop.xlane.xlu0 %3505  ;;  %7745 = vmatprep.mubr.msk.bf16.mxu0 %vm8964_vm3, %v11488_v17 }
 0x905   : > { %v10530_v21 = vmax.f32 %v10516_v37, %v3506_v38  ;;  %7755 = vmatprep.subr.bf16.mxu0 %v11488_v17 }
 0x907   : > { %5851 = vst.msk [vmem:[#allocation3 + $0xd8] sm:$0xff] %vm4095_vm5, %v10530_v21  ;;  %3759 = vperm.xlu0 %8186, %v10367_v6  }
 0x908   : > { %3764 = vperm.xlu1 %8185, %v10498_v58   ;;  %v3512_v9 = vpop.xlane.xlu0 %3511 }
 0x909   : > { %v10542_v41 = vmax.f32 %v10533_v27, %v3512_v9 }
 0x90b   : > { %5853 = vst.msk [vmem:[#allocation3 + $0xe8] sm:$0xff] %vm4095_vm5, %v10542_v41  ;;  %1842 = vrot.lane.b32.xlu0 %v9815_v32, %s8968_s7 }
 0x90c   : > { %1844 = vrot.lane.b32.xlu1 %v9813_v31, %s8968_s7 }
 0x90f   : > { %3769 = vperm.xlu0 %8186, %v10377_v26  }
 0x910   : > { %3774 = vperm.xlu1 %8185, %v10513_v40   ;;  %v3675_v56 = vpop.permute.xlu0 %3674 }
 0x911   : > { %v3812_v9 = vsub.f32 %v10052_v24, %v3675_v56 }
 0x913   : > { %v3849_v37 = vmul.f32 1.442695, %v3812_v9  ;;  %1850 = vrot.lane.b32.xlu0 %v9799_v3, %s8969_s9 }
 0x914   : > { %1852 = vrot.lane.b32.xlu1 %v9795_v1, %s8969_s9  ;;  %v3685_v38 = vpop.permute.xlu0 %3684 }
 0x915   : > { %8233 = vpow2.f32 %v3849_v37  ;;  %v3814_v27 = vsub.f32 %v10068_v43, %v3685_v38  ;;  %v10571_v43 = vld [vmem:[#allocation3 + $0xf0] sm:$0xff] }
 0x917   : > { %v3853_v58 = vmul.f32 1.442695, %v3814_v27  ;;  %3779 = vperm.xlu0 %8186, %v10386_v33  }
 0x918   : > { %3784 = vperm.xlu1 %8185, %v10530_v21   ;;  %v3695_v40 = vpop.permute.xlu0 %3694 }
 0x919   : > { %8235 = vpow2.f32 %v3853_v58  ;;  %v3816_v24 = vsub.f32 %v10078_v52, %v3695_v40 }
 0x91b   : > { %1854 = vrot.lane.b32.xlu0 %v9815_v32, %s8969_s9  ;;  %v3857_v37 = vmul.f32 1.442695, %v3816_v24 }
 0x91c   : > { %1856 = vrot.lane.b32.xlu1 %v9813_v31, %s8969_s9  ;;  %v3705_v9 = vpop.permute.xlu0 %3704 }
 0x91d   : > { %v3818_v52 = vsub.f32 %v10097_v11, %v3705_v9  ;;  %8237 = vpow2.f32 %v3857_v37 }
 0x91f   : > { %v10567_v56 = vpop.eup %8233  ;;  %3789 = vperm.xlu0 %8186, %v10395_v60  }
 0x920   : > { %3794 = vperm.xlu1 %8185, %v10542_v41   ;;  %v4357_v27 = vpack.c.bf16 %v10567_v56, %v10567_v56 }
 0x922   : > { %v3515_v58 = vpop.xlane.xlu1 %3514  ;;  %7716 = vmatmul.mubr.msk.bf16.vlgmr.msra.gmra.mrb[80].mxu1 %vm1918_vm4, %v4357_v27 }
 0x923   : > { %v10578_v40 = vmax.f32 %v10571_v43, %v3515_v58  ;;  %7726 = vmatpush3.bf16.msra.mxu1 %v10066_v42  ;;  %1862 = vrot.lane.b32.xlu0 %v9799_v3, %s8970_s20  ;;  %v10587_v38 = vpop.eup %8235  ;;  %v3861_v42 = vmul.f32 1.442695, %v3818_v52 }
 0x924   : > { %1864 = vrot.lane.b32.xlu1 %v9795_v1, %s8970_s20  ;;  %7727 = vmatprep.mubr.msk.bf16.mxu1 %vm8964_vm3, %v11488_v17  ;;  %v4359_v9 = vpack.c.bf16 %v10587_v38, %v10587_v38 }
 0x925   : > { %5854 = vst.msk [vmem:[#allocation3 + $0xf0] sm:$0xff] %vm4095_vm5, %v10578_v40  ;;  %7737 = vmatprep.subr.bf16.mxu1 %v11488_v17  ;;  %8239 = vpow2.f32 %v3861_v42 }
 0x926   : > { %v3700_v24 = vpop.permute.xlu1 %3699 }
 0x927   : > { %v3817_v37 = vsub.f32 %v10090_v63, %v3700_v24  ;;  %3799 = vperm.xlu0 %8186, %v10578_v40   ;;  %v10605_v63 = vpop.eup %8237 }
 0x928   : > { %v4361_v42 = vpack.c.bf16 %v10605_v63, %v10605_v63 }
 0x929   : > { %v3859_v27 = vmul.f32 1.442695, %v3817_v37 }
 0x92a   : > { %v1827_v58 = vpop.permute.xlu1 %1826  ;;  %7728 = vmatmul.mubr.msk.bf16.vlgmr.msra.gmra.mrb[84].mxu1 %vm1918_vm4, %v4359_v9 }
 0x92b   : > { %8241 = vpow2.f32 %v3859_v27  ;;  %7738 = vmatpush3.bf16.msra.mxu1 %v10076_v49  ;;  %1866 = vrot.lane.b32.xlu0 %v9815_v32, %s8970_s20  ;;  %v10641_v27 = vld [vmem:[#allocation3 + $0xf8] sm:$0xff] }
 0x92c   : > { %7739 = vmatprep.mubr.msk.bf16.mxu1 %vm8964_vm3, %v11488_v17  ;;  %7749 = vmatprep.subr.bf16.mxu1 %v11488_v17  ;;  %11511 = vst [vmem:[#allocation92_spill] sm:$0xff] %v10641_v27 }
 0x92e   : > { %v3710_v52 = vpop.permute.xlu1 %3709 }
 0x92f   : > { %v3819_v24 = vsub.f32 %v10115_v28, %v3710_v52  ;;  %1874 = vrot.lane.b32.xlu0 %v9799_v3, %s8971_s27  ;;  %v10616_v37 = vpop.eup %8239 }
 0x931   : > { %v3863_v49 = vmul.f32 1.442695, %v3819_v24 }
 0x932   : > { %7740 = vmatmul.mubr.msk.bf16.vlgmr.msra.gmra.mrb[88].mxu1 %vm1918_vm4, %v4361_v42 }
 0x933   : > { %8243 = vpow2.f32 %v3863_v49  ;;  %7750 = vmatpush3.bf16.msra.mxu1 %v10086_v61  ;;  %1878 = vrot.lane.b32.xlu0 %v9815_v32, %s8971_s27  ;;  %v4363_v61 = vpack.c.bf16 %v10616_v37, %v10616_v37 }
 0x934   : > { %7751 = vmatprep.mubr.msk.bf16.mxu1 %vm8964_vm3, %v11488_v17  ;;  %7761 = vmatprep.subr.bf16.mxu1 %v11488_v17 }
 0x935   : > { %v10621_v3 = vpop.eup %8241 }
 0x936   : > { %v4362_v28 = vpack.c.bf16 %v10621_v3, %v10621_v3 }
 0x938   : > { %7746 = vmatmul.mubr.msk.bf16.vlgmr.msra.gmra.mrb[92].mxu0 %vm1918_vm4, %v4362_v28 }
 0x939   : > { %7756 = vmatpush3.bf16.msra.mxu0 %v1827_v58  ;;  %7757 = vmatprep.mubr.msk.bf16.mxu0 %vm8964_vm3, %v11488_v17 }
 0x93a   : > { %7752 = vmatmul.mubr.msk.bf16.vlgmr.msra.gmra.mrb[92].mxu1 %vm1918_vm4, %v4363_v61  ;;  %7767 = vmatprep.subr.bf16.mxu0 %v11488_v17 }
 0x93b   : > { %7763 = vmatprep.mubr.msk.bf16.mxu1 %vm8964_vm3, %v11488_v17 }
 0x93d   : > { %v10634_v32 = vpop.eup %8243 }
 0x93e   : > { %v4364_v9 = vpack.c.bf16 %v10634_v32, %v10634_v32 }
 0x940   : > { %7758 = vmatmul.mubr.msk.bf16.vlgmr.msra.gmra.mrb[96].mxu0 %vm1918_vm4, %v4364_v9  ;;  %v3967_v9 = vsel %vm1918_vm4, %v10296_v51, 0.0  ;;  %v11513_v51 = vsub.f32 %v10088_v62, %v10095_v8  ;;  %v11515_v62 = vsub.f32 %v10212_v10, %v10218_v25  ;;  %v11517_v25 = vsub.f32 %v10273_v4, %v10286_v19 }
 0x941   : > { %7769 = vmatprep.mubr.msk.bf16.mxu0 %vm8964_vm3, %v11488_v17 }
 0x942   : > { %v3595_v8 = vmul.f32 1.442695, %v11515_v62 }
 0x948   : > { %v10643_v58 = vpop.f32.mrb[72].mxu1 }
 0x949   : > { %v3518_v52 = vpop.xlane.xlu0 %3517  ;;  %v7693_v24 = vpop.f32.mrb[73].mxu1 }
 0x94a   : > { %v10646_v42 = vmax.f32 %v10641_v27, %v3518_v52  ;;  %v4467_v49 = vpop.f32.mrb[74].mxu1  ;;  %v3973_v52 = vsel %vm1918_vm4, %v10322_v50, 0.0  ;;  %v3976_v24 = vsel %vm1918_vm4, %v10346_v48, 0.0 }
 0x94b   : > { %v7694_v28 = vpop.f32.mrb[75].mxu1 }
 0x94c   : > { %11512 = vst [vmem:[#allocation93_spill] sm:$0xff] %v10646_v42  ;;  %5855 = vst.msk [vmem:[#allocation3 + $0xf8] sm:$0xff] %vm4095_vm5, %v10646_v42  ;;  %3804 = vperm.xlu1 %8185, %v10646_v42  }
 0x950   : > { %1868 = vrot.lane.b32.xlu1 %v9813_v31, %s8970_s20 }
 0x951   : > { %v3715_v49 = vpop.permute.xlu0 %3714 }
 0x952   : > { %3968 = vadd.xlane.f32.xlu0 %v3967_v9  ;;  %v3820_v28 = vsub.f32 %v10124_v14, %v3715_v49  ;;  %v3585_v9 = vmul.f32 1.442695, %v11513_v51 }
 0x954   : > { %1876 = vrot.lane.b32.xlu1 %v9795_v1, %s8971_s27  ;;  %v3865_v1 = vmul.f32 1.442695, %v3820_v28  ;;  %8245 = vpow2.f32 %v3585_v9 }
 0x956   : > { %3974 = vadd.xlane.f32.xlu0 %v3973_v52  ;;  %8247 = vpow2.f32 %v3865_v1 }
 0x958   : > { %1880 = vrot.lane.b32.xlu1 %v9813_v31, %s8971_s27  ;;  %v11514_v31 = vsub.f32 %v10192_v18, %v10200_v44  ;;  %v11516_v18 = vsub.f32 %v10246_v34, %v10255_v2 }
 0x95a   : > { %3977 = vadd.xlane.f32.xlu0 %v3976_v24  ;;  %v3591_v52 = vmul.f32 1.442695, %v11514_v31  ;;  %v3599_v44 = vmul.f32 1.442695, %v11516_v18 }
 0x95c   : > { %8249 = vpow2.f32 %v3591_v52 }
 0x95d   : > { %8251 = vpow2.f32 %v3595_v8 }
 0x962   : > { %v3725_v61 = vpop.permute.xlu1 %3724 }
 0x963   : > { %v10669_v11 = vpop.f32.mrb[72].mxu0  ;;  %v3822_v48 = vsub.f32 %v10137_v55, %v3725_v61  ;;  %v3603_v61 = vmul.f32 1.442695, %v11517_v25 }
 0x964   : > { %v7687_v50 = vpop.f32.mrb[73].mxu0 }
 0x965   : > { %v4424_v42 = vpop.f32.mrb[74].mxu0  ;;  %v3869_v49 = vmul.f32 1.442695, %v3822_v48 }
 0x966   : > { %v7688_v24 = vpop.f32.mrb[75].mxu0  ;;  %v3720_v27 = vpop.permute.xlu1 %3719 }
 0x967   : > { %v3821_v14 = vsub.f32 %v10131_v47, %v3720_v27  ;;  %8253 = vpow2.f32 %v3869_v49  ;;  %v10682_v42 = vpop.eup %8245 }
 0x968   : > { %v10687_v10 = vpop.eup %8247 }
 0x969   : > { %v3867_v51 = vmul.f32 1.442695, %v3821_v14  ;;  %v10692_v34 = vpop.eup %8249 }
 0x96a   : > { %v3735_v28 = vpop.permute.xlu1 %3734  ;;  %v10702_v31 = vpop.eup %8251 }
 0x96b   : > { %8255 = vpow2.f32 %v3867_v51  ;;  %v3824_v47 = vsub.f32 %v10141_v15, %v3735_v28  ;;  %v11518_v15 = vsub.f32 %v10308_v59, %v10312_v23  ;;  %v11519_v23 = vsub.f32 %v10405_v45, %v10414_v54 }
 0x96c   : > { %8257 = vpow2.f32 %v3599_v44  ;;  %v3970_v28 = vsel %vm1918_vm4, %v10264_v22, 0.0  ;;  %v11520_v54 = vsub.f32 %v10092_v7, %v10107_v5  ;;  %v11521_v22 = vsub.f32 %v10426_v12, %v10436_v39 }
 0x96d   : > { %v3873_v9 = vmul.f32 1.442695, %v3824_v47  ;;  %8259 = vpow2.f32 %v3603_v61  ;;  %v3607_v50 = vmul.f32 1.442695, %v11518_v15  ;;  %v3611_v14 = vmul.f32 1.442695, %v11519_v23 }
 0x96e   : > { %v3730_v55 = vpop.permute.xlu1 %3729  ;;  %v3583_v18 = vmul.f32 1.442695, %v11520_v54  ;;  %v3615_v44 = vmul.f32 1.442695, %v11521_v22  ;;  %v11522_v61 = vld [vmem:[#allocation49_spill] sm:$0xff]  ;;  %v11531_v22 = vld [vmem:[#allocation52_spill] sm:$0xff] }
 0x96f   : > { %v3823_v27 = vsub.f32 %v10139_v0, %v3730_v55  ;;  %v4365_v0 = vpack.c.bf16 %v10687_v10, %v10687_v10  ;;  %8261 = vpow2.f32 %v3873_v9  ;;  %v11524_v9 = vld [vmem:[#allocation51_spill] sm:$0xff]  ;;  %v11530_v54 = vld [vmem:[#allocation53_spill] sm:$0xff] }
 0x970   : > { %4167 = vperm.xlu0 %8186, %v10682_v42  }
 0x971   : > { %v3871_v1 = vmul.f32 1.442695, %v3823_v27  ;;  %v10707_v48 = vpop.eup %8253 }
 0x972   : > { %v1829_v2 = vpop.permute.xlu1 %1828  ;;  %v4367_v45 = vpack.c.bf16 %v10707_v48, %v10707_v48 }
 0x973   : > { %7762 = vmatpush3.bf16.msra.mxu1 %v1829_v2  ;;  %8263 = vpow2.f32 %v3871_v1  ;;  %v11523_v2 = vld [vmem:[#allocation50_spill] sm:$0xff] }
 0x974   : > { %4182 = vperm.xlu0 %8186, %v10692_v34   ;;  %7773 = vmatprep.subr.bf16.mxu1 %v11488_v17  ;;  %8265 = vpow2.f32 %v3607_v50  ;;  %v11525_v1 = vsub.f32 %v11523_v2, %v11524_v9 }
 0x975   : > { %v10711_v59 = vpop.eup %8255  ;;  %8267 = vpow2.f32 %v3611_v14 }
 0x976   : > { %v3745_v4 = vpop.permute.xlu1 %3744  ;;  %7764 = vmatmul.mubr.msk.bf16.vlgmr.msra.gmra.mrb[96].mxu1 %vm1918_vm4, %v4365_v0  ;;  %v3740_v19 = vpop.permute.xlu0 %3739  ;;  %v4366_v51 = vpack.c.bf16 %v10711_v59, %v10711_v59  ;;  %v3587_v0 = vmul.f32 1.442695, %v11525_v1 }
 0x977   : > { %v3826_v52 = vsub.f32 %v10146_v35, %v3745_v4  ;;  %7775 = vmatprep.mubr.msk.bf16.mxu1 %vm8964_vm3, %v11488_v17  ;;  %v3825_v24 = vsub.f32 %v10144_v20, %v3740_v19  ;;  %v10716_v35 = vpop.eup %8257 }
 0x978   : > { %4192 = vperm.xlu0 %8186, %v10702_v31   ;;  %v10735_v27 = vpop.eup %8259 }
 0x979   : > { %v3877_v49 = vmul.f32 1.442695, %v3826_v52  ;;  %v3875_v20 = vmul.f32 1.442695, %v3825_v24  ;;  %v10746_v25 = vpop.eup %8261 }
 0x97a   : > { %v1833_v62 = vpop.permute.xlu1 %1832  ;;  %v1831_v8 = vpop.permute.xlu0 %1830 }
 0x97b   : > { %7768 = vmatpush3.bf16.msra.mxu0 %v1831_v8  ;;  %7774 = vmatpush3.bf16.msra.mxu1 %v1833_v62  ;;  %8269 = vpow2.f32 %v3877_v49  ;;  %v4369_v62 = vpack.c.bf16 %v10746_v25, %v10746_v25 }
 0x97c   : > { %4202 = vperm.xlu0 %8186, %v10716_v35   ;;  %3971 = vadd.xlane.f32.xlu1 %v3970_v28  ;;  %8271 = vpow2.f32 %v3875_v20 }
 0x97d   : > { %7779 = vmatprep.subr.bf16.mxu0 %v11488_v17  ;;  %7785 = vmatprep.subr.bf16.mxu1 %v11488_v17  ;;  %8273 = vpow2.f32 %v3583_v18  ;;  %v10753_v50 = vpop.eup %8263 }
 0x97e   : > { %v3755_v55 = vpop.permute.xlu1 %3754  ;;  %7770 = vmatmul.mubr.msk.bf16.vlgmr.msra.gmra.mrb[100].mxu0 %vm1918_vm4, %v4366_v51  ;;  %7776 = vmatmul.mubr.msk.bf16.vlgmr.msra.gmra.mrb[100].mxu1 %vm1918_vm4, %v4367_v45  ;;  %v3750_v47 = vpop.permute.xlu0 %3749  ;;  %8275 = vpow2.f32 %v3615_v44 }
 0x97f   : > { %v3828_v7 = vsub.f32 %v10152_v57, %v3755_v55  ;;  %v10738_v5 = vpop.f32.mrb[76].mxu0  ;;  %7781 = vmatprep.mubr.msk.bf16.mxu0 %vm8964_vm3, %v11488_v17  ;;  %7787 = vmatprep.mubr.msk.bf16.mxu1 %vm8964_vm3, %v11488_v17  ;;  %v3827_v39 = vsub.f32 %v10150_v46, %v3750_v47  ;;  %v3554_v57 = vsub.f32 %v11522_v61, %v10120_v36  ;;  %v10758_v24 = vpop.eup %8265  ;;  %8277 = vpow2.f32 %v3587_v0  ;;  %v11532_v55 = vld [vmem:[#allocation62_spill] sm:$0xff]  ;;  %v11533_v47 = vld [vmem:[#allocation63_spill] sm:$0xff]  ;;  %v11535_v61 = vld [vmem:[#allocation73_spill] sm:$0xff] }
 0x980   : > { %v7699_v12 = vpop.f32.mrb[77].mxu0  ;;  %4212 = vperm.xlu0 %8186, %v10735_v27   ;;  %v11526_v46 = vsub.f32 %v10455_v16, %v10467_v30  ;;  %v4368_v16 = vpack.c.bf16 %v10753_v50, %v10753_v50  ;;  %v11527_v30 = vld [vmem:[#allocation72_spill] sm:$0xff]  ;;  %v10771_v20 = vpop.eup %8267 }
 0x981   : > { %v4510_v15 = vpop.f32.mrb[78].mxu0  ;;  %v3881_v23 = vmul.f32 1.442695, %v3828_v7  ;;  %v3879_v36 = vmul.f32 1.442695, %v3827_v39  ;;  %v11528_v49 = vsub.f32 %v11527_v30, %v10358_v53  ;;  %11529 = vst [vmem:[#allocation49_spill] sm:$0xff] %v10771_v20  ;;  %v11534_v7 = vsub.f32 %v11532_v55, %v11533_v47 }
 0x982   : > { %v3619_v4 = vmul.f32 1.442695, %v11526_v46  ;;  %v7700_v19 = vpop.f32.mrb[79].mxu0  ;;  %v1841_v52 = vpop.permute.xlu1 %1840  ;;  %v3589_v8 = vmul.f32 1.442695, %v3554_v57  ;;  %v11536_v57 = vsub.f32 %v11535_v61, %v10367_v6  ;;  %v11547_v55 = vld [vmem:[#allocation67_spill] sm:$0xff] }
 0x983   : > { %v1839_v14 = vpop.permute.xlu0 %1838  ;;  %7786 = vmatpush3.bf16.msra.mxu1 %v1841_v52  ;;  %v3623_v28 = vmul.f32 1.442695, %v11528_v49  ;;  %v3593_v39 = vmul.f32 1.442695, %v11534_v7  ;;  %v11538_v19 = vld [vmem:[#allocation64_spill] sm:$0xff]  ;;  %v11539_v52 = vld [vmem:[#allocation65_spill] sm:$0xff] }
 0x984   : > { %7780 = vmatpush3.bf16.msra.mxu0 %v1839_v14  ;;  %4222 = vperm.xlu0 %8186, %v10758_v24   ;;  %8279 = vpow2.f32 %v3619_v4  ;;  %v3627_v2 = vmul.f32 1.442695, %v11536_v57  ;;  %v11549_v61 = vld [vmem:[#allocation75_spill] sm:$0xff] }
 0x985   : > { %7791 = vmatprep.subr.bf16.mxu0 %v11488_v17  ;;  %7797 = vmatprep.subr.bf16.mxu1 %v11488_v17  ;;  %8281 = vpow2.f32 %v3881_v23  ;;  %v10781_v53 = vpop.eup %8269  ;;  %v11540_v23 = vsub.f32 %v11538_v19, %v11539_v52  ;;  %v11550_v57 = vsub.f32 %v11549_v61, %v10386_v33  ;;  %v11558_v61 = vld [vmem:[#allocation70_spill] sm:$0xff] }
 0x986   : > { %7788 = vmatmul.mubr.msk.bf16.vlgmr.msra.gmra.mrb[104].mxu1 %vm1918_vm4, %v4369_v62  ;;  %8283 = vpow2.f32 %v3879_v36  ;;  %v10786_v12 = vpop.eup %8271  ;;  %v4371_v36 = vpack.c.bf16 %v10781_v53, %v10781_v53  ;;  %v11541_v62 = vld [vmem:[#allocation74_spill] sm:$0xff] }
 0x987   : > { %v3765_v51 = vpop.permute.xlu1 %3764  ;;  %7782 = vmatmul.mubr.msk.bf16.vlgmr.msra.gmra.mrb[104].mxu0 %vm1918_vm4, %v4368_v16  ;;  %v3760_v45 = vpop.permute.xlu0 %3759  ;;  %7799 = vmatprep.mubr.msk.bf16.mxu1 %vm8964_vm3, %v11488_v17  ;;  %8285 = vpow2.f32 %v3589_v8  ;;  %v3597_v14 = vmul.f32 1.442695, %v11540_v23  ;;  %v4370_v6 = vpack.c.bf16 %v10786_v12, %v10786_v12  ;;  %v11542_v8 = vsub.f32 %v11541_v62, %v10377_v26  ;;  %v11545_v26 = vld [vmem:[#allocation54_spill] sm:$0xff] }
 0x988   : > { %v3830_v18 = vsub.f32 %v11530_v54, %v3765_v51  ;;  %v3829_v44 = vsub.f32 %v11531_v22, %v3760_v45  ;;  %4232 = vperm.xlu0 %8186, %v10771_v20   ;;  %7793 = vmatprep.mubr.msk.bf16.mxu0 %vm8964_vm3, %v11488_v17  ;;  %8287 = vpow2.f32 %v3623_v28  ;;  %v10791_v9 = vpop.eup %8273  ;;  %v11544_v45 = vld [vmem:[#allocation55_spill] sm:$0xff] }
 0x989   : > { %v10793_v46 = vpop.eup %8275  ;;  %8289 = vpow2.f32 %v3593_v39  ;;  %v3631_v16 = vmul.f32 1.442695, %v11542_v8 }
 0x98a   : > { %v3885_v1 = vmul.f32 1.442695, %v3830_v18  ;;  %11537 = vst [vmem:[#allocation50_spill] sm:$0xff] %v10793_v46  ;;  %v3883_v4 = vmul.f32 1.442695, %v3829_v44  ;;  %8291 = vpow2.f32 %v3627_v2  ;;  %v10809_v30 = vpop.eup %8277  ;;  %v11546_v44 = vld [vmem:[#allocation66_spill] sm:$0xff] }
 0x98b   : > { %v1845_v0 = vpop.permute.xlu1 %1844  ;;  %v1843_v15 = vpop.permute.xlu0 %1842  ;;  %v11548_v47 = vsub.f32 %v11546_v44, %v11547_v55  ;;  %v3635_v2 = vmul.f32 1.442695, %v11550_v57  ;;  %v11559_v57 = vld [vmem:[#allocation71_spill] sm:$0xff] }
 0x98c   : > { %7792 = vmatpush3.bf16.msra.mxu0 %v1843_v15  ;;  %7798 = vmatpush3.bf16.msra.mxu1 %v1845_v0  ;;  %8293 = vpow2.f32 %v3885_v1  ;;  %v11551_v1 = vld [vmem:[#allocation76_spill] sm:$0xff] }
 0x98d   : > { %4242 = vperm.xlu0 %8186, %v10793_v46   ;;  %4162 = vperm.xlu1 %8185, %v10791_v9   ;;  %8295 = vpow2.f32 %v3883_v4  ;;  %v3601_v7 = vmul.f32 1.442695, %v11548_v47  ;;  %v3579_v0 = vsub.f32 %v11551_v1, %v10395_v60 }
 0x98e   : > { %7803 = vmatprep.subr.bf16.mxu0 %v11488_v17  ;;  %7809 = vmatprep.subr.bf16.mxu1 %v11488_v17  ;;  %v10813_v51 = vpop.eup %8279  ;;  %8297 = vpow2.f32 %v3597_v14 }
 0x98f   : > { %v3775_v49 = vpop.permute.xlu1 %3774  ;;  %7794 = vmatmul.mubr.msk.bf16.vlgmr.msra.gmra.mrb[108].mxu0 %vm1918_vm4, %v4370_v6  ;;  %7800 = vmatmul.mubr.msk.bf16.vlgmr.msra.gmra.mrb[108].mxu1 %vm1918_vm4, %v4371_v36  ;;  %v3770_v28 = vpop.permute.xlu0 %3769  ;;  %11543 = vst [vmem:[#allocation51_spill] sm:$0xff] %v10813_v51  ;;  %8299 = vpow2.f32 %v3631_v16  ;;  %v11553_v6 = vld [vmem:[#allocation68_spill] sm:$0xff]  ;;  %v11554_v36 = vld [vmem:[#allocation69_spill] sm:$0xff]  ;;  %v3639_v16 = vmul.f32 1.442695, %v3579_v0 }
 0x990   : > { %v3832_v54 = vsub.f32 %v11544_v45, %v3775_v49  ;;  %v3831_v18 = vsub.f32 %v11545_v26, %v3770_v28  ;;  %7805 = vmatprep.mubr.msk.bf16.mxu0 %vm8964_vm3, %v11488_v17  ;;  %7811 = vmatprep.mubr.msk.bf16.mxu1 %vm8964_vm3, %v11488_v17  ;;  %v10821_v22 = vpop.eup %8281  ;;  %8301 = vpow2.f32 %v3601_v7  ;;  %v11555_v62 = vsub.f32 %v11553_v6, %v11554_v36  ;;  %v11557_v26 = vld [vmem:[#allocation56_spill] sm:$0xff] }
 0x991   : > { %4252 = vperm.xlu0 %8186, %v10813_v51   ;;  %4172 = vperm.xlu1 %8185, %v10809_v30   ;;  %v10828_v39 = vpop.eup %8283  ;;  %v4373_v60 = vpack.c.bf16 %v10821_v22, %v10821_v22  ;;  %8303 = vpow2.f32 %v3635_v2  ;;  %v11560_v2 = vsub.f32 %v11558_v61, %v11559_v57  ;;  %v11566_v57 = vld [vmem:[#allocation58_spill] sm:$0xff] }
 0x992   : > { %v10835_v15 = vpop.eup %8285  ;;  %v3889_v4 = vmul.f32 1.442695, %v3832_v54  ;;  %v3887_v14 = vmul.f32 1.442695, %v3831_v18  ;;  %v3605_v8 = vmul.f32 1.442695, %v11555_v62  ;;  %v4372_v33 = vpack.c.bf16 %v10828_v39, %v10828_v39 }
 0x993   : > { %v1853_v19 = vpop.permute.xlu1 %1852  ;;  %v1851_v52 = vpop.permute.xlu0 %1850  ;;  %v3609_v1 = vmul.f32 1.442695, %v11560_v2 }
 0x994   : > { %v10837_v23 = vpop.eup %8287  ;;  %7804 = vmatpush3.bf16.msra.mxu0 %v1851_v52  ;;  %7810 = vmatpush3.bf16.msra.mxu1 %v1853_v19  ;;  %8305 = vpow2.f32 %v3889_v4 }
 0x995   : > { %11552 = vst [vmem:[#allocation72_spill] sm:$0xff] %v10837_v23  ;;  %4262 = vperm.xlu0 %8186, %v10837_v23   ;;  %4177 = vperm.xlu1 %8185, %v10835_v15   ;;  %v10850_v49 = vpop.eup %8289  ;;  %8307 = vpow2.f32 %v3887_v14 }
 0x996   : > { %7815 = vmatprep.subr.bf16.mxu0 %v11488_v17  ;;  %7821 = vmatprep.subr.bf16.mxu1 %v11488_v17  ;;  %v10856_v54 = vpop.eup %8291  ;;  %8309 = vpow2.f32 %v3605_v8 }
 0x997   : > { %v10852_v28 = vpop.permute.xlu1 %3784  ;;  %7806 = vmatmul.mubr.msk.bf16.vlgmr.msra.gmra.mrb[112].mxu0 %vm1918_vm4, %v4372_v33  ;;  %7812 = vmatmul.mubr.msk.bf16.vlgmr.msra.gmra.mrb[112].mxu1 %vm1918_vm4, %v4373_v60  ;;  %v3780_v45 = vpop.permute.xlu0 %3779  ;;  %11556 = vst [vmem:[#allocation53_spill] sm:$0xff] %v10856_v54  ;;  %8311 = vpow2.f32 %v3639_v16  ;;  %v11562_v33 = vld [vmem:[#allocation77_spill] sm:$0xff]  ;;  %v11563_v60 = vld [vmem:[#allocation78_spill] sm:$0xff] }
 0x998   : > { %v3833_v18 = vsub.f32 %v11557_v26, %v3780_v45  ;;  %v10859_v44 = vpop.f32.mrb[76].mxu1  ;;  %7817 = vmatprep.mubr.msk.bf16.mxu0 %vm8964_vm3, %v11488_v17  ;;  %7823 = vmatprep.mubr.msk.bf16.mxu1 %vm8964_vm3, %v11488_v17  ;;  %v10865_v55 = vpop.eup %8293  ;;  %8313 = vpow2.f32 %v3609_v1  ;;  %v11564_v16 = vsub.f32 %v11562_v33, %v11563_v60 }
 0x999   : > { %4272 = vperm.xlu0 %8186, %v10856_v54   ;;  %v7705_v47 = vpop.f32.mrb[77].mxu1  ;;  %4187 = vperm.xlu1 %8185, %v10850_v49   ;;  %v10869_v7 = vpop.eup %8295  ;;  %v4375_v8 = vpack.c.bf16 %v10865_v55, %v10865_v55 }
 0x99a   : > { %v4553_v0 = vpop.f32.mrb[78].mxu1  ;;  %v10874_v4 = vpop.eup %8297  ;;  %v3891_v6 = vmul.f32 1.442695, %v3833_v18  ;;  %v4374_v62 = vpack.c.bf16 %v10869_v7, %v10869_v7  ;;  %v3613_v45 = vmul.f32 1.442695, %v11564_v16 }
 0x99b   : > { %v1857_v19 = vpop.permute.xlu1 %1856  ;;  %v1855_v52 = vpop.permute.xlu0 %1854 }
 0x99c   : > { %v10876_v14 = vpop.eup %8299  ;;  %v7706_v36 = vpop.f32.mrb[79].mxu1  ;;  %7816 = vmatpush3.bf16.msra.mxu0 %v1855_v52  ;;  %7822 = vmatpush3.bf16.msra.mxu1 %v1857_v19  ;;  %8315 = vpow2.f32 %v3891_v6  ;;  %v11567_v19 = vld [vmem:[#allocation79_spill] sm:$0xff]  ;;  %v11568_v52 = vld [vmem:[#allocation80_spill] sm:$0xff] }
 0x99d   : > { %11561 = vst [vmem:[#allocation52_spill] sm:$0xff] %v10876_v14  ;;  %4282 = vperm.xlu0 %8186, %v10876_v14   ;;  %4197 = vperm.xlu1 %8185, %v10874_v4   ;;  %v10889_v26 = vpop.eup %8301  ;;  %8317 = vpow2.f32 %v3613_v45  ;;  %v11569_v6 = vsub.f32 %v11567_v19, %v11568_v52  ;;  %v11572_v19 = vld [vmem:[#allocation83_spill] sm:$0xff] }
 0x99e   : > { %7827 = vmatprep.subr.bf16.mxu0 %v11488_v17  ;;  %7833 = vmatprep.subr.bf16.mxu1 %v11488_v17  ;;  %v10895_v61 = vpop.eup %8303 }
 0x99f   : > { %v10891_v18 = vpop.permute.xlu1 %3794  ;;  %7818 = vmatmul.mubr.msk.bf16.vlgmr.msra.gmra.mrb[116].mxu0 %vm1918_vm4, %v4374_v62  ;;  %7824 = vmatmul.mubr.msk.bf16.vlgmr.msra.gmra.mrb[116].mxu1 %vm1918_vm4, %v4375_v8  ;;  %v3790_v47 = vpop.permute.xlu0 %3789  ;;  %11565 = vst [vmem:[#allocation62_spill] sm:$0xff] %v10895_v61  ;;  %v3617_v36 = vmul.f32 1.442695, %v11569_v6 }
 0x9a0   : > { %v3835_v2 = vsub.f32 %v11566_v57, %v3790_v47  ;;  %7829 = vmatprep.mubr.msk.bf16.mxu0 %vm8964_vm3, %v11488_v17  ;;  %7835 = vmatprep.mubr.msk.bf16.mxu1 %vm8964_vm3, %v11488_v17  ;;  %v10902_v1 = vpop.eup %8305  ;;  %v11571_v57 = vld [vmem:[#allocation82_spill] sm:$0xff] }
 0x9a1   : > { %4292 = vperm.xlu0 %8186, %v10895_v61   ;;  %4207 = vperm.xlu1 %8185, %v10889_v26   ;;  %v10906_v0 = vpop.eup %8307  ;;  %v4377_v47 = vpack.c.bf16 %v10902_v1, %v10902_v1  ;;  %8319 = vpow2.f32 %v3617_v36  ;;  %v11573_v52 = vsub.f32 %v11571_v57, %v11572_v19 }
 0x9a2   : > { %v10911_v62 = vpop.eup %8309  ;;  %v3895_v16 = vmul.f32 1.442695, %v3835_v2  ;;  %v4376_v45 = vpack.c.bf16 %v10906_v0, %v10906_v0 }
 0x9a3   : > { %v1865_v8 = vpop.permute.xlu1 %1864  ;;  %v1863_v33 = vpop.permute.xlu0 %1862  ;;  %v3621_v6 = vmul.f32 1.442695, %v11573_v52 }
 0x9a4   : > { %v10913_v60 = vpop.eup %8311  ;;  %7828 = vmatpush3.bf16.msra.mxu0 %v1863_v33  ;;  %7834 = vmatpush3.bf16.msra.mxu1 %v1865_v8  ;;  %8321 = vpow2.f32 %v3895_v16  ;;  %v11574_v33 = vld [vmem:[#allocation60_spill] sm:$0xff] }
 0x9a5   : > { %11570 = vst [vmem:[#allocation63_spill] sm:$0xff] %v10913_v60  ;;  %4302 = vperm.xlu0 %8186, %v10913_v60   ;;  %4217 = vperm.xlu1 %8185, %v10911_v62   ;;  %v10928_v8 = vpop.eup %8313  ;;  %8323 = vpow2.f32 %v3621_v6 }
 0x9a6   : > { %7839 = vmatprep.subr.bf16.mxu0 %v11488_v17  ;;  %7845 = vmatprep.subr.bf16.mxu1 %v11488_v17  ;;  %v10936_v36 = vpop.eup %8315 }
 0x9a7   : > { %7830 = vmatmul.mubr.msk.bf16.vlgmr.msra.gmra.mrb[120].mxu0 %vm1918_vm4, %v4376_v45  ;;  %7836 = vmatmul.mubr.msk.bf16.vlgmr.msra.gmra.mrb[120].mxu1 %vm1918_vm4, %v4377_v47  ;;  %v3800_v2 = vpop.permute.xlu0 %3799  ;;  %v11575_v45 = vld [vmem:[#allocation85_spill] sm:$0xff]  ;;  %v10941_v52 = vpop.eup %8317 }
 0x9a8   : > { %v3837_v60 = vsub.f32 %v11574_v33, %v3800_v2  ;;  %7841 = vmatprep.mubr.msk.bf16.mxu0 %vm8964_vm3, %v11488_v17  ;;  %7847 = vmatprep.mubr.msk.bf16.mxu1 %vm8964_vm3, %v11488_v17  ;;  %v11576_v47 = vsub.f32 %v11575_v45, %v10481_v13  ;;  %v4378_v2 = vpack.c.bf16 %v10936_v36, %v10936_v36  ;;  %v11577_v33 = vld [vmem:[#allocation86_spill] sm:$0xff] }
 0x9a9   : > { %4227 = vperm.xlu1 %8185, %v10928_v8   ;;  %v11578_v6 = vsub.f32 %v10486_v29, %v11577_v33  ;;  %v11580_v29 = vld [vmem:[#allocation89_spill] sm:$0xff]  ;;  %v11582_v33 = vld [vmem:[#allocation90_spill] sm:$0xff] }
 0x9aa   : > { %v3625_v57 = vmul.f32 1.442695, %v11576_v47  ;;  %v3899_v16 = vmul.f32 1.442695, %v3837_v60  ;;  %v11579_v47 = vld [vmem:[#allocation87_spill] sm:$0xff] }
 0x9ab   : > { %v1867_v19 = vpop.permute.xlu0 %1866  ;;  %v3629_v61 = vmul.f32 1.442695, %v11578_v6  ;;  %v10951_v45 = vpop.eup %8319  ;;  %v11583_v6 = vsub.f32 %v11582_v33, %v10530_v21  ;;  %v11586_v33 = vld [vmem:[#allocation57_spill] sm:$0xff] }
 0x9ac   : > { %7840 = vmatpush3.bf16.msra.mxu0 %v1867_v19  ;;  %8325 = vpow2.f32 %v3625_v57  ;;  %v11581_v57 = vsub.f32 %v11579_v47, %v11580_v29  ;;  %v11584_v29 = vld [vmem:[#allocation91_spill] sm:$0xff] }
 0x9ad   : > { %4237 = vperm.xlu1 %8185, %v10941_v52   ;;  %7851 = vmatprep.subr.bf16.mxu0 %v11488_v17  ;;  %8327 = vpow2.f32 %v3899_v16 }
 0x9ae   : > { %v10957_v60 = vpop.eup %8321  ;;  %8329 = vpow2.f32 %v3629_v61  ;;  %v3633_v19 = vmul.f32 1.442695, %v11581_v57  ;;  %v11585_v57 = vsub.f32 %v11584_v29, %v10542_v41  ;;  %v3982_v41 = vsel %vm1918_vm4, %v10567_v56, 0.0 }
 0x9af   : > { %7842 = vmatmul.mubr.msk.bf16.vlgmr.msra.gmra.mrb[124].mxu0 %vm1918_vm4, %v4378_v2  ;;  %v1875_v13 = vpop.permute.xlu0 %1874  ;;  %v10962_v2 = vpop.eup %8323  ;;  %v4380_v16 = vpack.c.bf16 %v10957_v60, %v10957_v60 }
 0x9b0   : > { %7852 = vmatpush3.bf16.msra.mxu0 %v1875_v13  ;;  %7853 = vmatprep.mubr.msk.bf16.mxu0 %vm8964_vm3, %v11488_v17  ;;  %8331 = vpow2.f32 %v3633_v19  ;;  %v3637_v13 = vmul.f32 1.442695, %v11583_v6  ;;  %v3641_v19 = vmul.f32 1.442695, %v11585_v57 }
 0x9b1   : > { %4247 = vperm.xlu1 %8185, %v10951_v45   ;;  %7863 = vmatprep.subr.bf16.mxu0 %v11488_v17 }
 0x9b2   : > { %8333 = vpow2.f32 %v3637_v13 }
 0x9b3   : > { %v1879_v14 = vpop.permute.xlu0 %1878  ;;  %8335 = vpow2.f32 %v3641_v19 }
 0x9b5   : > { %4257 = vperm.xlu1 %8185, %v10962_v2  }
 0x9b6   : > { %v10971_v61 = vpop.eup %8325 }
 0x9b7   : > { %7854 = vmatmul.mubr.msk.bf16.vlgmr.msra.gmra.mrb[128].mxu0 %vm1918_vm4, %v4380_v16  ;;  %v10976_v47 = vpop.eup %8327  ;;  %v3834_v16 = vsub.f32 %v11586_v33, %v10852_v28  ;;  %v11587_v28 = vld [vmem:[#allocation59_spill] sm:$0xff] }
 0x9b8   : > { %7864 = vmatpush3.bf16.msra.mxu0 %v1879_v14  ;;  %7865 = vmatprep.mubr.msk.bf16.mxu0 %vm8964_vm3, %v11488_v17  ;;  %v10981_v21 = vpop.eup %8329  ;;  %v4382_v14 = vpack.c.bf16 %v10976_v47, %v10976_v47  ;;  %v3836_v33 = vsub.f32 %v11587_v28, %v10891_v18 }
 0x9b9   : > { %4267 = vperm.xlu1 %8185, %v10971_v61   ;;  %v3893_v13 = vmul.f32 1.442695, %v3834_v16  ;;  %v3988_v16 = vsel %vm1918_vm4, %v10587_v38, 0.0 }
 0x9ba   : > { %v10989_v6 = vpop.eup %8331  ;;  %v3897_v56 = vmul.f32 1.442695, %v3836_v33  ;;  %v4000_v33 = vsel %vm1918_vm4, %v10616_v37, 0.0 }
 0x9bb   : > { %8337 = vpow2.f32 %v3893_v13  ;;  %v3994_v13 = vsel %vm1918_vm4, %v10605_v63, 0.0 }
 0x9bc   : > { %v10996_v57 = vpop.eup %8333  ;;  %8339 = vpow2.f32 %v3897_v56 }
 0x9bd   : > { %4277 = vperm.xlu1 %8185, %v10981_v21   ;;  %v11003_v23 = vpop.eup %8335 }
 0x9bf   : > { %7866 = vmatmul.mubr.msk.bf16.vlgmr.msra.gmra.mrb[132].mxu0 %vm1918_vm4, %v4382_v14 }
 0x9c1   : > { %4287 = vperm.xlu1 %8185, %v10989_v6  }
 0x9c3   : > { %v10994_v29 = vpop.f32.mrb[80].mxu0 }
 0x9c4   : > { %3983 = vadd.xlane.f32.xlu0 %v3982_v41  ;;  %v7711_v19 = vpop.f32.mrb[81].mxu0  ;;  %v11588_v41 = vld [vmem:[#allocation61_spill] sm:$0xff] }
 0x9c5   : > { %4297 = vperm.xlu1 %8185, %v10996_v57   ;;  %v4596_v14 = vpop.f32.mrb[82].mxu0 }
 0x9c6   : > { %v7712_v54 = vpop.f32.mrb[83].mxu0  ;;  %v8338_v14 = vpop.eup %8337 }
 0x9c7   : > { %v4379_v20 = vpack.c.bf16 %v8338_v14, %v8338_v14  ;;  %v8340_v37 = vpop.eup %8339 }
 0x9c8   : > { %3989 = vadd.xlane.f32.xlu0 %v3988_v16 }
 0x9c9   : > { %4307 = vperm.xlu1 %8185, %v11003_v23  }
 0x9cb   : > { %v3805_v51 = vpop.permute.xlu1 %3804  ;;  %v11008_v18 = vpop.f32.mrb[84].mxu0 }
 0x9cc   : > { %3995 = vadd.xlane.f32.xlu0 %v3994_v13  ;;  %v3838_v28 = vsub.f32 %v11588_v41, %v3805_v51  ;;  %v7723_v54 = vpop.f32.mrb[85].mxu0  ;;  %v4006_v51 = vsel %vm1918_vm4, %v10687_v10, 0.0 }
 0x9cd   : > { %v4682_v19 = vpop.f32.mrb[86].mxu0  ;;  %v4381_v54 = vpack.c.bf16 %v8340_v37, %v8340_v37 }
 0x9ce   : > { %v7724_v38 = vpop.f32.mrb[87].mxu0  ;;  %v3901_v46 = vmul.f32 1.442695, %v3838_v28  ;;  %v4012_v28 = vsel %vm1918_vm4, %v10707_v48, 0.0  ;;  %v3903_v19 = vld [vmem:[#allocation4] sm:$0xff]  ;;  %v4024_v48 = vsel %vm1918_vm4, %v10781_v53, 0.0 }
 0x9cf   : > { %v1869_v16 = vpop.permute.xlu1 %1868 }
 0x9d0   : > { %4001 = vadd.xlane.f32.xlu0 %v4000_v33  ;;  %7846 = vmatpush3.bf16.msra.mxu1 %v1869_v16  ;;  %8341 = vpow2.f32 %v3901_v46  ;;  %v4018_v46 = vsel %vm1918_vm4, %v10746_v25, 0.0  ;;  %v3935_v33 = vmul.f32 %v10791_v9, %v3903_v19  ;;  %v4129_v19 = vld [vmem:[#allocation5 + $0x8] sm:$0xff] }
 0x9d1   : > { %7857 = vmatprep.subr.bf16.mxu1 %v11488_v17 }
 0x9d3   : > { %v1877_v63 = vpop.permute.xlu1 %1876  ;;  %7848 = vmatmul.mubr.msk.bf16.vlgmr.msra.gmra.mrb[124].mxu1 %vm1918_vm4, %v4379_v20 }
 0x9d4   : > { %4007 = vadd.xlane.f32.xlu0 %v4006_v51  ;;  %7858 = vmatpush3.bf16.msra.mxu1 %v1877_v63  ;;  %v3905_v63 = vld [vmem:[#allocation4 + $0x10] sm:$0xff] }
 0x9d5   : > { %v11017_v56 = vpop.f32.mrb[88].mxu0  ;;  %7859 = vmatprep.mubr.msk.bf16.mxu1 %vm8964_vm3, %v11488_v17  ;;  %7869 = vmatprep.subr.bf16.mxu1 %v11488_v17  ;;  %v3937_v25 = vmul.f32 %v10809_v30, %v3905_v63  ;;  %v4042_v30 = vsel %vm1918_vm4, %v10902_v1, 0.0  ;;  %v4132_v63 = vld [vmem:[#allocation5 + $0x20] sm:$0xff]  ;;  %v4054_v1 = vsel %vm1918_vm4, %v8340_v37, 0.0 }
 0x9d6   : > { %v7735_v13 = vpop.f32.mrb[89].mxu0 }
 0x9d7   : > { %v4768_v41 = vpop.f32.mrb[90].mxu0  ;;  %v1881_v10 = vpop.permute.xlu1 %1880 }
 0x9d8   : > { %4013 = vadd.xlane.f32.xlu0 %v4012_v28  ;;  %v7736_v20 = vpop.f32.mrb[91].mxu0  ;;  %v3906_v28 = vld [vmem:[#allocation4 + $0x18] sm:$0xff] }
 0x9d9   : > { %v3938_v53 = vmul.f32 %v10835_v15, %v3906_v28  ;;  %v4036_v20 = vsel %vm1918_vm4, %v10865_v55, 0.0  ;;  %v11590_v55 = vld [vmem:[#allocation84_spill] sm:$0xff]  ;;  %v4134_v28 = vld [vmem:[#allocation5 + $0x30] sm:$0xff] }
 0x9da   : > { %v8342_v38 = vpop.eup %8341 }
 0x9db   : > { %7860 = vmatmul.mubr.msk.bf16.vlgmr.msra.gmra.mrb[128].mxu1 %vm1918_vm4, %v4381_v54  ;;  %v4383_v13 = vpack.c.bf16 %v8342_v38, %v8342_v38 }
 0x9dc   : > { %7870 = vmatpush3.bf16.msra.mxu1 %v1881_v10  ;;  %4019 = vadd.xlane.f32.xlu0 %v4018_v46 }
 0x9dd   : > { %7871 = vmatprep.mubr.msk.bf16.mxu1 %vm8964_vm3, %v11488_v17  ;;  %v4030_v17 = vsel %vm1918_vm4, %v10821_v22, 0.0  ;;  %v11589_v22 = vld [vmem:[#allocation81_spill] sm:$0xff] }
 0x9de   : > { %v3979_v46 = vsel %vm1918_vm4, %v11589_v22, 0.0  ;;  %v4136_v22 = vld [vmem:[#allocation5 + $0x40] sm:$0xff] }
 0x9df   : > { %v3969_v16 = vpop.xlane.xlu0 %3968 }
 0x9e0   : > { %4025 = vadd.xlane.f32.xlu0 %v4024_v48  ;;  %v4063_v51 = vadd.f32 %v3969_v16, %v3935_v33  ;;  %v4048_v33 = vsel %vm1918_vm4, %v8338_v14, 0.0  ;;  %v3985_v16 = vsel %vm1918_vm4, %v11590_v55, 0.0 }
 0x9e2   : > { %4096 = vst.msk [vmem:[#allocation4] sm:$0xff] %vm4095_vm5, %v4063_v51 }
 0x9e3   : > { %7872 = vmatmul.mubr.msk.bf16.vlgmr.msra.gmra.mrb[132].mxu1 %vm1918_vm4, %v4383_v13  ;;  %v3975_v41 = vpop.xlane.xlu0 %3974 }
 0x9e4   : > { %4031 = vadd.xlane.f32.xlu0 %v4030_v17  ;;  %v4065_v9 = vadd.f32 %v3975_v41, %v3937_v25  ;;  %v11591_v17 = vld [vmem:[#allocation88_spill] sm:$0xff] }
 0x9e5   : > { %v3991_v14 = vsel %vm1918_vm4, %v11591_v17, 0.0 }
 0x9e6   : > { %4098 = vst.msk [vmem:[#allocation4 + $0x10] sm:$0xff] %vm4095_vm5, %v4065_v9 }
 0x9e7   : > { %v3978_v54 = vpop.xlane.xlu0 %3977 }
 0x9e8   : > { %4037 = vadd.xlane.f32.xlu0 %v4036_v20  ;;  %v4066_v10 = vadd.f32 %v3978_v54, %v3938_v53 }
 0x9ea   : > { %4099 = vst.msk [vmem:[#allocation4 + $0x18] sm:$0xff] %vm4095_vm5, %v4066_v10 }
 0x9ec   : > { %4043 = vadd.xlane.f32.xlu0 %v4042_v30  ;;  %v3997_v30 = vsel %vm1918_vm4, %v10621_v3, 0.0  ;;  %v11592_v3 = vsub.f32 %v10571_v43, %v10578_v40 }
 0x9ed   : > { %3980 = vadd.xlane.f32.xlu1 %v3979_v46 }
 0x9ee   : > { %v3643_v55 = vmul.f32 1.442695, %v11592_v3 }
 0x9ef   : > { %v4168_v15 = vpop.permute.xlu0 %4167 }
 0x9f0   : > { %4049 = vadd.xlane.f32.xlu0 %v4048_v33  ;;  %v4321_v48 = vmul.f32 %v4168_v15, %v4129_v19  ;;  %8343 = vpow2.f32 %v3643_v55 }
 0x9f1   : > { %3986 = vadd.xlane.f32.xlu1 %v3985_v16 }
 0x9f2   : > { %v5761_v51 = vadd.f32 %v10643_v58, %v4321_v48  ;;  %v4060_v58 = vsel %vm1918_vm4, %v8342_v38, 0.0  ;;  %v4003_v38 = vsel %vm1918_vm4, %v10634_v32, 0.0  ;;  %v4015_v32 = vsel %vm1918_vm4, %v10753_v50, 0.0 }
 0x9f3   : > { %v4183_v13 = vpop.permute.xlu0 %4182 }
 0x9f4   : > { %5793 = vst.msk [vmem:[#allocation5 + $0x8] sm:$0xff] %vm1918_vm4, %v5761_v51  ;;  %4055 = vadd.xlane.f32.xlu0 %v4054_v1  ;;  %v4324_v25 = vmul.f32 %v4183_v13, %v4132_v63  ;;  %v4009_v63 = vsel %vm1918_vm4, %v10711_v59, 0.0  ;;  %v4138_v13 = vld [vmem:[#allocation5 + $0x50] sm:$0xff] }
 0x9f5   : > { %v11054_v41 = vpop.f32.mrb[80].mxu1  ;;  %3992 = vadd.xlane.f32.xlu1 %v3991_v14  ;;  %v4021_v14 = vsel %vm1918_vm4, %v10786_v12, 0.0 }
 0x9f6   : > { %v5764_v9 = vadd.f32 %v10994_v29, %v4324_v25  ;;  %v7717_v53 = vpop.f32.mrb[81].mxu1 }
 0x9f7   : > { %v4639_v20 = vpop.f32.mrb[82].mxu1  ;;  %v4193_v54 = vpop.permute.xlu0 %4192 }
 0x9f8   : > { %5796 = vst.msk [vmem:[#allocation5 + $0x20] sm:$0xff] %vm1918_vm4, %v5764_v9  ;;  %4061 = vadd.xlane.f32.xlu0 %v4060_v58  ;;  %v4326_v37 = vmul.f32 %v4193_v54, %v4134_v28  ;;  %v7718_v10 = vpop.f32.mrb[83].mxu1  ;;  %v4128_v58 = vld [vmem:[#allocation5] sm:$0xff]  ;;  %v4027_v54 = vsel %vm1918_vm4, %v10828_v39, 0.0  ;;  %v4033_v39 = vsel %vm1918_vm4, %v10869_v7, 0.0 }
 0x9f9   : > { %3998 = vadd.xlane.f32.xlu1 %v3997_v30 }
 0x9fa   : > { %v5766_v46 = vadd.f32 %v11008_v18, %v4326_v37  ;;  %v11084_v37 = vpop.eup %8343 }
 0x9fb   : > { %v4203_v19 = vpop.permute.xlu0 %4202 }
 0x9fc   : > { %5798 = vst.msk [vmem:[#allocation5 + $0x30] sm:$0xff] %vm1918_vm4, %v5766_v46  ;;  %v4328_v29 = vmul.f32 %v4203_v19, %v4136_v22  ;;  %v4140_v22 = vld [vmem:[#allocation5 + $0x60] sm:$0xff] }
 0x9fd   : > { %v11065_v33 = vpop.f32.mrb[84].mxu1  ;;  %4004 = vadd.xlane.f32.xlu1 %v4003_v38 }
 0x9fe   : > { %v5768_v15 = vadd.f32 %v11017_v56, %v4328_v29  ;;  %v7729_v48 = vpop.f32.mrb[85].mxu1  ;;  %v3904_v56 = vld [vmem:[#allocation4 + $0x8] sm:$0xff] }
 0x9ff   : > { %v4725_v16 = vpop.f32.mrb[86].mxu1  ;;  %v4213_v43 = vpop.permute.xlu0 %4212  ;;  %v3936_v17 = vmul.f32 %v10682_v42, %v3904_v56 }
 0xa00   : > { %5800 = vst.msk [vmem:[#allocation5 + $0x40] sm:$0xff] %vm1918_vm4, %v5768_v15  ;;  %v7730_v18 = vpop.f32.mrb[87].mxu1  ;;  %v4330_v28 = vmul.f32 %v4213_v43, %v4138_v13  ;;  %v4130_v15 = vld [vmem:[#allocation5 + $0x10] sm:$0xff]  ;;  %v4039_v13 = vsel %vm1918_vm4, %v10906_v0, 0.0  ;;  %v4135_v0 = vld [vmem:[#allocation5 + $0x38] sm:$0xff] }
 0xa01   : > { %4010 = vadd.xlane.f32.xlu1 %v4009_v63 }
 0xa03   : > { %v4223_v46 = vpop.permute.xlu0 %4222 }
 0xa04   : > { %v4332_v55 = vmul.f32 %v4223_v46, %v4140_v22  ;;  %v4139_v46 = vld [vmem:[#allocation5 + $0x58] sm:$0xff] }
 0xa05   : > { %v11076_v51 = vpop.f32.mrb[88].mxu1  ;;  %4016 = vadd.xlane.f32.xlu1 %v4015_v32 }
 0xa06   : > { %v7741_v1 = vpop.f32.mrb[89].mxu1 }
 0xa07   : > { %v4811_v40 = vpop.f32.mrb[90].mxu1  ;;  %v4131_v1 = vld [vmem:[#allocation5 + $0x18] sm:$0xff] }
 0xa08   : > { %v7742_v25 = vpop.f32.mrb[91].mxu1 }
 0xa09   : > { %v3972_v59 = vpop.xlane.xlu1 %3971  ;;  %4022 = vadd.xlane.f32.xlu1 %v4021_v14  ;;  %v4045_v14 = vsel %vm1918_vm4, %v10936_v36, 0.0 }
 0xa0a   : > { %v4064_v9 = vadd.f32 %v3972_v59, %v3936_v17  ;;  %v4133_v17 = vld [vmem:[#allocation5 + $0x28] sm:$0xff] }
 0xa0b   : > { %v4851_v53 = vpop.f32.mrb[92].mxu0 }
 0xa0c   : > { %4097 = vst.msk [vmem:[#allocation4 + $0x8] sm:$0xff] %vm4095_vm5, %v4064_v9  ;;  %v5770_v50 = vadd.f32 %v4851_v53, %v4330_v28  ;;  %v7747_v20 = vpop.f32.mrb[93].mxu0  ;;  %v4051_v9 = vsel %vm1918_vm4, %v10957_v60, 0.0  ;;  %v4233_v60 = vpop.permute.xlu0 %4232 }
 0xa0d   : > { %v4854_v10 = vpop.f32.mrb[94].mxu0  ;;  %v11086_v42 = vpop.f32.mrb[92].mxu1  ;;  %4028 = vadd.xlane.f32.xlu1 %v4027_v54 }
 0xa0e   : > { %5802 = vst.msk [vmem:[#allocation5 + $0x50] sm:$0xff] %vm1918_vm4, %v5770_v50  ;;  %v4163_v12 = vpop.permute.xlu1 %4162  ;;  %4312 = vperm.xlu0 %8186, %v11084_v37   ;;  %v7748_v30 = vpop.f32.mrb[95].mxu0  ;;  %v11593_v10 = vld [vmem:[#allocation92_spill] sm:$0xff] }
 0xa0f   : > { %v4320_v19 = vmul.f32 %v4163_v12, %v4128_v58  ;;  %v7753_v29 = vpop.f32.mrb[93].mxu1  ;;  %v4137_v58 = vld [vmem:[#allocation5 + $0x48] sm:$0xff] }
 0xa10   : > { %v4897_v38 = vpop.f32.mrb[94].mxu1  ;;  %v11594_v12 = vld [vmem:[#allocation93_spill] sm:$0xff] }
 0xa11   : > { %v5760_v48 = vadd.f32 %v10669_v11, %v4320_v19  ;;  %v7754_v3 = vpop.f32.mrb[95].mxu1  ;;  %4034 = vadd.xlane.f32.xlu1 %v4033_v39  ;;  %v11595_v30 = vsub.f32 %v11593_v10, %v11594_v12  ;;  %v4243_v38 = vpop.permute.xlu0 %4242 }
 0xa12   : > { %v4173_v16 = vpop.permute.xlu1 %4172 }
 0xa13   : > { %5792 = vst.msk [vmem:[#allocation5] sm:$0xff] %vm1918_vm4, %v5760_v48  ;;  %v4322_v18 = vmul.f32 %v4173_v16, %v4130_v15  ;;  %v4937_v63 = vpop.f32.mrb[96].mxu0  ;;  %v3645_v22 = vmul.f32 1.442695, %v11595_v30 }
 0xa14   : > { %v5772_v32 = vadd.f32 %v4937_v63, %v4332_v55  ;;  %v7759_v56 = vpop.f32.mrb[97].mxu0 }
 0xa15   : > { %v5762_v43 = vadd.f32 %v10738_v5, %v4322_v18  ;;  %v4940_v40 = vpop.f32.mrb[98].mxu0  ;;  %4040 = vadd.xlane.f32.xlu1 %v4039_v13  ;;  %8345 = vpow2.f32 %v3645_v22  ;;  %v11118_v15 = vpop.permute.xlu0 %4252  ;;  %v4141_v18 = vld [vmem:[#allocation5 + $0x68] sm:$0xff] }
 0xa16   : > { %5804 = vst.msk [vmem:[#allocation5 + $0x60] sm:$0xff] %vm1918_vm4, %v5772_v32  ;;  %v4178_v11 = vpop.permute.xlu1 %4177  ;;  %v7760_v7 = vpop.f32.mrb[99].mxu0 }
 0xa17   : > { %5794 = vst.msk [vmem:[#allocation5 + $0x10] sm:$0xff] %vm1918_vm4, %v5762_v43  ;;  %v4323_v25 = vmul.f32 %v4178_v11, %v4131_v1  ;;  %v4142_v11 = vld [vmem:[#allocation5 + $0x70] sm:$0xff] }
 0xa19   : > { %v5763_v59 = vadd.f32 %v10859_v44, %v4323_v25  ;;  %4046 = vadd.xlane.f32.xlu1 %v4045_v14  ;;  %v4057_v44 = vsel %vm1918_vm4, %v10976_v47, 0.0  ;;  %v11123_v48 = vpop.permute.xlu0 %4262  ;;  %v3908_v25 = vld [vmem:[#allocation4 + $0x28] sm:$0xff]  ;;  %v4334_v14 = vmul.f32 %v4233_v60, %v4142_v11 }
 0xa1a   : > { %v4188_v28 = vpop.permute.xlu1 %4187 }
 0xa1b   : > { %5795 = vst.msk [vmem:[#allocation5 + $0x18] sm:$0xff] %vm1918_vm4, %v5763_v59  ;;  %v4325_v5 = vmul.f32 %v4188_v28, %v4133_v17  ;;  %v4143_v17 = vld [vmem:[#allocation5 + $0x78] sm:$0xff]  ;;  %v3940_v28 = vmul.f32 %v10850_v49, %v3908_v25  ;;  %v4145_v49 = vld [vmem:[#allocation5 + $0x88] sm:$0xff] }
 0xa1d   : > { %v5765_v53 = vadd.f32 %v11054_v41, %v4325_v5  ;;  %4052 = vadd.xlane.f32.xlu1 %v4051_v9  ;;  %v11125_v3 = vpop.permute.xlu0 %4272 }
 0xa1e   : > { %v4198_v50 = vpop.permute.xlu1 %4197 }
 0xa1f   : > { %5797 = vst.msk [vmem:[#allocation5 + $0x28] sm:$0xff] %vm1918_vm4, %v5765_v53  ;;  %v4327_v20 = vmul.f32 %v4198_v50, %v4135_v0  ;;  %v11120_v39 = vpop.eup %8345  ;;  %v3910_v53 = vld [vmem:[#allocation4 + $0x38] sm:$0xff] }
 0xa20   : > { %v3942_v22 = vmul.f32 %v10874_v4, %v3910_v53 }
 0xa21   : > { %v5767_v36 = vadd.f32 %v11065_v33, %v4327_v20  ;;  %4058 = vadd.xlane.f32.xlu1 %v4057_v44  ;;  %v11127_v55 = vpop.permute.xlu0 %4282 }
 0xa22   : > { %v4208_v54 = vpop.permute.xlu1 %4207 }
 0xa23   : > { %5799 = vst.msk [vmem:[#allocation5 + $0x38] sm:$0xff] %vm1918_vm4, %v5767_v36  ;;  %v4329_v41 = vmul.f32 %v4208_v54, %v4137_v58 }
 0xa25   : > { %v5769_v19 = vadd.f32 %v11076_v51, %v4329_v41  ;;  %v11129_v63 = vpop.permute.xlu0 %4292 }
 0xa26   : > { %v4218_v29 = vpop.permute.xlu1 %4217 }
 0xa27   : > { %5801 = vst.msk [vmem:[#allocation5 + $0x48] sm:$0xff] %vm1918_vm4, %v5769_v19  ;;  %v4331_v47 = vmul.f32 %v4218_v29, %v4139_v46  ;;  %v3912_v46 = vld [vmem:[#allocation4 + $0x48] sm:$0xff]  ;;  %v4144_v19 = vld [vmem:[#allocation5 + $0x80] sm:$0xff] }
 0xa29   : > { %v5771_v33 = vadd.f32 %v11086_v42, %v4331_v47  ;;  %v11132_v7 = vpop.permute.xlu0 %4302 }
 0xa2a   : > { %v4228_v51 = vpop.permute.xlu1 %4227 }
 0xa2b   : > { %5803 = vst.msk [vmem:[#allocation5 + $0x58] sm:$0xff] %vm1918_vm4, %v5771_v33  ;;  %v4333_v42 = vmul.f32 %v4228_v51, %v4141_v18  ;;  %v3944_v51 = vmul.f32 %v10889_v26, %v3912_v46  ;;  %v4148_v46 = vld [vmem:[#allocation5 + $0xa0] sm:$0xff] }
 0xa2e   : > { %v4238_v16 = vpop.permute.xlu1 %4237 }
 0xa2f   : > { %v4335_v5 = vmul.f32 %v4238_v16, %v4143_v17  ;;  %v4336_v16 = vmul.f32 %v4243_v38, %v4144_v19 }
 0xa32   : > { %4317 = vperm.xlu1 %8185, %v11120_v39   ;;  %v4248_v56 = vpop.permute.xlu1 %4247 }
 0xa33   : > { %v4337_v47 = vmul.f32 %v4248_v56, %v4145_v49 }
 0xa36   : > { %v4258_v59 = vpop.permute.xlu1 %4257 }
 0xa3a   : > { %v4268_v33 = vpop.permute.xlu1 %4267 }
 0xa49   : > { %v4980_v32 = vpop.f32.mrb[96].mxu1 }
 0xa4a   : > { %v5773_v1 = vadd.f32 %v4980_v32, %v4333_v42  ;;  %v7765_v13 = vpop.f32.mrb[97].mxu1  ;;  %v3914_v32 = vld [vmem:[#allocation4 + $0x58] sm:$0xff] }
 0xa4b   : > { %v4983_v43 = vpop.f32.mrb[98].mxu1 }
 0xa4c   : > { %5805 = vst.msk [vmem:[#allocation5 + $0x68] sm:$0xff] %vm1918_vm4, %v5773_v1  ;;  %v7766_v40 = vpop.f32.mrb[99].mxu1 }
 0xa51   : > { %v3984_v0 = vpop.xlane.xlu0 %3983  ;;  %v5023_v9 = vpop.f32.mrb[100].mxu0 }
 0xa52   : > { %v4068_v50 = vadd.f32 %v3984_v0, %v3940_v28  ;;  %v5774_v20 = vadd.f32 %v5023_v9, %v4334_v14  ;;  %v5066_v58 = vpop.f32.mrb[100].mxu1  ;;  %v7771_v44 = vpop.f32.mrb[101].mxu0  ;;  %v3946_v14 = vmul.f32 %v10911_v62, %v3914_v32  ;;  %v3916_v28 = vld [vmem:[#allocation4 + $0x68] sm:$0xff]  ;;  %v4147_v0 = vld [vmem:[#allocation5 + $0x98] sm:$0xff] }
 0xa53   : > { %v5775_v36 = vadd.f32 %v5066_v58, %v4335_v5  ;;  %v7777_v54 = vpop.f32.mrb[101].mxu1  ;;  %v5026_v10 = vpop.f32.mrb[102].mxu0  ;;  %v4146_v5 = vld [vmem:[#allocation5 + $0x90] sm:$0xff]  ;;  %v3948_v53 = vmul.f32 %v10928_v8, %v3916_v28  ;;  %v3924_v28 = vld [vmem:[#allocation4 + $0xa8] sm:$0xff] }
 0xa54   : > { %4101 = vst.msk [vmem:[#allocation4 + $0x28] sm:$0xff] %vm4095_vm5, %v4068_v50  ;;  %v5069_v12 = vpop.f32.mrb[102].mxu1  ;;  %v7772_v30 = vpop.f32.mrb[103].mxu0  ;;  %v4338_v50 = vmul.f32 %v11118_v15, %v4146_v5  ;;  %v3918_v10 = vld [vmem:[#allocation4 + $0x78] sm:$0xff] }
 0xa55   : > { %5806 = vst.msk [vmem:[#allocation5 + $0x70] sm:$0xff] %vm1918_vm4, %v5774_v20  ;;  %5807 = vst.msk [vmem:[#allocation5 + $0x78] sm:$0xff] %vm1918_vm4, %v5775_v36  ;;  %v7778_v60 = vpop.f32.mrb[103].mxu1  ;;  %v3990_v41 = vpop.xlane.xlu0 %3989  ;;  %v4339_v20 = vmul.f32 %v4258_v59, %v4147_v0  ;;  %v3950_v59 = vmul.f32 %v10941_v52, %v3918_v10  ;;  %v4151_v5 = vld [vmem:[#allocation5 + $0xb8] sm:$0xff] }
 0xa56   : > { %v4070_v29 = vadd.f32 %v3990_v41, %v3942_v22  ;;  %v4278_v58 = vpop.permute.xlu1 %4277 }
 0xa58   : > { %4103 = vst.msk [vmem:[#allocation4 + $0x38] sm:$0xff] %vm4095_vm5, %v4070_v29  ;;  %v3920_v29 = vld [vmem:[#allocation4 + $0x88] sm:$0xff] }
 0xa59   : > { %v3996_v18 = vpop.xlane.xlu0 %3995  ;;  %v5152_v42 = vpop.f32.mrb[104].mxu1 }
 0xa5a   : > { %v4072_v1 = vadd.f32 %v3996_v18, %v3944_v51  ;;  %v5109_v4 = vpop.f32.mrb[104].mxu0  ;;  %v5777_v13 = vadd.f32 %v5152_v42, %v4337_v47  ;;  %v7789_v43 = vpop.f32.mrb[105].mxu1  ;;  %v4149_v47 = vld [vmem:[#allocation5 + $0xa8] sm:$0xff]  ;;  %v3952_v42 = vmul.f32 %v10951_v45, %v3920_v29  ;;  %v4150_v45 = vld [vmem:[#allocation5 + $0xb0] sm:$0xff]  ;;  %v3907_v29 = vld [vmem:[#allocation4 + $0x20] sm:$0xff] }
 0xa5b   : > { %v5776_v40 = vadd.f32 %v5109_v4, %v4336_v16  ;;  %v7783_v11 = vpop.f32.mrb[105].mxu0  ;;  %v5155_v25 = vpop.f32.mrb[106].mxu1  ;;  %v4340_v16 = vmul.f32 %v11123_v48, %v4148_v46  ;;  %v4341_v32 = vmul.f32 %v4268_v33, %v4149_v47 }
 0xa5c   : > { %4105 = vst.msk [vmem:[#allocation4 + $0x48] sm:$0xff] %vm4095_vm5, %v4072_v1  ;;  %v5112_v56 = vpop.f32.mrb[106].mxu0  ;;  %v7790_v17 = vpop.f32.mrb[107].mxu1 }
 0xa5d   : > { %5809 = vst.msk [vmem:[#allocation5 + $0x88] sm:$0xff] %vm1918_vm4, %v5777_v13  ;;  %5808 = vst.msk [vmem:[#allocation5 + $0x80] sm:$0xff] %vm1918_vm4, %v5776_v40  ;;  %v7784_v26 = vpop.f32.mrb[107].mxu0  ;;  %v4002_v38 = vpop.xlane.xlu0 %4001  ;;  %v3922_v13 = vld [vmem:[#allocation4 + $0x98] sm:$0xff] }
 0xa5e   : > { %v4074_v9 = vadd.f32 %v4002_v38, %v3946_v14  ;;  %v4288_v18 = vpop.permute.xlu1 %4287  ;;  %v3954_v26 = vmul.f32 %v10962_v2, %v3922_v13  ;;  %v3926_v2 = vld [vmem:[#allocation4 + $0xb8] sm:$0xff] }
 0xa60   : > { %4107 = vst.msk [vmem:[#allocation4 + $0x58] sm:$0xff] %vm4095_vm5, %v4074_v9  ;;  %v4342_v9 = vmul.f32 %v11125_v3, %v4150_v45 }
 0xa61   : > { %v4008_v44 = vpop.xlane.xlu0 %4007 }
 0xa62   : > { %v4076_v36 = vadd.f32 %v4008_v44, %v3948_v53  ;;  %v5195_v54 = vpop.f32.mrb[108].mxu0  ;;  %v5238_v62 = vpop.f32.mrb[108].mxu1 }
 0xa63   : > { %v5778_v12 = vadd.f32 %v5195_v54, %v4338_v50  ;;  %v5779_v30 = vadd.f32 %v5238_v62, %v4339_v20  ;;  %v7795_v22 = vpop.f32.mrb[109].mxu0  ;;  %v7801_v49 = vpop.f32.mrb[109].mxu1  ;;  %v3956_v50 = vmul.f32 %v10971_v61, %v3924_v28  ;;  %v4343_v20 = vmul.f32 %v4278_v58, %v4151_v5  ;;  %v4152_v61 = vld [vmem:[#allocation5 + $0xc0] sm:$0xff] }
 0xa64   : > { %4109 = vst.msk [vmem:[#allocation4 + $0x68] sm:$0xff] %vm4095_vm5, %v4076_v36  ;;  %v5198_v60 = vpop.f32.mrb[110].mxu0  ;;  %v5241_v41 = vpop.f32.mrb[110].mxu1  ;;  %v4344_v47 = vmul.f32 %v11127_v55, %v4152_v61  ;;  %v3911_v28 = vld [vmem:[#allocation4 + $0x40] sm:$0xff] }
 0xa65   : > { %5810 = vst.msk [vmem:[#allocation5 + $0x90] sm:$0xff] %vm1918_vm4, %v5778_v12  ;;  %5811 = vst.msk [vmem:[#allocation5 + $0x98] sm:$0xff] %vm1918_vm4, %v5779_v30  ;;  %v7796_v8 = vpop.f32.mrb[111].mxu0  ;;  %v7802_v15 = vpop.f32.mrb[111].mxu1  ;;  %v3958_v41 = vmul.f32 %v10981_v21, %v3926_v2  ;;  %v3934_v2 = vld [vmem:[#allocation4 + $0xf8] sm:$0xff] }
 0xa66   : > { %v4014_v19 = vpop.xlane.xlu0 %4013  ;;  %v11160_v53 = vpop.permute.xlu1 %4297  ;;  %v3928_v15 = vld [vmem:[#allocation4 + $0xc8] sm:$0xff] }
 0xa67   : > { %v4078_v51 = vadd.f32 %v4014_v19, %v3950_v59  ;;  %v4153_v59 = vld [vmem:[#allocation5 + $0xc8] sm:$0xff] }
 0xa69   : > { %4111 = vst.msk [vmem:[#allocation4 + $0x78] sm:$0xff] %vm4095_vm5, %v4078_v51  ;;  %v3960_v51 = vmul.f32 %v10989_v6, %v3928_v15 }
 0xa6a   : > { %v4020_v1 = vpop.xlane.xlu0 %4019  ;;  %v5281_v4 = vpop.f32.mrb[112].mxu0 }
 0xa6b   : > { %v4080_v43 = vadd.f32 %v4020_v1, %v3952_v42  ;;  %v5780_v40 = vadd.f32 %v5281_v4, %v4340_v16  ;;  %v5324_v11 = vpop.f32.mrb[112].mxu1  ;;  %v7807_v52 = vpop.f32.mrb[113].mxu0  ;;  %v4345_v16 = vmul.f32 %v4288_v18, %v4153_v59  ;;  %v4154_v18 = vld [vmem:[#allocation5 + $0xd0] sm:$0xff] }
 0xa6c   : > { %v5781_v25 = vadd.f32 %v5324_v11, %v4341_v32  ;;  %v7813_v56 = vpop.f32.mrb[113].mxu1  ;;  %v5284_v17 = vpop.f32.mrb[114].mxu0  ;;  %v3939_v32 = vmul.f32 %v10692_v34, %v3907_v29  ;;  %v3909_v11 = vld [vmem:[#allocation4 + $0x30] sm:$0xff] }
 0xa6d   : > { %4113 = vst.msk [vmem:[#allocation4 + $0x88] sm:$0xff] %vm4095_vm5, %v4080_v43  ;;  %v5327_v48 = vpop.f32.mrb[114].mxu1  ;;  %v7808_v14 = vpop.f32.mrb[115].mxu0 }
 0xa6e   : > { %5812 = vst.msk [vmem:[#allocation5 + $0xa0] sm:$0xff] %vm1918_vm4, %v5780_v40  ;;  %5813 = vst.msk [vmem:[#allocation5 + $0xa8] sm:$0xff] %vm1918_vm4, %v5781_v25  ;;  %v7814_v33 = vpop.f32.mrb[115].mxu1  ;;  %v4026_v38 = vpop.xlane.xlu0 %4025  ;;  %v3930_v40 = vld [vmem:[#allocation4 + $0xd8] sm:$0xff] }
 0xa6f   : > { %v4082_v0 = vadd.f32 %v4026_v38, %v3954_v26  ;;  %v11168_v46 = vpop.permute.xlu1 %4307  ;;  %v3962_v14 = vmul.f32 %v10996_v57, %v3930_v40  ;;  %v3941_v26 = vmul.f32 %v10702_v31, %v3909_v11  ;;  %v3932_v38 = vld [vmem:[#allocation4 + $0xe8] sm:$0xff] }
 0xa71   : > { %4115 = vst.msk [vmem:[#allocation4 + $0x98] sm:$0xff] %vm4095_vm5, %v4082_v0 }
 0xa72   : > { %v4032_v44 = vpop.xlane.xlu0 %4031  ;;  %v5367_v36 = vpop.f32.mrb[116].mxu0 }
 0xa73   : > { %v4084_v54 = vadd.f32 %v4032_v44, %v3956_v50  ;;  %v5782_v62 = vadd.f32 %v5367_v36, %v4342_v9  ;;  %v5410_v10 = vpop.f32.mrb[116].mxu1  ;;  %v7819_v12 = vpop.f32.mrb[117].mxu0  ;;  %v4346_v9 = vmul.f32 %v11129_v63, %v4154_v18  ;;  %v3964_v50 = vmul.f32 %v11003_v23, %v3932_v38  ;;  %v11598_v18 = vld [vmem:[#allocation51_spill] sm:$0xff] }
 0xa74   : > { %v5783_v30 = vadd.f32 %v5410_v10, %v4343_v20  ;;  %v7825_v22 = vpop.f32.mrb[117].mxu1  ;;  %v5370_v49 = vpop.f32.mrb[118].mxu0  ;;  %v3943_v44 = vmul.f32 %v10716_v35, %v3911_v28  ;;  %v3925_v28 = vld [vmem:[#allocation4 + $0xb0] sm:$0xff] }
 0xa75   : > { %4117 = vst.msk [vmem:[#allocation4 + $0xa8] sm:$0xff] %vm4095_vm5, %v4084_v54  ;;  %v5413_v3 = vpop.f32.mrb[118].mxu1  ;;  %v7820_v60 = vpop.f32.mrb[119].mxu0  ;;  %v3913_v54 = vld [vmem:[#allocation4 + $0x50] sm:$0xff]  ;;  %v3966_v22 = vmul.f32 %v11120_v39, %v3934_v2 }
 0xa76   : > { %5814 = vst.msk [vmem:[#allocation5 + $0xb0] sm:$0xff] %vm1918_vm4, %v5782_v62  ;;  %5815 = vst.msk [vmem:[#allocation5 + $0xb8] sm:$0xff] %vm1918_vm4, %v5783_v30  ;;  %v7826_v58 = vpop.f32.mrb[119].mxu1  ;;  %v4038_v8 = vpop.xlane.xlu0 %4037  ;;  %v4156_v30 = vld [vmem:[#allocation5 + $0xe0] sm:$0xff]  ;;  %v3945_v35 = vmul.f32 %v10735_v27, %v3913_v54  ;;  %v3917_v39 = vld [vmem:[#allocation4 + $0x70] sm:$0xff] }
 0xa77   : > { %v4086_v19 = vadd.f32 %v4038_v8, %v3958_v41  ;;  %v3915_v60 = vld [vmem:[#allocation4 + $0x60] sm:$0xff]  ;;  %v4348_v58 = vmul.f32 %v11132_v7, %v4156_v30  ;;  %v3929_v54 = vld [vmem:[#allocation4 + $0xd0] sm:$0xff] }
 0xa78   : > { %v3947_v15 = vmul.f32 %v10758_v24, %v3915_v60 }
 0xa79   : > { %4119 = vst.msk [vmem:[#allocation4 + $0xb8] sm:$0xff] %vm4095_vm5, %v4086_v19 }
 0xa7a   : > { %v4044_v42 = vpop.xlane.xlu0 %4043  ;;  %v5453_v21 = vpop.f32.mrb[120].mxu0 }
 0xa7b   : > { %v4088_v1 = vadd.f32 %v4044_v42, %v3960_v51  ;;  %v5784_v4 = vadd.f32 %v5453_v21, %v4344_v47  ;;  %v5496_v13 = vpop.f32.mrb[120].mxu1  ;;  %v3981_v43 = vpop.xlane.xlu1 %3980  ;;  %v11596_v42 = vld [vmem:[#allocation49_spill] sm:$0xff] }
 0xa7c   : > { %v5785_v52 = vadd.f32 %v5496_v13, %v4345_v16  ;;  %v4067_v25 = vadd.f32 %v3981_v43, %v3939_v32  ;;  %v7831_v56 = vpop.f32.mrb[121].mxu0  ;;  %v7837_v17 = vpop.f32.mrb[121].mxu1  ;;  %v4158_v16 = vld [vmem:[#allocation5 + $0xf0] sm:$0xff]  ;;  %v3949_v21 = vmul.f32 %v11596_v42, %v3917_v39 }
 0xa7d   : > { %4121 = vst.msk [vmem:[#allocation4 + $0xc8] sm:$0xff] %vm4095_vm5, %v4088_v1  ;;  %v5456_v6 = vpop.f32.mrb[122].mxu0  ;;  %v5499_v55 = vpop.f32.mrb[122].mxu1  ;;  %v3919_v1 = vld [vmem:[#allocation4 + $0x80] sm:$0xff]  ;;  %v11597_v43 = vld [vmem:[#allocation50_spill] sm:$0xff] }
 0xa7e   : > { %5816 = vst.msk [vmem:[#allocation5 + $0xc0] sm:$0xff] %vm1918_vm4, %v5784_v4  ;;  %5817 = vst.msk [vmem:[#allocation5 + $0xc8] sm:$0xff] %vm1918_vm4, %v5785_v52  ;;  %v7832_v34 = vpop.f32.mrb[123].mxu0  ;;  %v7838_v48 = vpop.f32.mrb[123].mxu1  ;;  %v3951_v40 = vmul.f32 %v11597_v43, %v3919_v1  ;;  %v3921_v56 = vld [vmem:[#allocation4 + $0x90] sm:$0xff] }
 0xa7f   : > { %4100 = vst.msk [vmem:[#allocation4 + $0x20] sm:$0xff] %vm4095_vm5, %v4067_v25  ;;  %v4050_v45 = vpop.xlane.xlu0 %4049  ;;  %v3987_v33 = vpop.xlane.xlu1 %3986  ;;  %v3953_v34 = vmul.f32 %v11598_v18, %v3921_v56  ;;  %v5901_v56 = vld [vmem:[#allocation4 + $0x48] sm:$0xff] (!%p7160_p10) }
 0xa80   : > { %v4090_v5 = vadd.f32 %v4050_v45, %v3962_v14  ;;  %v4069_v0 = vadd.f32 %v3987_v33, %v3941_v26  ;;  %v3923_v14 = vld [vmem:[#allocation4 + $0xa0] sm:$0xff] }
 0xa81   : > { %v11599_v45 = vld [vmem:[#allocation72_spill] sm:$0xff] }
 0xa82   : > { %4123 = vst.msk [vmem:[#allocation4 + $0xd8] sm:$0xff] %vm4095_vm5, %v4090_v5  ;;  %4102 = vst.msk [vmem:[#allocation4 + $0x30] sm:$0xff] %vm4095_vm5, %v4069_v0  ;;  %v5539_v20 = vpop.f32.mrb[124].mxu0  ;;  %v3955_v33 = vmul.f32 %v11599_v45, %v3923_v14  ;;  %v11600_v0 = vld [vmem:[#allocation53_spill] sm:$0xff] }
 0xa83   : > { %v4056_v57 = vpop.xlane.xlu0 %4055  ;;  %v5786_v36 = vadd.f32 %v5539_v20, %v4346_v9  ;;  %v3993_v31 = vpop.xlane.xlu1 %3992  ;;  %v3957_v9 = vmul.f32 %v11600_v0, %v3925_v28  ;;  %v3927_v20 = vld [vmem:[#allocation4 + $0xc0] sm:$0xff]  ;;  %v5909_v0 = vld [vmem:[#allocation4 + $0x88] sm:$0xff] (!%p7160_p10) }
 0xa84   : > { %v4092_v62 = vadd.f32 %v4056_v57, %v3964_v50  ;;  %v4071_v10 = vadd.f32 %v3993_v31, %v3943_v44  ;;  %v7843_v12 = vpop.f32.mrb[125].mxu0  ;;  %v4155_v57 = vld [vmem:[#allocation5 + $0xd8] sm:$0xff] }
 0xa85   : > { %5818 = vst.msk [vmem:[#allocation5 + $0xd0] sm:$0xff] %vm1918_vm4, %v5786_v36  ;;  %v5542_v63 = vpop.f32.mrb[126].mxu0  ;;  %v11601_v36 = vld [vmem:[#allocation52_spill] sm:$0xff] }
 0xa86   : > { %4125 = vst.msk [vmem:[#allocation4 + $0xe8] sm:$0xff] %vm4095_vm5, %v4092_v62  ;;  %4104 = vst.msk [vmem:[#allocation4 + $0x40] sm:$0xff] %vm4095_vm5, %v4071_v10  ;;  %v7844_v23 = vpop.f32.mrb[127].mxu0  ;;  %v3959_v31 = vmul.f32 %v11601_v36, %v3927_v20  ;;  %v4347_v10 = vmul.f32 %v11160_v53, %v4155_v57  ;;  %v11602_v63 = vld [vmem:[#allocation62_spill] sm:$0xff] }
 0xa87   : > { %v4062_v49 = vpop.xlane.xlu0 %4061  ;;  %v3999_v3 = vpop.xlane.xlu1 %3998  ;;  %v3961_v30 = vmul.f32 %v11602_v63, %v3929_v54 }
 0xa88   : > { %v4094_v41 = vadd.f32 %v4062_v49, %v3966_v22  ;;  %v4073_v61 = vadd.f32 %v3999_v3, %v3945_v35  ;;  %v3931_v49 = vld [vmem:[#allocation4 + $0xe0] sm:$0xff] }
 0xa89   : > { %v5898_v43 = vld [vmem:[#allocation4 + $0x30] sm:$0xff] (!%p7160_p10) }
 0xa8a   : > { %4127 = vst.msk [vmem:[#allocation4 + $0xf8] sm:$0xff] %vm4095_vm5, %v4094_v41  ;;  %4106 = vst.msk [vmem:[#allocation4 + $0x50] sm:$0xff] %vm4095_vm5, %v4073_v61  ;;  %v5625_v8 = vpop.f32.mrb[128].mxu0  ;;  %v4157_v61 = vld [vmem:[#allocation5 + $0xe8] sm:$0xff]  ;;  %8373 = vrcp.f32 (!%p7160_p10), %v5898_v43 }
 0xa8b   : > { %v5788_v59 = vadd.f32 %v5625_v8, %v4348_v58  ;;  %v4005_v19 = vpop.xlane.xlu1 %4004  ;;  %v7855_v29 = vpop.f32.mrb[129].mxu0  ;;  %v11603_v58 = vld [vmem:[#allocation63_spill] sm:$0xff] }
 0xa8c   : > { %v4075_v47 = vadd.f32 %v4005_v19, %v3947_v15  ;;  %v5628_v27 = vpop.f32.mrb[130].mxu0  ;;  %v3963_v8 = vmul.f32 %v11603_v58, %v3931_v49  ;;  %v3933_v15 = vld [vmem:[#allocation4 + $0xf0] sm:$0xff]  ;;  %v4349_v19 = vmul.f32 %v11168_v46, %v4157_v61 }
 0xa8d   : > { %5820 = vst.msk [vmem:[#allocation5 + $0xe0] sm:$0xff] %vm1918_vm4, %v5788_v59  ;;  %v7856_v51 = vpop.f32.mrb[131].mxu0  ;;  %v4313_v7 = vpop.permute.xlu0 %4312  ;;  %v3965_v39 = vmul.f32 %v11084_v37, %v3933_v15 }
 0xa8e   : > { %4108 = vst.msk [vmem:[#allocation4 + $0x60] sm:$0xff] %vm4095_vm5, %v4075_v47  ;;  %v4350_v13 = vmul.f32 %v4313_v7, %v4158_v16 }
 0xa8f   : > { %v4011_v32 = vpop.xlane.xlu1 %4010 }
 0xa90   : > { %v4077_v4 = vadd.f32 %v4011_v32, %v3949_v21  ;;  %v4159_v21 = vld [vmem:[#allocation5 + $0xf8] sm:$0xff] }
 0xa92   : > { %4110 = vst.msk [vmem:[#allocation4 + $0x70] sm:$0xff] %vm4095_vm5, %v4077_v4  ;;  %v5711_v24 = vpop.f32.mrb[132].mxu0 }
 0xa93   : > { %v5790_v11 = vadd.f32 %v5711_v24, %v4350_v13  ;;  %v4017_v52 = vpop.xlane.xlu1 %4016  ;;  %v7867_v25 = vpop.f32.mrb[133].mxu0 }
 0xa94   : > { %v4079_v17 = vadd.f32 %v4017_v52, %v3951_v40  ;;  %v5714_v6 = vpop.f32.mrb[134].mxu0  ;;  %v5896_v40 = vld [vmem:[#allocation4 + $0x20] sm:$0xff] (!%p7160_p10)  ;;  %v8973_v52 = vmov (!%p7160_p10), 0   ;;  %v5897_v25 = vld [vmem:[#allocation4 + $0x28] sm:$0xff] (!%p7160_p10)  ;;  %v8374_v18 = vpop.eup (!%p7160_p10), %8373 }
 0xa95   : > { %5822 = vst.msk [vmem:[#allocation5 + $0xf0] sm:$0xff] %vm1918_vm4, %v5790_v11  ;;  %v7868_v55 = vpop.f32.mrb[135].mxu0  ;;  %v5899_v11 = vld [vmem:[#allocation4 + $0x38] sm:$0xff] (!%p7160_p10)  ;;  %8348 = vset.pattern.permute.xlu1 (!%p7160_p10), %v8973_v52  ;;  %8347 = vset.pattern.permute.xlu0 (!%p7160_p10), %v8973_v52  ;;  %8375 = vrcp.f32 (!%p7160_p10), %v5896_v40  ;;  %v5904_v14 = vld [vmem:[#allocation4 + $0x60] sm:$0xff] (!%p7160_p10)  ;;  %v5866_v52 = vld [vmem:[#allocation5 + $0x30] sm:$0xff] (!%p7160_p10) }
 0xa96   : > { %4112 = vst.msk [vmem:[#allocation4 + $0x80] sm:$0xff] %vm4095_vm5, %v4079_v17  ;;  %8377 = vrcp.f32 (!%p7160_p10), %v5899_v11  ;;  %v5900_v17 = vld [vmem:[#allocation4 + $0x40] sm:$0xff] (!%p7160_p10)  ;;  %v5903_v6 = vld [vmem:[#allocation4 + $0x58] sm:$0xff] (!%p7160_p10)  ;;  %v5902_v55 = vld [vmem:[#allocation4 + $0x50] sm:$0xff] (!%p7160_p10)  ;;  %5988 = vperm.xlu1 (!%p7160_p10), %8348, %v8374_v18  }
 0xa97   : > { %v4023_v48 = vpop.xlane.xlu1 %4022  ;;  %8379 = vrcp.f32 (!%p7160_p10), %v5897_v25  ;;  %v5867_v25 = vld [vmem:[#allocation5 + $0x38] sm:$0xff] (!%p7160_p10) }
 0xa98   : > { %v4081_v26 = vadd.f32 %v4023_v48, %v3953_v34  ;;  %8381 = vrcp.f32 (!%p7160_p10), %v5901_v56  ;;  %v5905_v34 = vld [vmem:[#allocation4 + $0x68] sm:$0xff] (!%p7160_p10)  ;;  %v5864_v56 = vld [vmem:[#allocation5 + $0x20] sm:$0xff] (!%p7160_p10) }
 0xa99   : > { %8383 = vrcp.f32 (!%p7160_p10), %v5900_v17  ;;  %v5865_v17 = vld [vmem:[#allocation5 + $0x28] sm:$0xff] (!%p7160_p10) }
 0xa9a   : > { %4114 = vst.msk [vmem:[#allocation4 + $0x90] sm:$0xff] %vm4095_vm5, %v4081_v26  ;;  %8385 = vrcp.f32 (!%p7160_p10), %v5903_v6 }
 0xa9b   : > { %v4029_v38 = vpop.xlane.xlu1 %4028  ;;  %8387 = vrcp.f32 (!%p7160_p10), %v5902_v55 }
 0xa9c   : > { %v4083_v5 = vadd.f32 %v4029_v38, %v3955_v33  ;;  %8389 = vrcp.f32 (!%p7160_p10), %v5905_v34  ;;  %v5907_v33 = vld [vmem:[#allocation4 + $0x78] sm:$0xff] (!%p7160_p10)  ;;  %v5906_v38 = vld [vmem:[#allocation4 + $0x70] sm:$0xff] (!%p7160_p10) }
 0xa9d   : > { %8391 = vrcp.f32 (!%p7160_p10), %v5904_v14 }
 0xa9e   : > { %4116 = vst.msk [vmem:[#allocation4 + $0xa0] sm:$0xff] %vm4095_vm5, %v4083_v5  ;;  %8393 = vrcp.f32 (!%p7160_p10), %v5907_v33  ;;  %v5868_v33 = vld [vmem:[#allocation5 + $0x40] sm:$0xff] (!%p7160_p10) }
 0xa9f   : > { %v4035_v50 = vpop.xlane.xlu1 %4034  ;;  %v8376_v48 = vpop.eup (!%p7160_p10), %8375  ;;  %8395 = vrcp.f32 (!%p7160_p10), %v5906_v38 }
 0xaa0   : > { %v4085_v44 = vadd.f32 %v4035_v50, %v3957_v9  ;;  %v8378_v26 = vpop.eup (!%p7160_p10), %8377  ;;  %5978 = vperm.xlu0 (!%p7160_p10), %8347, %v8376_v48   ;;  %v5908_v9 = vld [vmem:[#allocation4 + $0x80] sm:$0xff] (!%p7160_p10)  ;;  %8397 = vrcp.f32 (!%p7160_p10), %v5909_v0 }
 0xaa1   : > { %v8380_v45 = vpop.eup (!%p7160_p10), %8379  ;;  %5993 = vperm.xlu1 (!%p7160_p10), %8348, %v8378_v26   ;;  %8399 = vrcp.f32 (!%p7160_p10), %v5908_v9  ;;  %v5910_v57 = vld [vmem:[#allocation4 + $0x90] sm:$0xff] (!%p7160_p10)  ;;  %v5869_v26 = vld [vmem:[#allocation5 + $0x48] sm:$0xff] (!%p7160_p10) }
 0xaa2   : > { %4118 = vst.msk [vmem:[#allocation4 + $0xb0] sm:$0xff] %vm4095_vm5, %v4085_v44  ;;  %v8382_v28 = vpop.eup (!%p7160_p10), %8381  ;;  %v5911_v44 = vld [vmem:[#allocation4 + $0x98] sm:$0xff] (!%p7160_p10) }
 0xaa3   : > { %v4041_v2 = vpop.xlane.xlu1 %4040  ;;  %v8384_v5 = vpop.eup (!%p7160_p10), %8383  ;;  %8401 = vrcp.f32 (!%p7160_p10), %v5911_v44 }
 0xaa4   : > { %v4087_v62 = vadd.f32 %v4041_v2, %v3959_v31  ;;  %5983 = vperm.xlu0 (!%p7160_p10), %8347, %v8380_v45   ;;  %v8386_v50 = vpop.eup (!%p7160_p10), %8385  ;;  %v5913_v2 = vld [vmem:[#allocation4 + $0xa8] sm:$0xff] (!%p7160_p10)  ;;  %8403 = vrcp.f32 (!%p7160_p10), %v5910_v57 }
 0xaa5   : > { %6003 = vperm.xlu1 (!%p7160_p10), %8348, %v8382_v28   ;;  %v8388_v20 = vpop.eup (!%p7160_p10), %8387  ;;  %v5912_v54 = vld [vmem:[#allocation4 + $0xa0] sm:$0xff] (!%p7160_p10)  ;;  %8405 = vrcp.f32 (!%p7160_p10), %v5913_v2 }
 0xaa6   : > { %4120 = vst.msk [vmem:[#allocation4 + $0xc0] sm:$0xff] %vm4095_vm5, %v4087_v62  ;;  %v5582_v12 = vpop.f32.mrb[124].mxu1  ;;  %v8390_v36 = vpop.eup (!%p7160_p10), %8389  ;;  %8407 = vrcp.f32 (!%p7160_p10), %v5912_v54 }
 0xaa7   : > { %v5787_v23 = vadd.f32 %v5582_v12, %v4347_v10  ;;  %v4047_v22 = vpop.xlane.xlu1 %4046  ;;  %v7849_v35 = vpop.f32.mrb[125].mxu1  ;;  %v5915_v12 = vld [vmem:[#allocation4 + $0xb8] sm:$0xff] (!%p7160_p10) }
 0xaa8   : > { %v4089_v3 = vadd.f32 %v4047_v22, %v3961_v30  ;;  %v5585_v60 = vpop.f32.mrb[126].mxu1  ;;  %5998 = vperm.xlu0 (!%p7160_p10), %8347, %v8384_v5   ;;  %v8392_v31 = vpop.eup (!%p7160_p10), %8391  ;;  %8409 = vrcp.f32 (!%p7160_p10), %v5915_v12  ;;  %v5917_v22 = vld [vmem:[#allocation4 + $0xc8] sm:$0xff] (!%p7160_p10) }
 0xaa9   : > { %5819 = vst.msk [vmem:[#allocation5 + $0xd8] sm:$0xff] %vm1918_vm4, %v5787_v23  ;;  %v7850_v41 = vpop.f32.mrb[127].mxu1  ;;  %6013 = vperm.xlu1 (!%p7160_p10), %8348, %v8386_v50   ;;  %v8394_v62 = vpop.eup (!%p7160_p10), %8393  ;;  %v5914_v30 = vld [vmem:[#allocation4 + $0xb0] sm:$0xff] (!%p7160_p10)  ;;  %v5919_v60 = vld [vmem:[#allocation4 + $0xd8] sm:$0xff] (!%p7160_p10) }
 0xaaa   : > { %4122 = vst.msk [vmem:[#allocation4 + $0xd0] sm:$0xff] %vm4095_vm5, %v4089_v3  ;;  %v8396_v10 = vpop.eup (!%p7160_p10), %8395  ;;  %8411 = vrcp.f32 (!%p7160_p10), %v5914_v30  ;;  %v5871_v50 = vld [vmem:[#allocation5 + $0x58] sm:$0xff] (!%p7160_p10)  ;;  %v8350_v30 = vld [vmem:[#allocation20 + $0x8] sm:$0xff] (!%p7160_p10)  }
 0xaab   : > { %v4053_v53 = vpop.xlane.xlu1 %4052  ;;  %v8398_v63 = vpop.eup (!%p7160_p10), %8397  ;;  %8413 = vrcp.f32 (!%p7160_p10), %v5917_v22 }
 0xaac   : > { %v4091_v59 = vadd.f32 %v4053_v53, %v3963_v8  ;;  %6008 = vperm.xlu0 (!%p7160_p10), %8347, %v8388_v20   ;;  %v8400_v23 = vpop.eup (!%p7160_p10), %8399  ;;  %v5921_v8 = vld [vmem:[#allocation4 + $0xe8] sm:$0xff] (!%p7160_p10)  ;;  %v5870_v20 = vld [vmem:[#allocation5 + $0x50] sm:$0xff] (!%p7160_p10) }
 0xaad   : > { %6023 = vperm.xlu1 (!%p7160_p10), %8348, %v8390_v36   ;;  %v8402_v35 = vpop.eup (!%p7160_p10), %8401  ;;  %v5916_v49 = vld [vmem:[#allocation4 + $0xc0] sm:$0xff] (!%p7160_p10) }
 0xaae   : > { %4124 = vst.msk [vmem:[#allocation4 + $0xe0] sm:$0xff] %vm4095_vm5, %v4091_v59  ;;  %v5668_v29 = vpop.f32.mrb[128].mxu1  ;;  %v8404_v3 = vpop.eup (!%p7160_p10), %8403  ;;  %8415 = vrcp.f32 (!%p7160_p10), %v5916_v49  ;;  %v8349_v36 = vld [vmem:[#allocation20] sm:$0xff] (!%p7160_p10)   ;;  %v5875_v49 = vld [vmem:[#allocation5 + $0x78] sm:$0xff] (!%p7160_p10) }
 0xaaf   : > { %v5789_v47 = vadd.f32 %v5668_v29, %v4349_v19  ;;  %v4059_v27 = vpop.xlane.xlu1 %4058  ;;  %v7861_v51 = vpop.f32.mrb[129].mxu1  ;;  %8417 = vrcp.f32 (!%p7160_p10), %v5919_v60  ;;  %v5923_v19 = vld [vmem:[#allocation4 + $0xf8] sm:$0xff] (!%p7160_p10)  ;;  %7875 = vmatprep.subr.bf16.mxu0 (!%p7160_p10), %v8349_v36 }
 0xab0   : > { %v4093_v16 = vadd.f32 %v4059_v27, %v3965_v39  ;;  %v5671_v7 = vpop.f32.mrb[130].mxu1  ;;  %6018 = vperm.xlu0 (!%p7160_p10), %8347, %v8392_v31   ;;  %v8406_v41 = vpop.eup (!%p7160_p10), %8405  ;;  %v5893_v27 = vld [vmem:[#allocation4 + $0x8] sm:$0xff] (!%p7160_p10)  ;;  %7876 = vmatpush3.bf16.msra.mxu0 (!%p7160_p10), %v8349_v36 }
 0xab1   : > { %5821 = vst.msk [vmem:[#allocation5 + $0xe8] sm:$0xff] %vm1918_vm4, %v5789_v47  ;;  %v7862_v42 = vpop.f32.mrb[131].mxu1  ;;  %6033 = vperm.xlu1 (!%p7160_p10), %8348, %v8394_v62   ;;  %v5918_v61 = vld [vmem:[#allocation4 + $0xd0] sm:$0xff] (!%p7160_p10)  ;;  %v8408_v58 = vpop.eup (!%p7160_p10), %8407  ;;  %v5873_v62 = vld [vmem:[#allocation5 + $0x68] sm:$0xff] (!%p7160_p10)  ;;  %7877 = vmatprep.subr.bf16.mxu0 (!%p7160_p10), %v8350_v30 }
 0xab2   : > { %4126 = vst.msk [vmem:[#allocation4 + $0xf0] sm:$0xff] %vm4095_vm5, %v4093_v16  ;;  %8419 = vrcp.f32 (!%p7160_p10), %v5918_v61  ;;  %v8410_v53 = vpop.eup (!%p7160_p10), %8409  ;;  %v5892_v16 = vld [vmem:[#allocation4] sm:$0xff] (!%p7160_p10)  ;;  %v5895_v42 = vld [vmem:[#allocation4 + $0x18] sm:$0xff] (!%p7160_p10) }
 0xab3   : > { %v4318_v32 = vpop.permute.xlu1 %4317  ;;  %5859 = sbr.rel (%p7160_p10) target bundleno = 4015 (0xfaf), region = 164  ;;  %8421 = vrcp.f32 (!%p7160_p10), %v5921_v8  ;;  %v8351_v61 = vld [vmem:[#allocation20 + $0x10] sm:$0xff] (!%p7160_p10)  }
 0xab4   : > { %v4351_v1 = vmul.f32 %v4318_v32, %v4159_v21  ;;  %6028 = vperm.xlu0 (!%p7160_p10), %8347, %v8396_v10   ;;  %v8412_v59 = vpop.eup (!%p7160_p10), %8411  ;;  %v5894_v32 = vld [vmem:[#allocation4 + $0x10] sm:$0xff] (!%p7160_p10)  ;;  %v5872_v10 = vld [vmem:[#allocation5 + $0x60] sm:$0xff] (!%p7160_p10)  ;;  %7878 = vmatpush3.bf16.msra.mxu0 (!%p7160_p10), %v8350_v30 }
 0xab5   : > { %6043 = vperm.xlu1 (!%p7160_p10), %8348, %v8398_v63   ;;  %v5920_v15 = vld [vmem:[#allocation4 + $0xe0] sm:$0xff] (!%p7160_p10)  ;;  %v8414_v29 = vpop.eup (!%p7160_p10), %8413  ;;  %7879 = vmatprep.subr.bf16.mxu0 (!%p7160_p10), %v8351_v61 }
 0xab6   : > { %v5754_v4 = vpop.f32.mrb[132].mxu1  ;;  %8423 = vrcp.f32 (!%p7160_p10), %v5920_v15  ;;  %v5877_v15 = vld [vmem:[#allocation5 + $0x88] sm:$0xff] (!%p7160_p10) }
 0xab7   : > { %v5791_v46 = vadd.f32 %v5754_v4, %v4351_v1  ;;  %v7873_v13 = vpop.f32.mrb[133].mxu1  ;;  %8425 = vrcp.f32 (!%p7160_p10), %v5923_v19 }
 0xab8   : > { %v5757_v24 = vpop.f32.mrb[134].mxu1  ;;  %6038 = vperm.xlu0 (!%p7160_p10), %8347, %v8400_v23   ;;  %v8416_v47 = vpop.eup (!%p7160_p10), %8415  ;;  %7880 = vmatpush3.bf16.msra.mxu0 (!%p7160_p10), %v8351_v61 }
 0xab9   : > { %5823 = vst.msk [vmem:[#allocation5 + $0xf8] sm:$0xff] %vm1918_vm4, %v5791_v46  ;;  %v7874_v37 = vpop.f32.mrb[135].mxu1  ;;  %6053 = vperm.xlu1 (!%p7160_p10), %8348, %v8402_v35   ;;  %v5922_v39 = vld [vmem:[#allocation4 + $0xf0] sm:$0xff] (!%p7160_p10)  ;;  %v8418_v51 = vpop.eup (!%p7160_p10), %8417 }
 0xaba   : > { %8427 = vrcp.f32 %v5922_v39  ;;  %v8352_v39 = vld [vmem:[#allocation20 + $0x18] sm:$0xff]  }
 0xabb   : > { %8429 = vrcp.f32 %v5893_v27  ;;  %7881 = vmatprep.subr.bf16.mxu0 %v8352_v39 }
 0xabc   : > { %6048 = vperm.xlu0 %8347, %v8404_v3   ;;  %v8420_v7 = vpop.eup %8419  ;;  %8431 = vrcp.f32 %v5892_v16  ;;  %v5874_v3 = vld [vmem:[#allocation5 + $0x70] sm:$0xff]  ;;  %v5879_v16 = vld [vmem:[#allocation5 + $0x98] sm:$0xff]  ;;  %7882 = vmatpush3.bf16.msra.mxu0 %v8352_v39 }
 0xabd   : > { %6063 = vperm.xlu1 %8348, %v8406_v41   ;;  %v8422_v21 = vpop.eup %8421  ;;  %8433 = vrcp.f32 %v5895_v42 }
 0xabe   : > { %8435 = vrcp.f32 %v5894_v32  ;;  %v8353_v32 = vld [vmem:[#allocation20 + $0x20] sm:$0xff]  }
 0xabf   : > { %7883 = vmatprep.subr.bf16.mxu0 %v8353_v32 }
 0xac0   : > { %6058 = vperm.xlu0 %8347, %v8408_v58   ;;  %v8424_v1 = vpop.eup %8423  ;;  %7884 = vmatpush3.bf16.msra.mxu0 %v8353_v32 }
 0xac1   : > { %6073 = vperm.xlu1 %8348, %v8410_v53   ;;  %v8426_v4 = vpop.eup %8425 }
 0xac4   : > { %6068 = vperm.xlu0 %8347, %v8412_v59   ;;  %v8428_v46 = vpop.eup %8427  ;;  %v5876_v59 = vld [vmem:[#allocation5 + $0x80] sm:$0xff] }
 0xac5   : > { %6083 = vperm.xlu1 %8348, %v8414_v29   ;;  %v8430_v13 = vpop.eup %8429 }
 0xac6   : > { %v8432_v24 = vpop.eup %8431 }
 0xac7   : > { %v8434_v37 = vpop.eup %8433 }
 0xac8   : > { %6078 = vperm.xlu0 %8347, %v8416_v47   ;;  %v8436_v43 = vpop.eup %8435 }
 0xac9   : > { %6093 = vperm.xlu1 %8348, %v8418_v51  }
 0xacc   : > { %6088 = vperm.xlu0 %8347, %v8420_v7   ;;  %v5878_v7 = vld [vmem:[#allocation5 + $0x90] sm:$0xff] }
 0xacd   : > { %6103 = vperm.xlu1 %8348, %v8422_v21  }
 0xad0   : > { %6098 = vperm.xlu0 %8347, %v8424_v1  }
 0xad1   : > { %6113 = vperm.xlu1 %8348, %v8426_v4  }
 0xad4   : > { %6108 = vperm.xlu0 %8347, %v8428_v46  }
 0xad5   : > { %5963 = vperm.xlu1 %8348, %v8430_v13   ;;  %v5881_v13 = vld [vmem:[#allocation5 + $0xa8] sm:$0xff] }
 0xad8   : > { %5958 = vperm.xlu0 %8347, %v8432_v24   ;;  %v5880_v24 = vld [vmem:[#allocation5 + $0xa0] sm:$0xff] }
 0xad9   : > { %5973 = vperm.xlu1 %8348, %v8434_v37  }
 0xadc   : > { %5968 = vperm.xlu0 %8347, %v8436_v43  }
 0xb15   : > { %v5989_v40 = vpop.permute.xlu1 %5988 }
 0xb16   : > { %v6122_v55 = vmul.f32 %v5989_v40, %v5866_v52  ;;  %v8354_v40 = vld [vmem:[#allocation20 + $0x28] sm:$0xff]  }
 0xb17   : > { %7885 = vmatprep.subr.bf16.mxu0 %v8354_v40 }
 0xb18   : > { %7886 = vmatpush3.bf16.msra.mxu0 %v8354_v40 }
 0xb1f   : > { %v5979_v11 = vpop.permute.xlu0 %5978 }
 0xb20   : > { %v5994_v6 = vpop.permute.xlu1 %5993  ;;  %v6120_v48 = vmul.f32 %v5979_v11, %v5864_v56  ;;  %v5883_v56 = vld [vmem:[#allocation5 + $0xb8] sm:$0xff] }
 0xb21   : > { %v6123_v18 = vmul.f32 %v5994_v6, %v5867_v25 }
 0xb23   : > { %v5984_v34 = vpop.permute.xlu0 %5983  ;;  %v7218_v45 = vpack.c.bf16 %v6123_v18, %v6122_v55  ;;  %v8355_v18 = vld [vmem:[#allocation20 + $0x30] sm:$0xff]  }
 0xb24   : > { %v6121_v14 = vmul.f32 %v5984_v34, %v5865_v17  ;;  %v6004_v28 = vpop.permute.xlu1 %6003  ;;  %v5882_v17 = vld [vmem:[#allocation5 + $0xb0] sm:$0xff]  ;;  %7887 = vmatprep.subr.bf16.mxu0 %v8355_v18 }
 0xb25   : > { %v6125_v5 = vmul.f32 %v6004_v28, %v5869_v26  ;;  %6202 = vrot.lane.b32.xlu1 %v7218_v45, %s8974_s22  ;;  %v5885_v26 = vld [vmem:[#allocation5 + $0xc8] sm:$0xff]  ;;  %v5884_v45 = vld [vmem:[#allocation5 + $0xc0] sm:$0xff]  ;;  %7888 = vmatpush3.bf16.msra.mxu0 %v8355_v18 }
 0xb26   : > { %v7217_v38 = vpack.c.bf16 %v6121_v14, %v6120_v48  ;;  %v8356_v28 = vld [vmem:[#allocation20 + $0x38] sm:$0xff]  }
 0xb27   : > { %v5999_v0 = vpop.permute.xlu0 %5998  ;;  %7889 = vmatprep.subr.bf16.mxu0 %v8356_v28 }
 0xb28   : > { %v6124_v9 = vmul.f32 %v5999_v0, %v5868_v33  ;;  %6200 = vrot.lane.b32.xlu0 %v7217_v38, %s8974_s22  ;;  %v6014_v57 = vpop.permute.xlu1 %6013 }
 0xb29   : > { %v6127_v31 = vmul.f32 %v6014_v57, %v5871_v50  ;;  %v5887_v50 = vld [vmem:[#allocation5 + $0xd8] sm:$0xff]  ;;  %7890 = vmatpush3.bf16.msra.mxu0 %v8356_v28 }
 0xb2a   : > { %v7219_v44 = vpack.c.bf16 %v6125_v5, %v6124_v9 }
 0xb2b   : > { %v6009_v2 = vpop.permute.xlu0 %6008 }
 0xb2c   : > { %v6126_v54 = vmul.f32 %v6009_v2, %v5870_v20  ;;  %6214 = vrot.lane.b32.xlu0 %v7219_v44, %s8975_s26  ;;  %v6024_v63 = vpop.permute.xlu1 %6023  ;;  %v5886_v20 = vld [vmem:[#allocation5 + $0xd0] sm:$0xff] }
 0xb2d   : > { %v6129_v23 = vmul.f32 %v6024_v63, %v5873_v62  ;;  %v5888_v62 = vld [vmem:[#allocation5 + $0xe0] sm:$0xff] }
 0xb2e   : > { %v7220_v12 = vpack.c.bf16 %v6127_v31, %v6126_v54  ;;  %v5889_v54 = vld [vmem:[#allocation5 + $0xe8] sm:$0xff] }
 0xb2f   : > { %v6019_v22 = vpop.permute.xlu0 %6018 }
 0xb30   : > { %v6128_v35 = vmul.f32 %v6019_v22, %v5872_v10  ;;  %6216 = vrot.lane.b32.xlu1 %v7220_v12, %s8975_s26  ;;  %v6034_v41 = vpop.permute.xlu1 %6033  ;;  %v5891_v22 = vld [vmem:[#allocation5 + $0xf8] sm:$0xff] }
 0xb31   : > { %v6131_v58 = vmul.f32 %v6034_v41, %v5875_v49 }
 0xb32   : > { %v7221_v60 = vpack.c.bf16 %v6129_v23, %v6128_v35  ;;  %v5890_v35 = vld [vmem:[#allocation5 + $0xf0] sm:$0xff] }
 0xb33   : > { %v6029_v8 = vpop.permute.xlu0 %6028 }
 0xb34   : > { %v6130_v53 = vmul.f32 %v6029_v8, %v5874_v3  ;;  %6228 = vrot.lane.b32.xlu0 %v7221_v60, %s8976_s21  ;;  %v6044_v29 = vpop.permute.xlu1 %6043 }
 0xb35   : > { %v6133_v47 = vmul.f32 %v6044_v29, %v5877_v15 }
 0xb36   : > { %v7222_v19 = vpack.c.bf16 %v6131_v58, %v6130_v53 }
 0xb37   : > { %v6039_v27 = vpop.permute.xlu0 %6038 }
 0xb38   : > { %v6132_v51 = vmul.f32 %v6039_v27, %v5876_v59  ;;  %6230 = vrot.lane.b32.xlu1 %v7222_v19, %s8976_s21  ;;  %v6054_v21 = vpop.permute.xlu1 %6053 }
 0xb39   : > { %v6135_v1 = vmul.f32 %v6054_v21, %v5879_v16  ;;  %v5860_v16 = vld [vmem:[#allocation5] sm:$0xff] }
 0xb3a   : > { %v7223_v42 = vpack.c.bf16 %v6133_v47, %v6132_v51  ;;  %v5861_v51 = vld [vmem:[#allocation5 + $0x8] sm:$0xff] }
 0xb3b   : > { %v6049_v4 = vpop.permute.xlu0 %6048 }
 0xb3c   : > { %v6134_v46 = vmul.f32 %v6049_v4, %v5878_v7  ;;  %6242 = vrot.lane.b32.xlu0 %v7223_v42, %s8977_s30  ;;  %v6064_v43 = vpop.permute.xlu1 %6063  ;;  %v5862_v4 = vld [vmem:[#allocation5 + $0x10] sm:$0xff] }
 0xb3d   : > { %v6137_v11 = vmul.f32 %v6064_v43, %v5881_v13 }
 0xb3e   : > { %v7224_v37 = vpack.c.bf16 %v6135_v1, %v6134_v46  ;;  %v5863_v1 = vld [vmem:[#allocation5 + $0x18] sm:$0xff] }
 0xb3f   : > { %v6059_v52 = vpop.permute.xlu0 %6058 }
 0xb40   : > { %v6136_v25 = vmul.f32 %v6059_v52, %v5880_v24  ;;  %6244 = vrot.lane.b32.xlu1 %v7224_v37, %s8977_s30  ;;  %v6074_v55 = vpop.permute.xlu1 %6073 }
 0xb41   : > { %v6139_v34 = vmul.f32 %v6074_v55, %v5883_v56 }
 0xb42   : > { %v7225_v6 = vpack.c.bf16 %v6137_v11, %v6136_v25 }
 0xb43   : > { %v6069_v48 = vpop.permute.xlu0 %6068 }
 0xb44   : > { %v6138_v14 = vmul.f32 %v6069_v48, %v5882_v17  ;;  %6256 = vrot.lane.b32.xlu0 %v7225_v6, %s8978_s3  ;;  %v6084_v38 = vpop.permute.xlu1 %6083 }
 0xb45   : > { %v6141_v5 = vmul.f32 %v6084_v38, %v5885_v26 }
 0xb46   : > { %v7226_v33 = vpack.c.bf16 %v6139_v34, %v6138_v14 }
 0xb47   : > { %v6079_v0 = vpop.permute.xlu0 %6078 }
 0xb48   : > { %v6140_v9 = vmul.f32 %v6079_v0, %v5884_v45  ;;  %6258 = vrot.lane.b32.xlu1 %v7226_v33, %s8978_s3  ;;  %v6094_v57 = vpop.permute.xlu1 %6093 }
 0xb49   : > { %v6143_v36 = vmul.f32 %v6094_v57, %v5887_v50  ;;  %v7177_v50 = vld [vmem:[#allocation21] ss:$0 sm:$0xff] }
 0xb4a   : > { %v7227_v44 = vpack.c.bf16 %v6141_v5, %v6140_v9  ;;  %v6446_v57 = vld [vmem:[#allocation6] sm:$0xff] }
 0xb4b   : > { %v6089_v31 = vpop.permute.xlu0 %6088 }
 0xb4c   : > { %v6142_v2 = vmul.f32 %v6089_v31, %v5886_v20  ;;  %6270 = vrot.lane.b32.xlu0 %v7227_v44, %s8979_s24  ;;  %v6104_v12 = vpop.permute.xlu1 %6103 }
 0xb4d   : > { %v6145_v63 = vmul.f32 %v6104_v12, %v5889_v54  ;;  %v6447_v54 = vld [vmem:[#allocation6 + $0x8] sm:$0xff] }
 0xb4e   : > { %v7228_v10 = vpack.c.bf16 %v6143_v36, %v6142_v2 }
 0xb4f   : > { %v6099_v30 = vpop.permute.xlu0 %6098 }
 0xb50   : > { %v6144_v23 = vmul.f32 %v6099_v30, %v5888_v62  ;;  %6272 = vrot.lane.b32.xlu1 %v7228_v10, %s8979_s24  ;;  %v6114_v3 = vpop.permute.xlu1 %6113 }
 0xb51   : > { %v6147_v60 = vmul.f32 %v6114_v3, %v5891_v22  ;;  %v8357_v3 = vld [vmem:[#allocation26] sm:$0xff]  }
 0xb52   : > { %v7229_v49 = vpack.c.bf16 %v6145_v63, %v6144_v23  ;;  %v6448_v63 = vld [vmem:[#allocation6 + $0x10] sm:$0xff]  ;;  %7895 = vmatprep.subr.bf16.mxu1 %v8357_v3 }
 0xb53   : > { %v6109_v41 = vpop.permute.xlu0 %6108  ;;  %7896 = vmatpush3.bf16.msra.mxu1 %v8357_v3  ;;  %v8369_v3 = vld [vmem:[%s11605_s0 + $0x20] sm:$0xff]  }
 0xb54   : > { %v6146_v61 = vmul.f32 %v6109_v41, %v5890_v35  ;;  %6284 = vrot.lane.b32.xlu0 %v7229_v49, %s8980_s4  ;;  %v5964_v53 = vpop.permute.xlu1 %5963  ;;  %v6449_v35 = vld [vmem:[#allocation6 + $0x18] sm:$0xff] }
 0xb55   : > { %v6117_v21 = vmul.f32 %v5964_v53, %v5861_v51 }
 0xb56   : > { %v7230_v58 = vpack.c.bf16 %v6147_v60, %v6146_v61 }
 0xb57   : > { %v5959_v8 = vpop.permute.xlu0 %5958 }
 0xb58   : > { %6286 = vrot.lane.b32.xlu1 %v7230_v58, %s8980_s4  ;;  %v5974_v19 = vpop.permute.xlu1 %5973  ;;  %v6116_v32 = vmul.f32 %v5959_v8, %v5860_v16 }
 0xb59   : > { %v6119_v24 = vmul.f32 %v5974_v19, %v5863_v1  ;;  %v8361_v1 = vld [vmem:[#allocation26 + $0x20] sm:$0xff]  }
 0xb5a   : > { %v7215_v43 = vpack.c.bf16 %v6117_v21, %v6116_v32  ;;  %v8359_v21 = vld [vmem:[#allocation26 + $0x10] sm:$0xff]   ;;  %v8360_v32 = vld [vmem:[#allocation26 + $0x18] sm:$0xff]  }
 0xb5b   : > { %v5969_v15 = vpop.permute.xlu0 %5968 }
 0xb5c   : > { %v6118_v37 = vmul.f32 %v5969_v15, %v5862_v4  ;;  %v8362_v4 = vld [vmem:[#allocation26 + $0x28] sm:$0xff]  }
 0xb5e   : > { %v7216_v56 = vpack.c.bf16 %v6119_v24, %v6118_v37  ;;  %v8365_v24 = vld [vmem:[%s11605_s0] sm:$0xff]   ;;  %v8366_v37 = vld [vmem:[%s11605_s0 + $0x8] sm:$0xff]  }
 0xb5f   : > { %7915 = vmatprep.subr.bf16.mxu0 %v8365_v24 }
 0xb97   : > { %v6203_v29 = vpop.permute.xlu1 %6202 }
 0xb98   : > { %v6293_v55 = vsel %vm1918_vm4, %v7216_v56, %v6203_v29 }
 0xb9a   : > { %v6201_v59 = vpop.permute.xlu0 %6200 }
 0xb9b   : > { %v6290_v40 = vsel %vm1918_vm4, %v7215_v43, %v6201_v59 }
 0xb9e   : > { %v6215_v39 = vpop.permute.xlu0 %6214 }
 0xb9f   : > { %v6296_v11 = vsel %vm6294_vm6, %v6290_v40, %v6215_v39 }
 0xba2   : > { %v6217_v47 = vpop.permute.xlu1 %6216 }
 0xba3   : > { %v6298_v34 = vsel %vm6294_vm6, %v6293_v55, %v6217_v47 }
 0xba6   : > { %v6229_v27 = vpop.permute.xlu0 %6228 }
 0xba7   : > { %v6301_v17 = vsel %vm6299_vm7, %v6296_v11, %v6229_v27 }
 0xbaa   : > { %v6231_v7 = vpop.permute.xlu1 %6230 }
 0xbab   : > { %v6303_v45 = vsel %vm6299_vm7, %v6298_v34, %v6231_v7 }
 0xbae   : > { %v6243_v42 = vpop.permute.xlu0 %6242 }
 0xbaf   : > { %v6306_v6 = vsel %vm6304_vm8, %v6301_v17, %v6243_v42  ;;  %v8358_v42 = vld [vmem:[#allocation26 + $0x8] sm:$0xff]  }
 0xbb0   : > { %7897 = vmatprep.subr.bf16.mxu1 %v8358_v42 }
 0xbb1   : > { %7898 = vmatpush3.bf16.msra.mxu1 %v8358_v42 }
 0xbb2   : > { %v6245_v46 = vpop.permute.xlu1 %6244  ;;  %7899 = vmatprep.subr.bf16.mxu1 %v8359_v21 }
 0xbb3   : > { %v6308_v38 = vsel %vm6304_vm8, %v6303_v45, %v6245_v46  ;;  %v8363_v46 = vld [vmem:[#allocation26 + $0x30] sm:$0xff]  }
 0xbb5   : > { %7900 = vmatpush3.bf16.msra.mxu1 %v8359_v21 }
 0xbb6   : > { %v6257_v13 = vpop.permute.xlu0 %6256  ;;  %7901 = vmatprep.subr.bf16.mxu1 %v8360_v32 }
 0xbb7   : > { %v6311_v18 = vsel %vm6309_vm9, %v6306_v6, %v6257_v13  ;;  %v8364_v13 = vld [vmem:[#allocation26 + $0x38] sm:$0xff]  }
 0xbb9   : > { %7902 = vmatpush3.bf16.msra.mxu1 %v8360_v32 }
 0xbba   : > { %v6259_v52 = vpop.permute.xlu1 %6258  ;;  %7903 = vmatprep.subr.bf16.mxu1 %v8361_v1 }
 0xbbb   : > { %v6313_v28 = vsel %vm6309_vm9, %v6308_v38, %v6259_v52 }
 0xbbd   : > { %7904 = vmatpush3.bf16.msra.mxu1 %v8361_v1 }
 0xbbe   : > { %v6271_v25 = vpop.permute.xlu0 %6270  ;;  %7905 = vmatprep.subr.bf16.mxu1 %v8362_v4 }
 0xbbf   : > { %v6316_v48 = vsel %vm6314_vm10, %v6311_v18, %v6271_v25 }
 0xbc1   : > { %7906 = vmatpush3.bf16.msra.mxu1 %v8362_v4 }
 0xbc2   : > { %v6273_v14 = vpop.permute.xlu1 %6272  ;;  %7907 = vmatprep.subr.bf16.mxu1 %v8363_v46 }
 0xbc3   : > { %v6318_v5 = vsel %vm6314_vm10, %v6313_v28, %v6273_v14 }
 0xbc5   : > { %7908 = vmatpush3.bf16.msra.mxu1 %v8363_v46 }
 0xbc6   : > { %v6285_v26 = vpop.permute.xlu0 %6284  ;;  %7909 = vmatprep.subr.bf16.mxu1 %v8364_v13 }
 0xbc7   : > { %v6321_v33 = vsel %vm6319_vm11, %v6316_v48, %v6285_v26  ;;  %v7186_v26 = vld [vmem:[#allocation23] ss:$0 sm:$0xff] }
 0xbc8   : > { %7891 = vmatprep.mubr.bf16.mxu0 %v6321_v33 }
 0xbc9   : > { %7910 = vmatpush3.bf16.msra.mxu1 %v8364_v13 }
 0xbca   : > { %v6287_v0 = vpop.permute.xlu1 %6286 }
 0xbcb   : > { %v6324_v9 = vsel %vm6319_vm11, %v6318_v5, %v6287_v0  ;;  %v7187_v0 = vld [vmem:[#allocation24] ss:$0 sm:$0xff] }
 0xbcc   : > { %7892 = vmatmul.mubr.bf16.vlgmr.msra.gmra.mrb[0].mxu0 %v6324_v9 }
 0xbcd   : > { %7916 = vmatpush3.bf16.msra.mxu0 %v8365_v24 }
 0xbce   : > { %7917 = vmatprep.subr.bf16.mxu0 %v8366_v37 }
 0xbd1   : > { %7918 = vmatpush3.bf16.msra.mxu0 %v8366_v37 }
 0xc9f   : > { %v7893_v20 = vpop.f32.mrb[0].mxu0 }
 0xca0   : > { %v6431_v44 = vpop.f32.mrb[1].mxu0  ;;  %v6440_v62 = vadd.f32 %v7893_v20, %v7177_v50 }
 0xca1   : > { %v6432_v36 = vadd.f32 %v7177_v50, %v6431_v44  ;;  %v7894_v31 = vpop.f32.mrb[2].mxu0 }
 0xca2   : > { %v6434_v2 = vpop.f32.mrb[3].mxu0  ;;  %v11234_v23 = vadd.f32 %v6448_v63, %v6440_v62  ;;  %v6443_v22 = vadd.f32 %v7894_v31, %v7177_v50 }
 0xca3   : > { %v11229_v10 = vadd.f32 %v6446_v57, %v6432_v36  ;;  %v6435_v12 = vadd.f32 %v7177_v50, %v6434_v2 }
 0xca4   : > { %v11238_v49 = vadd.f32 %v6449_v35, %v6443_v22  ;;  %v8367_v22 = vld [vmem:[%s11605_s0 + $0x10] sm:$0xff]   ;;  %v8368_v35 = vld [vmem:[%s11605_s0 + $0x18] sm:$0xff]  }
 0xca5   : > { %v11231_v30 = vadd.f32 %v6447_v54, %v6435_v12  ;;  %6456 = vadd.xlane.f32.xlu0 %v11229_v10  ;;  %7919 = vmatprep.subr.bf16.mxu0 %v8367_v22 }
 0xca6   : > { %7920 = vmatpush3.bf16.msra.mxu0 %v8367_v22 }
 0xca7   : > { %6458 = vadd.xlane.f32.xlu1 %v11231_v30  ;;  %7921 = vmatprep.subr.bf16.mxu0 %v8368_v35 }
 0xca9   : > { %6460 = vadd.xlane.f32.xlu0 %v11234_v23 }
 0xcaa   : > { %7922 = vmatpush3.bf16.msra.mxu0 %v8368_v35 }
 0xcab   : > { %7923 = vmatprep.subr.bf16.mxu0 %v8369_v3 }
 0xcad   : > { %6462 = vadd.xlane.f32.xlu0 %v11238_v49 }
 0xcae   : > { %7924 = vmatpush3.bf16.msra.mxu0 %v8369_v3 }
 0xd32   : > { %v6457_v60 = vpop.xlane.xlu0 %6456 }
 0xd33   : > { %v6464_v41 = vmul.f32 0.0078125, %v6457_v60  ;;  %v8370_v60 = vld [vmem:[%s11605_s0 + $0x28] sm:$0xff]  }
 0xd34   : > { %v6459_v61 = vpop.xlane.xlu1 %6458  ;;  %7925 = vmatprep.subr.bf16.mxu0 %v8370_v60 }
 0xd35   : > { %v6468_v58 = vsub.f32 %v11229_v10, %v6464_v41  ;;  %v6465_v8 = vmul.f32 0.0078125, %v6459_v61  ;;  %7926 = vmatpush3.bf16.msra.mxu0 %v8370_v60  ;;  %v8371_v41 = vld [vmem:[%s11605_s0 + $0x30] sm:$0xff]   ;;  %v8372_v61 = vld [vmem:[%s11605_s0 + $0x38] sm:$0xff]  }
 0xd36   : > { %v6461_v53 = vpop.xlane.xlu0 %6460  ;;  %7927 = vmatprep.subr.bf16.mxu0 %v8371_v41 }
 0xd37   : > { %v6469_v15 = vsub.f32 %v11231_v30, %v6465_v8  ;;  %v6466_v59 = vmul.f32 0.0078125, %v6461_v53  ;;  %v6472_v19 = vmul.f32 %v6468_v58, %v6468_v58 }
 0xd39   : > { %v11244_v29 = vsub.f32 %v11234_v23, %v6466_v59  ;;  %6476 = vadd.xlane.f32.xlu1 %v6472_v19  ;;  %v6473_v39 = vmul.f32 %v6469_v15, %v6469_v15  ;;  %7928 = vmatpush3.bf16.msra.mxu0 %v8371_v41 }
 0xd3a   : > { %v6463_v47 = vpop.xlane.xlu0 %6462  ;;  %7929 = vmatprep.subr.bf16.mxu0 %v8372_v61 }
 0xd3b   : > { %v6467_v27 = vmul.f32 0.0078125, %v6463_v47  ;;  %6478 = vadd.xlane.f32.xlu0 %v6473_v39  ;;  %v6474_v51 = vmul.f32 %v11244_v29, %v11244_v29 }
 0xd3d   : > { %v6471_v16 = vsub.f32 %v11238_v49, %v6467_v27  ;;  %6480 = vadd.xlane.f32.xlu1 %v6474_v51  ;;  %7930 = vmatpush3.bf16.msra.mxu0 %v8372_v61 }
 0xd3f   : > { %v6475_v7 = vmul.f32 %v6471_v16, %v6471_v16 }
 0xd41   : > { %6482 = vadd.xlane.f32.xlu0 %v6475_v7 }
 0xdc6   : > { %v6477_v43 = vpop.xlane.xlu1 %6476 }
 0xdc7   : > { %v6484_v40 = vmul.f32 0.0078125, %v6477_v43 }
 0xdc8   : > { %v6479_v11 = vpop.xlane.xlu0 %6478 }
 0xdc9   : > { %v6488_v52 = vadd.f32 1e-05, %v6484_v40  ;;  %v6485_v25 = vmul.f32 0.0078125, %v6479_v11 }
 0xdca   : > { %v6481_v56 = vpop.xlane.xlu1 %6480 }
 0xdcb   : > { %8437 = vrsqrt.f32 %v6488_v52  ;;  %v6489_v17 = vadd.f32 1e-05, %v6485_v25  ;;  %v6486_v6 = vmul.f32 0.0078125, %v6481_v56 }
 0xdcd   : > { %8439 = vrsqrt.f32 %v6489_v17  ;;  %v6490_v55 = vadd.f32 1e-05, %v6486_v6 }
 0xdce   : > { %v6483_v18 = vpop.xlane.xlu0 %6482 }
 0xdcf   : > { %8441 = vrsqrt.f32 %v6490_v55  ;;  %v6487_v34 = vmul.f32 0.0078125, %v6483_v18  ;;  %v7197_v18 = vld [vmem:[%s11606_s28] ss:$0 sm:$0xff] }
 0xdd1   : > { %v6491_v48 = vadd.f32 1e-05, %v6487_v34 }
 0xdd3   : > { %8443 = vrsqrt.f32 %v6491_v48 }
 0xdd5   : > { %v8438_v14 = vpop.eup %8437 }
 0xdd6   : > { %v6496_v45 = vmul.f32 %v8438_v14, %v6468_v58  ;;  %v7188_v58 = vld [vmem:[#allocation27] ss:$0 sm:$0xff] }
 0xdd7   : > { %v8440_v33 = vpop.eup %8439 }
 0xdd8   : > { %v6497_v38 = vmul.f32 %v8440_v33, %v6469_v15  ;;  %v6506_v28 = vmul.f32 %v7186_v26, %v6496_v45 }
 0xdd9   : > { %v8442_v5 = vpop.eup %8441 }
 0xdda   : > { %v6507_v9 = vmul.f32 %v7186_v26, %v6497_v38  ;;  %v6498_v50 = vmul.f32 %v8442_v5, %v11244_v29  ;;  %v6516_v20 = vadd.f32 %v7187_v0, %v6506_v28 }
 0xddc   : > { %v6517_v44 = vadd.f32 %v7187_v0, %v6507_v9  ;;  %v6508_v2 = vmul.f32 %v7186_v26, %v6498_v50 }
 0xddd   : > { %v8444_v57 = vpop.eup %8443 }
 0xdde   : > { %v6520_v36 = vpack.c.bf16 %v6517_v44, %v6516_v20  ;;  %v6499_v31 = vmul.f32 %v8444_v57, %v6471_v16  ;;  %v6518_v62 = vadd.f32 %v7187_v0, %v6508_v2 }
 0xde0   : > { %7911 = vmatprep.mubr.bf16.mxu1 %v6520_v36  ;;  %v6509_v54 = vmul.f32 %v7186_v26, %v6499_v31 }
 0xde2   : > { %v6519_v12 = vadd.f32 %v7187_v0, %v6509_v54 }
 0xde4   : > { %v6521_v63 = vpack.c.bf16 %v6519_v12, %v6518_v62 }
 0xde6   : > { %7912 = vmatmul.mubr.bf16.vlgmr.msra.gmra.mrb[0].mxu1 %v6521_v63 }
 0xeb9   : > { %v7913_v8 = vpop.f32.mrb[0].mxu1 }
 0xeba   : > { %v6636_v53 = vadd.f32 %v7913_v8, %v7188_v58  ;;  %v6627_v15 = vpop.f32.mrb[1].mxu1 }
 0xebb   : > { %v6628_v59 = vadd.f32 %v7188_v58, %v6627_v15  ;;  %v7914_v19 = vpop.f32.mrb[2].mxu1 }
 0xebc   : > { %v6648_v29 = vmul.f32 0.70710677, %v6636_v53  ;;  %v6639_v39 = vadd.f32 %v7914_v19, %v7188_v58  ;;  %v6630_v47 = vpop.f32.mrb[3].mxu1  ;;  %v6644_v13 = vmul.f32 0.5, %v6636_v53 }
 0xebd   : > { %v6646_v27 = vmul.f32 0.70710677, %v6628_v59  ;;  %v6631_v51 = vadd.f32 %v7188_v58, %v6630_v47  ;;  %v6642_v43 = vmul.f32 0.5, %v6628_v59 }
 0xebe   : > { %8445 = verf.f32 %v6648_v29  ;;  %v6649_v16 = vmul.f32 0.70710677, %v6639_v39  ;;  %v6645_v24 = vmul.f32 0.5, %v6639_v39 }
 0xebf   : > { %8447 = verf.f32 %v6646_v27  ;;  %v6647_v7 = vmul.f32 0.70710677, %v6631_v51  ;;  %v6643_v40 = vmul.f32 0.5, %v6631_v51 }
 0xec0   : > { %8449 = verf.f32 %v6649_v16 }
 0xec1   : > { %8451 = verf.f32 %v6647_v7 }
 0xec8   : > { %v8446_v42 = vpop.eup %8445 }
 0xec9   : > { %v8448_v21 = vpop.eup %8447  ;;  %v6656_v32 = vadd.f32 1.0, %v8446_v42 }
 0xeca   : > { %v8450_v1 = vpop.eup %8449  ;;  %v6654_v4 = vadd.f32 1.0, %v8448_v21 }
 0xecb   : > { %v8452_v46 = vpop.eup %8451  ;;  %v6657_v37 = vadd.f32 1.0, %v8450_v1  ;;  %v6660_v52 = vmul.f32 %v6656_v32, %v6644_v13 }
 0xecc   : > { %v6655_v11 = vadd.f32 1.0, %v8452_v46  ;;  %v6658_v56 = vmul.f32 %v6654_v4, %v6642_v43 }
 0xecd   : > { %v6661_v25 = vmul.f32 %v6657_v37, %v6645_v24 }
 0xece   : > { %v6659_v17 = vmul.f32 %v6655_v11, %v6643_v40 }
 0xecf   : > { %v6663_v6 = vpack.c.bf16 %v6661_v25, %v6660_v52 }
 0xed0   : > { %v6662_v55 = vpack.c.bf16 %v6659_v17, %v6658_v56 }
 0xed2   : > { %7931 = vmatprep.mubr.bf16.mxu0 %v6662_v55 }
 0xed3   : > { %7932 = vmatmul.mubr.bf16.vlgmr.msra.gmra.mrb[4].mxu0 %v6663_v6 }
 0xfa6   : > { %v7933_v34 = vpop.f32.mrb[4].mxu0 }
 0xfa7   : > { %v6778_v48 = vadd.f32 %v7933_v34, %v7197_v18  ;;  %v6769_v14 = vpop.f32.mrb[5].mxu0 }
 0xfa8   : > { %v6770_v26 = vadd.f32 %v7197_v18, %v6769_v14  ;;  %v7934_v45 = vpop.f32.mrb[6].mxu0 }
 0xfa9   : > { %v6786_v33 = vadd.f32 %v6778_v48, %v11234_v23  ;;  %v6781_v38 = vadd.f32 %v7934_v45, %v7197_v18  ;;  %v6772_v28 = vpop.f32.mrb[7].mxu0 }
 0xfaa   : > { %v6784_v5 = vadd.f32 %v6770_v26, %v11229_v10  ;;  %v6773_v0 = vadd.f32 %v7197_v18, %v6772_v28 }
 0xfab   : > { %6790 = vst [vmem:[#allocation29 + $0x10] sm:$0xff] %v6786_v33  ;;  %v6787_v9 = vadd.f32 %v6781_v38, %v11238_v49 }
 0xfac   : > { %6788 = vst [vmem:[#allocation29] sm:$0xff] %v6784_v5  ;;  %v6785_v50 = vadd.f32 %v6773_v0, %v11231_v30 }
 0xfad   : > { %6791 = vst [vmem:[#allocation29 + $0x18] sm:$0xff] %v6787_v9 }
 0xfae   : > { %6789 = vst [vmem:[#allocation29 + $0x8] sm:$0xff] %v6785_v50 }
 0xfaf PF: > { %s11607_s1 = sld [smem:[#allocation45_spill]]  ;;  %s8981_s18 = smov [#allocation29]  }
 0xfb0   : > { %s6801_s5 = sshll.u32 %s8981_s18, 4  ;;  %s6802_s5 = int_to_ptr.vmem [resolvable:$true] %s6801_s5 }
 0xfb1   : > { %s8817_s7 = scalar_lea.vmem %s6802_s5, 512  ;;  %p8824_p9 = scmp.lt.s32.totalorder %s6802_s5, %s6802_s5 }
 0xfb2   : > { %p8818_p4 = scmp.ne.s32.totalorder %s6802_s5, %s8817_s7  ;;  %p8825_p11 = scmp.lt.s32.totalorder %s8817_s7, %s8817_s7 }
 0xfb4   : > { %p8826_p13 = por %p8825_p11, %p8824_p9 }
 0xfb5   : > { %p8066_p2 = scmp.eq.s32.totalorder %s11607_s1, 1 }
 0xfb7   : > { %p8819_p6 = pnand %p8818_p4, %p8066_p2 }
 0xfb9   : > { %p8820_p7 = pneg %p8819_p6 }
 0xfbb   : > { %p8827_p12 = pnand %p8826_p13, %p8820_p7 }
 0xfbd   : > { %8830 = shalt.err (!%p8827_p12)
}
 0xfbe   : > { %s11608_s27 = sld [smem:[#allocation105_spill]] }
 0xfc4   : > { %s8831_s11 = scalar_lea.hbm %s11608_s27, 512 }
 0xfc5   : > { %p8832_p0 = scmp.ne.s32.totalorder %s11608_s27, %s8831_s11  ;;  %p8837_p3 = scmp.lt.u32.totalorder %s8831_s11, %s11608_s27 }
 0xfc7   : > { %p8833_p1 = pnand %p8832_p0, %p8066_p2 }
 0xfc9   : > { %p8834_p5 = pneg %p8833_p1 }
 0xfcb   : > { %p8839_p8 = pnand %p8837_p3, %p8834_p5 }
 0xfcd   : > { %8842 = shalt.err (!%p8839_p8)
}
 0xfce   : > { %s8982_s3 = smov 128   ;;  %s8983_s24 = smov 8  }
 0xfcf   : > { %7997 = dma.vmem_to_hbm [thread:$0]  (%p8066_p2), %s6802_s5, 512, %s11608_s27, [#allocation8], %s8982_s3, %s8982_s3, %s8983_s24  }
 0xfd0   : > { %8904 = dma.done.wait (%p8066_p2), [#allocation8], 512  }
 0xfd1   : > { %8906 = vsyncadd (%p8066_p2), [#allocation8], 4294966784 }
 0xfd2 PF: > { %s41_s25 = sadd.s32 1, %s8929_s25   ;;  %s11609_s1 = sld [smem:[#allocation43_spill]] }
 0xfd3   : > { %p38_p10 = scmp.ge.s32.totalorder %s41_s25, 4   ;;  %s11610_s28 = sld [smem:[#allocation48_spill]] }
 0xfd4   : > { %s11611_s18 = sld [smem:[#allocation46_spill]]  ;;  %s11612_s22 = smov %s8917_s23 }
 0xfd5   : > { %s11614_s24 = smov %s8925_s2  ;;  %40 = sbr.rel (!%p38_p10) target bundleno = 25 (0x19), region = 205 }
 0xfd9   : > { %s11613_s23 = smov %s11610_s28 }
 0xfda   : > { %s11615_s2 = smov %s11611_s18 }
 0xfdc   :  { %6817 = vsyncpa [#allocation7], 1 }
 0xfdd   :  { %6819 = vsyncpa [#allocation7 + $0x1], 1 }
 0xfde   :  { %6820 = vsyncpa [#allocation10], 1 }
 0xfdf   :  { %6822 = vsyncpa [#allocation10 + $0x1], 1 }
 0xfe0   :  { %6823 = vsyncpa [#allocation13], 1 }
 0xfe1   :  { %6824 = vsyncpa [#allocation16], 1 }
 0xfe2   :  { %6825 = vsyncpa [#allocation19], 1 }
 0xfe3   :  { %6826 = vsyncpa [#allocation22], 1 }
 0xfe4   :  { %6827 = vsyncpa [#allocation25], 1 }
 0xfe5   :  { %6828 = vsyncpa [#allocation28], 1 }
 0xfe6   :  { %6829 = vsyncpa [#allocation8], 1 }
 0xfe7   :  { %6831 = vsyncpa [#allocation8 + $0x1], 1 }

</bundles_post_ra>
